<compile_context>
chip_gen: v7x
topology: tpu7x:2x2x1
jax: 0.10.0
libtpu: 0.0.40
codegen_flags: <defaults>
</compile_context>

<pallas_src>
import numpy as np
import jax
import jax.numpy as jnp
from jax.experimental import pallas as pl
from jax.experimental.pallas import tpu as pltpu

POOL_KS = (2, 3, 5, 6)          # kernel == stride for each branch (nn.MaxPool2d args)
NB_BRANCHES = len(POOL_KS)


def _round_up(x, m):
  return (x + m - 1) // m * m


def _bilinear_matrix(in_size, out_size, align_corners=False):
  """U (out_size, in_size): PyTorch bilinear interpolation weights."""
  y = np.arange(out_size, dtype=np.float64)
  if align_corners and out_size > 1:
    src = y * (in_size - 1) / max(out_size - 1, 1)
  else:
    src = np.maximum((y + 0.5) * (in_size / out_size) - 0.5, 0.0)
  i0 = np.minimum(np.floor(src).astype(np.int64), in_size - 1)
  i1 = np.minimum(i0 + 1, in_size - 1)
  w1 = (src - i0).astype(np.float32)
  w0 = 1.0 - w1
  U = np.zeros((out_size, in_size), np.float32)
  U[np.arange(out_size), i0] += w0
  U[np.arange(out_size), i1] += w1
  return U


def _folded_interp(full, k, out_size, align_corners=False):
  """V (out_size, full): bilinear-from-pooled-grid folded with the stride-k selection.

  Only columns i*k with i < full//k are non-zero, so a cyclic window-max at those
  positions covers exactly [i*k, i*k + k - 1] with no wraparound (ceil_mode=False)."""
  pooled = full // k
  U = _bilinear_matrix(pooled, out_size, align_corners)   # (out_size, pooled)
  V = np.zeros((out_size, full), np.float32)
  V[:, np.arange(pooled) * k] = U
  return V


def _make_kernel(Nb, C, H, W, out_dtype):
  R = Nb * H   # rows of the folded (batch, H) axis

  def _shift_rows(v, d):
    # result[r] = v[(r + d) mod R] along the leading row axis; d is a static int >= 1.
    hi = jax.lax.slice_in_dim(v, d, R, axis=0)
    lo = jax.lax.slice_in_dim(v, 0, d, axis=0)
    return jnp.concatenate([hi, lo], axis=0)

  def kernel(bias_ref, w_ref, vh_ref, vw_ref, x_ref, o_ref):
    bias = bias_ref[0]
    # (Nb, H, W, C) -> (Nb*H, W, C): leading-dim merge (free); lane dim = C.
    x3 = x_ref[...].reshape(R, W, C)
    # Conv weight broadcast hoisted out of the branch loop (JAX does not CSE it).
    w_wc = jnp.broadcast_to(w_ref[...], (W, C))            # (W, C) float32

    def run_branch(b, k, wmax):
      # wmax: (R, W, C) -- W-axis cyclic window max of width k.
      # ---- H-axis window max: log-doubling shifts along the leading row axis.
      # Only rows r = n*H + p*k (p < H//k) are consumed downstream; their window
      # [r, r+k-1] stays inside batch element n, so neither the cyclic wrap nor the
      # batch boundary is ever selected.
      m, cov = wmax, 1
      while cov < k:
        step = min(cov, k - cov)
        m = jnp.maximum(m, _shift_rows(m, step))
        cov += step
      # ---- 1x1 conv (C -> 1): weighted reduction over the channel (lane) axis.
      # m (input dtype) * w_wc (f32) promotes to f32, so the sum accumulates in f32.
      s = jnp.sum(m * w_wc, axis=-1)                        # (R, W) float32
      # ---- fused strided selection + bilinear upsample: two small MXU matmuls.
      t = jnp.dot(s, vw_ref[b], preferred_element_type=jnp.float32)      # (R, W)
      for n in range(Nb):
        up = jnp.dot(vh_ref[b], t[n * H:(n + 1) * H, :],
                     preferred_element_type=jnp.float32)                 # (H, W)
        # bias added after upsampling is exact: bilinear rows of Vh/Vw sum to 1.
        o_ref[n, b, :, :] = (up + bias).astype(out_dtype)

    # ---- shared, incremental W-axis window max (XLU sublane rotates); each branch
    # runs as soon as its window width is ready, keeping live temporaries minimal.
    cur = x3
    for d in range(1, max(POOL_KS)):
      cur = jnp.maximum(cur, pltpu.roll(x3, (W - d) % W, 1))
      if (d + 1) in POOL_KS:
        run_branch(POOL_KS.index(d + 1), d + 1, cur)

  return kernel


def _vmem_limit_bytes():
  """Per-generation scoped-VMEM budget (tight on v7x, generous on v5e/v6e)."""
  try:
    cap = int(pltpu.get_tpu_info().vmem_capacity_bytes)
  except Exception:  # pragma: no cover - conservative fallback
    cap = 64 * 1024 * 1024
  if cap <= 64 * 1024 * 1024:
    return 44 * 1024 * 1024          # v7x: 64 MiB/TC, leave headroom for Mosaic scratch
  return 96 * 1024 * 1024            # v5e/v6e: 128 MiB physical


def _choose_nb(N, C, H, W, itemsize, vmem_limit):
  """Batch elements per grid step: padding-aware VMEM estimate, >= 2 grid steps."""
  sub = 8 * 4 // itemsize                       # sublane tile: 8 (f32) / 16 (bf16)
  c_pad = _round_up(C, 128)
  w_pad = _round_up(W, sub)
  x_blk = H * w_pad * c_pad * itemsize          # one batch element of the x block (padded)
  f32_blk = H * _round_up(W, 8) * c_pad * 4     # conv product temp is f32
  o_blk = NB_BRANCHES * _round_up(H, sub) * _round_up(W, 128) * itemsize
  # double-buffered x + out blocks, ~4 live full-size temps, + the f32 conv product
  per_elem = 2 * x_blk + 4 * x_blk + 2 * f32_blk + 2 * o_blk
  fixed = 2 * (NB_BRANCHES * _round_up(H, 8) * _round_up(H, 128) * 4
               + NB_BRANCHES * _round_up(W, 8) * _round_up(W, 128) * 4
               + 8 * c_pad * 4)                 # double-buffered Vh, Vw^T, conv weight
  budget = int(vmem_limit * 0.7) - fixed
  cap = max(1, budget // per_elem)
  if N >= 2:
    cap = min(cap, N // 2)     # keep >= 2 grid steps so both v7x TensorCores get work
  cap = int(min(cap, 8, N))
  nb = 1
  for d in range(1, cap + 1):
    if N % d == 0:
      nb = d
  return nb


def spp_block(x, weight, bias, *, align_corners=False):
  """x: (N, C, H, W); weight: Conv2d(C,1,1) weight (any shape with C elements); bias: (1,)."""
  N, C, H, W = x.shape
  assert H >= max(POOL_KS) and W >= max(POOL_KS), "spatial dims must cover pool kernels"
  if x.dtype not in (jnp.float32, jnp.bfloat16):
    x = x.astype(jnp.float32)
  cdt = x.dtype
  itemsize = x.dtype.itemsize

  vmem_limit = _vmem_limit_bytes()
  Nb = _choose_nb(N, C, H, W, itemsize, vmem_limit)

  # per-branch folded (selection o bilinear) matrices
  vh = np.stack([_folded_interp(H, k, H, align_corners) for k in POOL_KS])      # (4, H, H)
  vw = np.stack([_folded_interp(W, k, W, align_corners).T for k in POOL_KS])    # (4, W, W)

  # NCHW -> NHWC so the kernel sees the channel dim on the 128-wide lane axis.
  xt = jnp.transpose(x, (0, 2, 3, 1))                                           # (N, H, W, C)
  w2d = jnp.reshape(weight, (1, C)).astype(jnp.float32)
  b1 = jnp.reshape(bias, (1,)).astype(jnp.float32)

  branches = pl.pallas_call(
      _make_kernel(Nb, C, H, W, cdt),
      out_shape=jax.ShapeDtypeStruct((N, NB_BRANCHES, H, W), cdt),
      grid=(N // Nb,),
      in_specs=[
          pl.BlockSpec(memory_space=pltpu.MemorySpace.SMEM),               # bias scalar
          pl.BlockSpec((1, C), lambda i: (0, 0)),                          # conv weight row
          pl.BlockSpec((NB_BRANCHES, H, H), lambda i: (0, 0, 0)),          # Vh
          pl.BlockSpec((NB_BRANCHES, W, W), lambda i: (0, 0, 0)),          # Vw^T
          pl.BlockSpec((Nb, H, W, C), lambda i: (i, 0, 0, 0)),             # x block (NHWC)
      ],
      out_specs=pl.BlockSpec((Nb, NB_BRANCHES, H, W), lambda i: (i, 0, 0, 0)),
      compiler_params=pltpu.CompilerParams(
          dimension_semantics=("parallel",),          # batch blocks are independent
          vmem_limit_bytes=vmem_limit),
  )(b1, w2d, jnp.asarray(vh), jnp.asarray(vw), xt)

  # passthrough channels concatenated outside the kernel (no extra HBM round-trip
  # through the kernel for the C input channels).
  return jnp.concatenate([branches.astype(x.dtype), x], axis=1)


def _reference(x, weight, bias, align_corners=False):
  """Pure-JAX reference of the PyTorch forward."""
  N, C, H, W = x.shape
  hp = jax.lax.Precision.HIGHEST
  outs = []
  for k in POOL_KS:
    ph, pw = H // k, W // k
    xt = x[:, :, :ph * k, :pw * k].reshape(N, C, ph, k, pw, k)
    pooled = xt.max(axis=(3, 5))                                        # (N, C, ph, pw)
    conv = jnp.einsum('nchw,c->nhw', pooled, weight, precision=hp) + bias[0]
    Uh = jnp.asarray(_bilinear_matrix(ph, H, align_corners))
    Uw = jnp.asarray(_bilinear_matrix(pw, W, align_corners))
    up = jnp.einsum('hp,npq,wq->nhw', Uh, conv, Uw, precision=hp)
    outs.append(up[:, None])
  return jnp.concatenate(outs + [x], axis=1)


if __name__ == "__main__":
  def run_case(case_idx, N, C, H, W):
    key = jax.random.fold_in(jax.random.PRNGKey(0), case_idx)
    kx, kw, kb = jax.random.split(key, 3)
    x = jax.random.normal(kx, (N, C, H, W), jnp.float32)
    # synthetic 1x1 conv parameters (nn.Conv2d(C, 1, 1): weight (1,C,1,1), bias (1,))
    weight = jax.random.normal(kw, (C,), jnp.float32) * 0.5
    bias = jax.random.normal(kb, (1,), jnp.float32) * 0.1

    out = jax.block_until_ready(spp_block(x, weight, bias))
    assert out.shape == (N, NB_BRANCHES + C, H, W), out.shape
    assert bool(jnp.all(jnp.isfinite(out)))
    # passthrough channels must equal x exactly
    assert np.array_equal(np.asarray(out[:, NB_BRANCHES:]), np.asarray(x)), "passthrough"
    # branch channels vs pure-JAX reference of the PyTorch forward
    ref = jax.block_until_ready(_reference(x, weight, bias))
    np.testing.assert_allclose(np.asarray(out[:, :NB_BRANCHES]),
                               np.asarray(ref[:, :NB_BRANCHES]),
                               rtol=2e-2, atol=2e-2)

  run_case(0, N=2, C=4, H=16, W=16)    # small shape consistent with the module
  run_case(1, N=2, C=8, H=16, W=32)    # non-square spatial, exercises H/W handling
  print("KERNEL_OK")
</pallas_src>

<mosaic_0001>
module attributes {stable_mosaic.version = 11 : i64} {
  func.func @kernel(%arg0: i32, %arg1: memref<1xf32, #tpu.memory_space<smem>>, %arg2: memref<1x4xf32, #tpu.memory_space<vmem>>, %arg3: memref<4x16x16xf32, #tpu.memory_space<vmem>>, %arg4: memref<4x16x16xf32, #tpu.memory_space<vmem>>, %arg5: memref<1x16x16x4xf32, #tpu.memory_space<vmem>>, %arg6: memref<1x4x16x16xf32, #tpu.memory_space<vmem>>) attributes {dimension_semantics = [#tpu.dimension_semantics<parallel>], iteration_bounds = array<i64: 2>, scalar_prefetch = 0 : i64, scratch_operands = 0 : i64, tpu.core_type = #tpu.core_type<tc>, window_params = [{transform_indices = @transform_0, window_bounds = array<i64: 1>}, {pipeline_mode = #tpu.pipeline_mode<synchronous>, transform_indices = @transform_1, window_bounds = array<i64: 1, 4>}, {pipeline_mode = #tpu.pipeline_mode<synchronous>, transform_indices = @transform_2, window_bounds = array<i64: 4, 16, 16>}, {pipeline_mode = #tpu.pipeline_mode<synchronous>, transform_indices = @transform_3, window_bounds = array<i64: 4, 16, 16>}, {transform_indices = @transform_4, window_bounds = array<i64: 1, 16, 16, 4>}, {transform_indices = @transform_5, window_bounds = array<i64: 1, 4, 16, 16>}]} {
    %c0 = arith.constant 0 : index
    %0 = memref.load %arg1[%c0] : memref<1xf32, #tpu.memory_space<smem>>
    %c0_0 = arith.constant 0 : index
    %c0_1 = arith.constant 0 : index
    %c0_2 = arith.constant 0 : index
    %c0_3 = arith.constant 0 : index
    %1 = vector.load %arg5[%c0_0, %c0_1, %c0_2, %c0_3] : memref<1x16x16x4xf32, #tpu.memory_space<vmem>>, vector<1x16x16x4xf32>
    %2 = vector.shape_cast %1 : vector<1x16x16x4xf32> to vector<16x16x4xf32>
    %c0_4 = arith.constant 0 : index
    %c0_5 = arith.constant 0 : index
    %3 = vector.load %arg2[%c0_4, %c0_5] : memref<1x4xf32, #tpu.memory_space<vmem>>, vector<1x4xf32>
    %4 = vector.shape_cast %3 : vector<1x4xf32> to vector<1x4xf32>
    %5 = vector.broadcast %4 : vector<1x4xf32> to vector<16x4xf32>
    %c15_i32 = arith.constant 15 : i32
    %6 = tpu.dynamic_rotate %2 by %c15_i32 dim 1 : vector<16x16x4xf32>, i32 -> vector<16x16x4xf32>
    %7 = arith.maximumf %2, %6 : vector<16x16x4xf32>
    %8 = vector.extract_strided_slice %7 {offsets = [1, 0, 0], sizes = [15, 16, 4], strides = [1, 1, 1]} : vector<16x16x4xf32> to vector<15x16x4xf32>
    %9 = vector.extract_strided_slice %7 {offsets = [0, 0, 0], sizes = [1, 16, 4], strides = [1, 1, 1]} : vector<16x16x4xf32> to vector<1x16x4xf32>
    %10 = tpu.concatenate %8, %9 in 0 : vector<15x16x4xf32>, vector<1x16x4xf32> -> vector<16x16x4xf32>
    %11 = arith.maximumf %7, %10 : vector<16x16x4xf32>
    %12 = vector.shape_cast %5 : vector<16x4xf32> to vector<1x16x4xf32>
    %13 = vector.broadcast %12 : vector<1x16x4xf32> to vector<16x16x4xf32>
    %14 = arith.mulf %11, %13 : vector<16x16x4xf32>
    %cst = arith.constant dense<0.000000e+00> : vector<16x16xf32>
    %15 = vector.multi_reduction <add>, %14, %cst [2] : vector<16x16x4xf32> to vector<16x16xf32>
    %c0_6 = arith.constant 0 : index
    %c0_7 = arith.constant 0 : index
    %c0_8 = arith.constant 0 : index
    %16 = vector.load %arg4[%c0_6, %c0_7, %c0_8] : memref<4x16x16xf32, #tpu.memory_space<vmem>>, vector<1x16x16xf32>
    %17 = vector.shape_cast %16 : vector<1x16x16xf32> to vector<16x16xf32>
    %cst_9 = arith.constant dense<0.000000e+00> : vector<16x16xf32>
    %18 = tpu.matmul %15, %17, %cst_9 {dimension_numbers = #tpu.dot_dimension_numbers<[1], [0], [0], [1], [0, 0, 1, 1], [], []>} : vector<16x16xf32>, vector<16x16xf32>, vector<16x16xf32> -> vector<16x16xf32>
    %c0_10 = arith.constant 0 : index
    %c0_11 = arith.constant 0 : index
    %c0_12 = arith.constant 0 : index
    %19 = vector.load %arg3[%c0_10, %c0_11, %c0_12] : memref<4x16x16xf32, #tpu.memory_space<vmem>>, vector<1x16x16xf32>
    %20 = vector.shape_cast %19 : vector<1x16x16xf32> to vector<16x16xf32>
    %cst_13 = arith.constant dense<0.000000e+00> : vector<16x16xf32>
    %21 = tpu.matmul %20, %18, %cst_13 {dimension_numbers = #tpu.dot_dimension_numbers<[1], [0], [0], [1], [0, 0, 1, 1], [], []>} : vector<16x16xf32>, vector<16x16xf32>, vector<16x16xf32> -> vector<16x16xf32>
    %22 = vector.broadcast %0 : f32 to vector<16x16xf32>
    %23 = arith.addf %21, %22 : vector<16x16xf32>
    %c0_14 = arith.constant 0 : index
    %c0_15 = arith.constant 0 : index
    %c0_16 = arith.constant 0 : index
    %c0_17 = arith.constant 0 : index
    %24 = vector.load %arg6[%c0_14, %c0_15, %c0_16, %c0_17] : memref<1x4x16x16xf32, #tpu.memory_space<vmem>>, vector<1x1x16x16xf32>
    %25 = vector.shape_cast %24 : vector<1x1x16x16xf32> to vector<16x16xf32>
    %26 = vector.shape_cast %23 : vector<16x16xf32> to vector<1x1x16x16xf32>
    tpu.vector_store %arg6[%c0_14, %c0_15, %c0_16, %c0_17], %26 {strides = array<i32>} : memref<1x4x16x16xf32, #tpu.memory_space<vmem>>, vector<1x1x16x16xf32>,
    %c14_i32 = arith.constant 14 : i32
    %27 = tpu.dynamic_rotate %2 by %c14_i32 dim 1 : vector<16x16x4xf32>, i32 -> vector<16x16x4xf32>
    %28 = arith.maximumf %7, %27 : vector<16x16x4xf32>
    %29 = vector.extract_strided_slice %28 {offsets = [1, 0, 0], sizes = [15, 16, 4], strides = [1, 1, 1]} : vector<16x16x4xf32> to vector<15x16x4xf32>
    %30 = vector.extract_strided_slice %28 {offsets = [0, 0, 0], sizes = [1, 16, 4], strides = [1, 1, 1]} : vector<16x16x4xf32> to vector<1x16x4xf32>
    %31 = tpu.concatenate %29, %30 in 0 : vector<15x16x4xf32>, vector<1x16x4xf32> -> vector<16x16x4xf32>
    %32 = arith.maximumf %28, %31 : vector<16x16x4xf32>
    %33 = vector.extract_strided_slice %32 {offsets = [1, 0, 0], sizes = [15, 16, 4], strides = [1, 1, 1]} : vector<16x16x4xf32> to vector<15x16x4xf32>
    %34 = vector.extract_strided_slice %32 {offsets = [0, 0, 0], sizes = [1, 16, 4], strides = [1, 1, 1]} : vector<16x16x4xf32> to vector<1x16x4xf32>
    %35 = tpu.concatenate %33, %34 in 0 : vector<15x16x4xf32>, vector<1x16x4xf32> -> vector<16x16x4xf32>
    %36 = arith.maximumf %32, %35 : vector<16x16x4xf32>
    %37 = vector.shape_cast %5 : vector<16x4xf32> to vector<1x16x4xf32>
    %38 = vector.broadcast %37 : vector<1x16x4xf32> to vector<16x16x4xf32>
    %39 = arith.mulf %36, %38 : vector<16x16x4xf32>
    %cst_18 = arith.constant dense<0.000000e+00> : vector<16x16xf32>
    %40 = vector.multi_reduction <add>, %39, %cst_18 [2] : vector<16x16x4xf32> to vector<16x16xf32>
    %c1 = arith.constant 1 : index
    %c0_19 = arith.constant 0 : index
    %c0_20 = arith.constant 0 : index
    %41 = vector.load %arg4[%c1, %c0_19, %c0_20] : memref<4x16x16xf32, #tpu.memory_space<vmem>>, vector<1x16x16xf32>
    %42 = vector.shape_cast %41 : vector<1x16x16xf32> to vector<16x16xf32>
    %cst_21 = arith.constant dense<0.000000e+00> : vector<16x16xf32>
    %43 = tpu.matmul %40, %42, %cst_21 {dimension_numbers = #tpu.dot_dimension_numbers<[1], [0], [0], [1], [0, 0, 1, 1], [], []>} : vector<16x16xf32>, vector<16x16xf32>, vector<16x16xf32> -> vector<16x16xf32>
    %c1_22 = arith.constant 1 : index
    %c0_23 = arith.constant 0 : index
    %c0_24 = arith.constant 0 : index
    %44 = vector.load %arg3[%c1_22, %c0_23, %c0_24] : memref<4x16x16xf32, #tpu.memory_space<vmem>>, vector<1x16x16xf32>
    %45 = vector.shape_cast %44 : vector<1x16x16xf32> to vector<16x16xf32>
    %cst_25 = arith.constant dense<0.000000e+00> : vector<16x16xf32>
    %46 = tpu.matmul %45, %43, %cst_25 {dimension_numbers = #tpu.dot_dimension_numbers<[1], [0], [0], [1], [0, 0, 1, 1], [], []>} : vector<16x16xf32>, vector<16x16xf32>, vector<16x16xf32> -> vector<16x16xf32>
    %47 = vector.broadcast %0 : f32 to vector<16x16xf32>
    %48 = arith.addf %46, %47 : vector<16x16xf32>
    %c0_26 = arith.constant 0 : index
    %c1_27 = arith.constant 1 : index
    %c0_28 = arith.constant 0 : index
    %c0_29 = arith.constant 0 : index
    %49 = vector.load %arg6[%c0_26, %c1_27, %c0_28, %c0_29] : memref<1x4x16x16xf32, #tpu.memory_space<vmem>>, vector<1x1x16x16xf32>
    %50 = vector.shape_cast %49 : vector<1x1x16x16xf32> to vector<16x16xf32>
    %51 = vector.shape_cast %48 : vector<16x16xf32> to vector<1x1x16x16xf32>
    tpu.vector_store %arg6[%c0_26, %c1_27, %c0_28, %c0_29], %51 {strides = array<i32>} : memref<1x4x16x16xf32, #tpu.memory_space<vmem>>, vector<1x1x16x16xf32>,
    %c13_i32 = arith.constant 13 : i32
    %52 = tpu.dynamic_rotate %2 by %c13_i32 dim 1 : vector<16x16x4xf32>, i32 -> vector<16x16x4xf32>
    %53 = arith.maximumf %28, %52 : vector<16x16x4xf32>
    %c12_i32 = arith.constant 12 : i32
    %54 = tpu.dynamic_rotate %2 by %c12_i32 dim 1 : vector<16x16x4xf32>, i32 -> vector<16x16x4xf32>
    %55 = arith.maximumf %53, %54 : vector<16x16x4xf32>
    %56 = vector.extract_strided_slice %55 {offsets = [1, 0, 0], sizes = [15, 16, 4], strides = [1, 1, 1]} : vector<16x16x4xf32> to vector<15x16x4xf32>
    %57 = vector.extract_strided_slice %55 {offsets = [0, 0, 0], sizes = [1, 16, 4], strides = [1, 1, 1]} : vector<16x16x4xf32> to vector<1x16x4xf32>
    %58 = tpu.concatenate %56, %57 in 0 : vector<15x16x4xf32>, vector<1x16x4xf32> -> vector<16x16x4xf32>
    %59 = arith.maximumf %55, %58 : vector<16x16x4xf32>
    %60 = vector.extract_strided_slice %59 {offsets = [2, 0, 0], sizes = [14, 16, 4], strides = [1, 1, 1]} : vector<16x16x4xf32> to vector<14x16x4xf32>
    %61 = vector.extract_strided_slice %59 {offsets = [0, 0, 0], sizes = [2, 16, 4], strides = [1, 1, 1]} : vector<16x16x4xf32> to vector<2x16x4xf32>
    %62 = tpu.concatenate %60, %61 in 0 : vector<14x16x4xf32>, vector<2x16x4xf32> -> vector<16x16x4xf32>
    %63 = arith.maximumf %59, %62 : vector<16x16x4xf32>
    %64 = vector.extract_strided_slice %63 {offsets = [1, 0, 0], sizes = [15, 16, 4], strides = [1, 1, 1]} : vector<16x16x4xf32> to vector<15x16x4xf32>
    %65 = vector.extract_strided_slice %63 {offsets = [0, 0, 0], sizes = [1, 16, 4], strides = [1, 1, 1]} : vector<16x16x4xf32> to vector<1x16x4xf32>
    %66 = tpu.concatenate %64, %65 in 0 : vector<15x16x4xf32>, vector<1x16x4xf32> -> vector<16x16x4xf32>
    %67 = arith.maximumf %63, %66 : vector<16x16x4xf32>
    %68 = vector.shape_cast %5 : vector<16x4xf32> to vector<1x16x4xf32>
    %69 = vector.broadcast %68 : vector<1x16x4xf32> to vector<16x16x4xf32>
    %70 = arith.mulf %67, %69 : vector<16x16x4xf32>
    %cst_30 = arith.constant dense<0.000000e+00> : vector<16x16xf32>
    %71 = vector.multi_reduction <add>, %70, %cst_30 [2] : vector<16x16x4xf32> to vector<16x16xf32>
    %c2 = arith.constant 2 : index
    %c0_31 = arith.constant 0 : index
    %c0_32 = arith.constant 0 : index
    %72 = vector.load %arg4[%c2, %c0_31, %c0_32] : memref<4x16x16xf32, #tpu.memory_space<vmem>>, vector<1x16x16xf32>
    %73 = vector.shape_cast %72 : vector<1x16x16xf32> to vector<16x16xf32>
    %cst_33 = arith.constant dense<0.000000e+00> : vector<16x16xf32>
    %74 = tpu.matmul %71, %73, %cst_33 {dimension_numbers = #tpu.dot_dimension_numbers<[1], [0], [0], [1], [0, 0, 1, 1], [], []>} : vector<16x16xf32>, vector<16x16xf32>, vector<16x16xf32> -> vector<16x16xf32>
    %c2_34 = arith.constant 2 : index
    %c0_35 = arith.constant 0 : index
    %c0_36 = arith.constant 0 : index
    %75 = vector.load %arg3[%c2_34, %c0_35, %c0_36] : memref<4x16x16xf32, #tpu.memory_space<vmem>>, vector<1x16x16xf32>
    %76 = vector.shape_cast %75 : vector<1x16x16xf32> to vector<16x16xf32>
    %cst_37 = arith.constant dense<0.000000e+00> : vector<16x16xf32>
    %77 = tpu.matmul %76, %74, %cst_37 {dimension_numbers = #tpu.dot_dimension_numbers<[1], [0], [0], [1], [0, 0, 1, 1], [], []>} : vector<16x16xf32>, vector<16x16xf32>, vector<16x16xf32> -> vector<16x16xf32>
    %78 = vector.broadcast %0 : f32 to vector<16x16xf32>
    %79 = arith.addf %77, %78 : vector<16x16xf32>
    %c0_38 = arith.constant 0 : index
    %c2_39 = arith.constant 2 : index
    %c0_40 = arith.constant 0 : index
    %c0_41 = arith.constant 0 : index
    %80 = vector.load %arg6[%c0_38, %c2_39, %c0_40, %c0_41] : memref<1x4x16x16xf32, #tpu.memory_space<vmem>>, vector<1x1x16x16xf32>
    %81 = vector.shape_cast %80 : vector<1x1x16x16xf32> to vector<16x16xf32>
    %82 = vector.shape_cast %79 : vector<16x16xf32> to vector<1x1x16x16xf32>
    tpu.vector_store %arg6[%c0_38, %c2_39, %c0_40, %c0_41], %82 {strides = array<i32>} : memref<1x4x16x16xf32, #tpu.memory_space<vmem>>, vector<1x1x16x16xf32>,
    %c11_i32 = arith.constant 11 : i32
    %83 = tpu.dynamic_rotate %2 by %c11_i32 dim 1 : vector<16x16x4xf32>, i32 -> vector<16x16x4xf32>
    %84 = arith.maximumf %55, %83 : vector<16x16x4xf32>
    %85 = vector.extract_strided_slice %84 {offsets = [1, 0, 0], sizes = [15, 16, 4], strides = [1, 1, 1]} : vector<16x16x4xf32> to vector<15x16x4xf32>
    %86 = vector.extract_strided_slice %84 {offsets = [0, 0, 0], sizes = [1, 16, 4], strides = [1, 1, 1]} : vector<16x16x4xf32> to vector<1x16x4xf32>
    %87 = tpu.concatenate %85, %86 in 0 : vector<15x16x4xf32>, vector<1x16x4xf32> -> vector<16x16x4xf32>
    %88 = arith.maximumf %84, %87 : vector<16x16x4xf32>
    %89 = vector.extract_strided_slice %88 {offsets = [2, 0, 0], sizes = [14, 16, 4], strides = [1, 1, 1]} : vector<16x16x4xf32> to vector<14x16x4xf32>
    %90 = vector.extract_strided_slice %88 {offsets = [0, 0, 0], sizes = [2, 16, 4], strides = [1, 1, 1]} : vector<16x16x4xf32> to vector<2x16x4xf32>
    %91 = tpu.concatenate %89, %90 in 0 : vector<14x16x4xf32>, vector<2x16x4xf32> -> vector<16x16x4xf32>
    %92 = arith.maximumf %88, %91 : vector<16x16x4xf32>
    %93 = vector.extract_strided_slice %92 {offsets = [2, 0, 0], sizes = [14, 16, 4], strides = [1, 1, 1]} : vector<16x16x4xf32> to vector<14x16x4xf32>
    %94 = vector.extract_strided_slice %92 {offsets = [0, 0, 0], sizes = [2, 16, 4], strides = [1, 1, 1]} : vector<16x16x4xf32> to vector<2x16x4xf32>
    %95 = tpu.concatenate %93, %94 in 0 : vector<14x16x4xf32>, vector<2x16x4xf32> -> vector<16x16x4xf32>
    %96 = arith.maximumf %92, %95 : vector<16x16x4xf32>
    %97 = vector.shape_cast %5 : vector<16x4xf32> to vector<1x16x4xf32>
    %98 = vector.broadcast %97 : vector<1x16x4xf32> to vector<16x16x4xf32>
    %99 = arith.mulf %96, %98 : vector<16x16x4xf32>
    %cst_42 = arith.constant dense<0.000000e+00> : vector<16x16xf32>
    %100 = vector.multi_reduction <add>, %99, %cst_42 [2] : vector<16x16x4xf32> to vector<16x16xf32>
    %c3 = arith.constant 3 : index
    %c0_43 = arith.constant 0 : index
    %c0_44 = arith.constant 0 : index
    %101 = vector.load %arg4[%c3, %c0_43, %c0_44] : memref<4x16x16xf32, #tpu.memory_space<vmem>>, vector<1x16x16xf32>
    %102 = vector.shape_cast %101 : vector<1x16x16xf32> to vector<16x16xf32>
    %cst_45 = arith.constant dense<0.000000e+00> : vector<16x16xf32>
    %103 = tpu.matmul %100, %102, %cst_45 {dimension_numbers = #tpu.dot_dimension_numbers<[1], [0], [0], [1], [0, 0, 1, 1], [], []>} : vector<16x16xf32>, vector<16x16xf32>, vector<16x16xf32> -> vector<16x16xf32>
    %c3_46 = arith.constant 3 : index
    %c0_47 = arith.constant 0 : index
    %c0_48 = arith.constant 0 : index
    %104 = vector.load %arg3[%c3_46, %c0_47, %c0_48] : memref<4x16x16xf32, #tpu.memory_space<vmem>>, vector<1x16x16xf32>
    %105 = vector.shape_cast %104 : vector<1x16x16xf32> to vector<16x16xf32>
    %cst_49 = arith.constant dense<0.000000e+00> : vector<16x16xf32>
    %106 = tpu.matmul %105, %103, %cst_49 {dimension_numbers = #tpu.dot_dimension_numbers<[1], [0], [0], [1], [0, 0, 1, 1], [], []>} : vector<16x16xf32>, vector<16x16xf32>, vector<16x16xf32> -> vector<16x16xf32>
    %107 = vector.broadcast %0 : f32 to vector<16x16xf32>
    %108 = arith.addf %106, %107 : vector<16x16xf32>
    %c0_50 = arith.constant 0 : index
    %c3_51 = arith.constant 3 : index
    %c0_52 = arith.constant 0 : index
    %c0_53 = arith.constant 0 : index
    %109 = vector.load %arg6[%c0_50, %c3_51, %c0_52, %c0_53] : memref<1x4x16x16xf32, #tpu.memory_space<vmem>>, vector<1x1x16x16xf32>
    %110 = vector.shape_cast %109 : vector<1x1x16x16xf32> to vector<16x16xf32>
    %111 = vector.shape_cast %108 : vector<16x16xf32> to vector<1x1x16x16xf32>
    tpu.vector_store %arg6[%c0_50, %c3_51, %c0_52, %c0_53], %111 {strides = array<i32>} : memref<1x4x16x16xf32, #tpu.memory_space<vmem>>, vector<1x1x16x16xf32>,
    return
  }
  func.func @transform_0(%arg0: i32) -> i32 {
    %c0_i32 = arith.constant 0 : i32
    %c0_i32_0 = arith.constant 0 : i32
    return %c0_i32 : i32
  }
  func.func @transform_1(%arg0: i32) -> (i32, i32) {
    %c0_i32 = arith.constant 0 : i32
    %c0_i32_0 = arith.constant 0 : i32
    %c0_i32_1 = arith.constant 0 : i32
    return %c0_i32, %c0_i32_0 : i32, i32
  }
  func.func @transform_2(%arg0: i32) -> (i32, i32, i32) {
    %c0_i32 = arith.constant 0 : i32
    %c0_i32_0 = arith.constant 0 : i32
    %c0_i32_1 = arith.constant 0 : i32
    %c0_i32_2 = arith.constant 0 : i32
    return %c0_i32, %c0_i32_0, %c0_i32_1 : i32, i32, i32
  }
  func.func @transform_3(%arg0: i32) -> (i32, i32, i32) {
    %c0_i32 = arith.constant 0 : i32
    %c0_i32_0 = arith.constant 0 : i32
    %c0_i32_1 = arith.constant 0 : i32
    %c0_i32_2 = arith.constant 0 : i32
    return %c0_i32, %c0_i32_0, %c0_i32_1 : i32, i32, i32
  }
  func.func @transform_4(%arg0: i32) -> (i32, i32, i32, i32) {
    %c0_i32 = arith.constant 0 : i32
    %c0_i32_0 = arith.constant 0 : i32
    %c0_i32_1 = arith.constant 0 : i32
    %c0_i32_2 = arith.constant 0 : i32
    return %arg0, %c0_i32, %c0_i32_0, %c0_i32_1 : i32, i32, i32, i32
  }
  func.func @transform_5(%arg0: i32) -> (i32, i32, i32, i32) {
    %c0_i32 = arith.constant 0 : i32
    %c0_i32_0 = arith.constant 0 : i32
    %c0_i32_1 = arith.constant 0 : i32
    %c0_i32_2 = arith.constant 0 : i32
    return %arg0, %c0_i32, %c0_i32_0, %c0_i32_1 : i32, i32, i32, i32
  }
}

</mosaic_0001>

<bundles_post_ra>
// kernel: tpu_custom_call.1
= control target key start
LH: loop header
LB: loop body
LE: loop exit
PB: predicated region body
PF: predicated region fallthrough
CT: control target
= control target key end

     0   :  { %s6163_s0 = inlined_call_operand.<no memory space> [shape: f32[1], index: 0, kind: input, shape index: {}]   ;;  %s6164_s1 = inlined_call_operand.vmem [shape: f32[1,4], index: 1, kind: input, shape index: {}]   ;;  %s6165_s2 = inlined_call_operand.vmem [shape: f32[4,16,16], index: 2, kind: input, shape index: {}]   ;;  %s6166_s3 = inlined_call_operand.vmem [shape: f32[4,16,16], index: 3, kind: input, shape index: {}]   ;;  %s6167_s4 = inlined_call_operand.vmem [shape: f32[2,16,16,4], index: 4, kind: input, shape index: {}]   ;;  %s6168_s5 = inlined_call_operand.hbm [shape: f32[2,4,16,16], index: 5, kind: output, shape index: {}]  }
   0x1   :  { %10 = sst [smem:[#allocation2]] %s6163_s0 }
   0x2   :  { %11 = vsyncpa [#allocation4], 0 }
   0x3   :  { %13 = vsyncpa [#allocation4 + $0x1], 0  ;;  %s3418_s20 = smov 0   ;;  %s3420_s21 = smov 0  }
   0x4   :  { %s3422_s22 = smov 0   ;;  %s3424_s23 = smov 0  }
   0x5 LB: > { %s3439_s0 = sadd.s32 4294967295, %s3380_s23   ;;  %s3074_s24 = sadd.s32 4294967294, %s3380_s23   ;;  %s3380_s23 = sphi %s3424_s23, %s6605_s23   ;;  %s3376_s22 = sphi %s3422_s22, %s6604_s22   ;;  %s3372_s21 = sphi %s3420_s21, %s6603_s21   ;;  %s3368_s20 = sphi %s3418_s20, %s6602_s20  }
   0x6   : > { %s3443_s25 = sadd.s32 1, %s3380_s23   ;;  %s136_s26 = sadd.s32 1, %s3376_s22 }
   0x7   : > { %s133_s27 = ssub.s32 %s3380_s23, %s3443_s25  ;;  %p146_p0 = scmp.ne.s32.totalorder %s3376_s22, %s3372_s21 }
   0x8   : > { %p134_p1 = scmp.eq.s32.totalorder %s133_s27, 0  ;;  %p147_p2 = scmp.eq.s32.totalorder %s3439_s0, 1 }
   0x9   : > { %p152_p3 = scmp.ne.s32.totalorder %s3372_s21, %s3368_s20  ;;  %p153_p4 = scmp.eq.s32.totalorder %s3074_s24, 1 }
   0xa   : > { %s3454_s28 = scalar_select %p134_p1, %s3376_s22, %s136_s26  }
   0xb   : > { %p3456_p5 = por %p147_p2, %p146_p0  ;;  %p3460_p6 = por %p153_p4, %p152_p3 }
   0xc   : > { %p3077_p7 = scmp.ge.s32.totalorder %s3380_s23, 1  ;;  %p191_p8 = scmp.lt.s32.totalorder %s3380_s23, 3 }
   0xe   : > { %p192_p9 = pnand %p3077_p7, %p191_p8 }
  0x10   : > { %195 = sbr.rel (%p192_p9) target bundleno = 933 (0x3a5), region = 40 }
  0x17   : > { %p219_p10 = scmp.lt.s32.totalorder %s3439_s0, 1  ;;  %v6169_v0 = vlaneseq  ;;  %vm427_vm1 = vcmask 31744   ;;  %v3546_v31 = vld [vmem:[%s6164_s1] ss:$0 sm:$0xff]  ;;  %vm569_vm5 = vcmask 130112   ;;  %vm706_vm6 = vcmask 1041409  }
  0x18   : > { %vm708_vm8 = vcmask 1042434   ;;  %vm710_vm9 = vcmask 1043459   ;;  %vm712_vm10 = vcmask 1044484   ;;  %vm714_vm11 = vcmask 1045509   ;;  %s224_s15 = sld [smem:[#allocation2]]  ;;  %s216_s16 = sand.u32 1, %s3372_s21  }
  0x19   : > { %s220_s6 = scalar_select %p219_p10, %s3439_s0, 1  ;;  %v3469_v1 = vshrl.u32 %v6169_v0, 7  ;;  %vm716_vm12 = vcmask 1046534   ;;  %vm718_vm13 = vcmask 1047559   ;;  %vm727_vm14 = vcmask 130048  }
  0x1a   : > { %s3078_s17 = sshll.u32 %s216_s16, 6  ;;  %s3122_s19 = sshll.u32 %s3439_s0, 10 }
  0x1b   : > { %s3121_s7 = sshll.u32 %s220_s6, 8  ;;  %vm292_vm0 = vcmp.lt.s32.totalorder %v3469_v1, 7  ;;  %vm925_vm2 = vcmp.lt.s32.totalorder %v3469_v1, 6  ;;  %vm1573_vm3 = vcmp.lt.s32.totalorder %v3469_v1, 5  ;;  %vm1670_vm4 = vcmp.lt.s32.totalorder %v3469_v1, 4  ;;  %s218_s18 = scalar_lea.vmem [#allocation3], %s3078_s17 }
  0x1c   : > { %s3474_s10 = scalar_lea.vmem %s6167_s4, %s3121_s7  ;;  %vm2350_vm7 = vcmp.lt.s32.totalorder %v3469_v1, 3  ;;  %s3012_s24 = sshll.u32 %s218_s18, 4  ;;  %s6116_s24 = int_to_ptr.vmem [resolvable:$true] %s3012_s24 }
  0x1d   : > { %v3477_v2 = vld [vmem:[%s3474_s10 + $0x10] sm:$0xff]  ;;  %v3480_v3 = vld [vmem:[%s3474_s10 + $0x18] sm:$0xff]  ;;  %v3483_v4 = vld [vmem:[%s3474_s10 + $0x20] sm:$0xff]  ;;  %s6114_s6 = scalar_lea.hbm %s6168_s5, %s3122_s19  ;;  %s6122_s0 = scalar_lea.sflag [#allocation4], %s216_s16 }
  0x1e   : > { %6312 = vst [vmem:[#allocation6_spill] sm:$0xff] %v3477_v2  ;;  %6313 = vst [vmem:[#allocation7_spill] sm:$0xff] %v3480_v3  ;;  %v3487_v5 = vld [vmem:[%s3474_s10 + $0x28] sm:$0xff]  ;;  %v259_v6 = vrot.slane %v3477_v2, 1  ;;  %v260_v7 = vrot.slane %v3483_v4, 1  ;;  %v275_v8 = vrot.slane %v3480_v3, 1 }
  0x1f   : > { %6314 = vst [vmem:[#allocation8_spill] sm:$0xff] %v3483_v4  ;;  %6315 = vst [vmem:[#allocation9_spill] sm:$0xff] %v3487_v5  ;;  %v3493_v9 = vld [vmem:[%s3474_s10] sm:$0xff]  ;;  %v3496_v10 = vld [vmem:[%s3474_s10 + $0x8] sm:$0xff]  ;;  %v276_v11 = vrot.slane %v3487_v5, 1  ;;  %s3318_s7 = scalar_lea.vmem %s6116_s24, 1024 }
  0x20   : > { %6316 = vst [vmem:[#allocation10_spill] sm:$0xff] %v3493_v9  ;;  %6317 = vst [vmem:[#allocation11_spill] sm:$0xff] %v3496_v10  ;;  %v258_v12 = vrot.slane %v3493_v9, 1  ;;  %v274_v13 = vrot.slane %v3496_v10, 1  ;;  %v3502_v14 = vld [vmem:[%s3474_s10 + $0x30] sm:$0xff]  ;;  %v3505_v15 = vld [vmem:[%s3474_s10 + $0x38] sm:$0xff]  ;;  %v294_v16 = vsel %vm292_vm0, %v259_v6, %v275_v8  ;;  %v310_v17 = vsel %vm292_vm0, %v275_v8, %v259_v6  ;;  %p3319_p11 = scmp.ne.s32.totalorder %s6116_s24, %s3318_s7 }
  0x21   : > { %6318 = vst [vmem:[#allocation12_spill] sm:$0xff] %v3505_v15  ;;  %v261_v18 = vrot.slane %v3502_v14, 1  ;;  %v277_v19 = vrot.slane %v3505_v15, 1  ;;  %v3514_v20 = vld [vmem:[%s3474_s10 + $0x80] sm:$0xff]  ;;  %v295_v21 = vsel %vm292_vm0, %v260_v7, %v276_v11  ;;  %v3519_v22 = vmax.f32 %v3477_v2, %v294_v16  ;;  %v3538_v29 = vld [vmem:[%s3474_s10 + $0x88] sm:$0xff]  ;;  %v3541_v30 = vld [vmem:[%s3474_s10 + $0x90] sm:$0xff] }
  0x22   : > { %v293_v23 = vsel %vm292_vm0, %v258_v12, %v274_v13  ;;  %v311_v24 = vsel %vm292_vm0, %v276_v11, %v260_v7  ;;  %v3526_v25 = vmax.f32 %v3483_v4, %v295_v21  ;;  %v3532_v27 = vmax.f32 %v3480_v3, %v310_v17  ;;  %v3565_v40 = vld [vmem:[%s3474_s10 + $0x98] sm:$0xff]  ;;  %v3581_v49 = vld [vmem:[%s3474_s10 + $0xa0] sm:$0xff]  ;;  %v3599_v61 = vld [vmem:[%s3474_s10 + $0xa8] sm:$0xff]  ;;  %p3320_p12 = pnand %p3319_p11, %p3456_p5  ;;  %s3382_s8 = smov [#allocation3]  }
  0x23   : > { %v3529_v26 = vmax.f32 %v3493_v9, %v293_v23  ;;  %v3535_v28 = vmax.f32 %v3487_v5, %v311_v24  ;;  %v309_v32 = vsel %vm292_vm0, %v274_v13, %v258_v12  ;;  %v312_v33 = vsel %vm292_vm0, %v277_v19, %v261_v18  ;;  %v3603_v63 = vld [vmem:[%s3474_s10 + $0x40] sm:$0xff]  ;;  %v3606_v6 = vld [vmem:[%s3474_s10 + $0x48] sm:$0xff]  ;;  %v3618_v13 = vld [vmem:[%s3474_s10 + $0xb0] sm:$0xff]  ;;  %s3322_s9 = sshll.u32 %s3382_s8, 4  ;;  %s3323_s9 = int_to_ptr.vmem [resolvable:$false] %s3322_s9 }
  0x24   : > { %v296_v34 = vsel %vm292_vm0, %v261_v18, %v277_v19  ;;  %v266_v35 = vrot.slane %v3514_v20, 1  ;;  %v359_v36 = vmax.f32 %v3519_v22, %v3526_v25  ;;  %v3562_v39 = vmax.f32 %v3496_v10, %v309_v32  ;;  %6319 = vst [vmem:[#allocation13_spill] sm:$0xff] %v3606_v6  ;;  %v3621_v16 = vld [vmem:[%s3474_s10 + $0xb8] sm:$0xff]  ;;  %v3624_v17 = vld [vmem:[%s3474_s10 + $0x50] sm:$0xff]  ;;  %p3321_p13 = pneg %p3320_p12  ;;  %p3325_p0 = scmp.lt.s32.totalorder %s6116_s24, %s3323_s9 }
  0x25   : > { %v357_v37 = vmax.f32 %v3529_v26, %v3519_v22  ;;  %v360_v38 = vmax.f32 %v3532_v27, %v3535_v28  ;;  %v3568_v41 = vmax.f32 %v3505_v15, %v312_v33  ;;  %v3571_v42 = vmax.f32 %v3502_v14, %v296_v34  ;;  %6320 = vst [vmem:[#allocation14_spill] sm:$0xff] %v3621_v16  ;;  %v3745_v0 = vld [vmem:[%s3474_s10 + $0xd8] sm:$0xff] }
  0x26   : > { %v267_v43 = vrot.slane %v3541_v30, 1  ;;  %v282_v44 = vrot.slane %v3538_v29, 1  ;;  %v397_v45 = vmul.f32 %v3546_v31, %v359_v36  ;;  %v358_v48 = vmax.f32 %v3562_v39, %v3532_v27  ;;  %6321 = vst [vmem:[#allocation15_spill] sm:$0xff] %v3624_v17 }
  0x27   : > { %v395_v46 = vmul.f32 %v3546_v31, %v357_v37  ;;  %v398_v47 = vmul.f32 %v3546_v31, %v360_v38  ;;  %v362_v50 = vmax.f32 %v3535_v28, %v3568_v41  ;;  %v361_v51 = vmax.f32 %v3526_v25, %v3571_v42 }
  0x28   : > { %v283_v52 = vrot.slane %v3565_v40, 1  ;;  %v317_v53 = vsel %vm292_vm0, %v282_v44, %v266_v35  ;;  %v434_v54 = vsel %vm427_vm1, %v397_v45, 0.0  ;;  %v396_v57 = vmul.f32 %v3546_v31, %v358_v48 }
  0x29   : > { %v428_v55 = vsel %vm427_vm1, %v395_v46, 0.0  ;;  %v437_v56 = vsel %vm427_vm1, %v398_v47, 0.0  ;;  %435 = vadd.xlane.f32.xlu1 %v434_v54  ;;  %v400_v58 = vmul.f32 %v3546_v31, %v362_v50  ;;  %v399_v59 = vmul.f32 %v3546_v31, %v361_v51  ;;  %v3652_v47 = vld [vmem:[%s3474_s10 + $0x58] sm:$0xff] }
  0x2a   : > { %429 = vadd.xlane.f32.xlu0 %v428_v55  ;;  %v318_v60 = vsel %vm292_vm0, %v283_v52, %v267_v43  ;;  %v268_v62 = vrot.slane %v3581_v49, 1  ;;  %v431_v7 = vsel %vm427_vm1, %v396_v57, 0.0  ;;  %v3610_v8 = vmax.f32 %v3538_v29, %v317_v53  ;;  %6322 = vst [vmem:[#allocation16_spill] sm:$0xff] %v3652_v47 }
  0x2b   : > { %v3613_v11 = vmax.f32 %v3565_v40, %v318_v60  ;;  %v301_v12 = vsel %vm292_vm0, %v266_v35, %v282_v44  ;;  %v443_v18 = vsel %vm427_vm1, %v400_v58, 0.0  ;;  %v440_v19 = vsel %vm427_vm1, %v399_v59, 0.0 }
  0x2c   : > { %v302_v21 = vsel %vm292_vm0, %v267_v43, %v283_v52  ;;  %v3631_v23 = vmax.f32 %v3514_v20, %v301_v12  ;;  %v284_v33 = vrot.slane %v3599_v61, 1  ;;  %v262_v34 = vrot.slane %v3603_v63, 1 }
  0x2d   : > { %v374_v24 = vmax.f32 %v3610_v8, %v3613_v11  ;;  %v3636_v32 = vmax.f32 %v3541_v30, %v302_v21  ;;  %438 = vadd.xlane.f32.xlu1 %v437_v56  ;;  %v278_v35 = vrot.slane %v3606_v6, 1  ;;  %v269_v36 = vrot.slane %v3618_v13, 1 }
  0x2e   : > { %432 = vadd.xlane.f32.xlu0 %v431_v7  ;;  %v285_v37 = vrot.slane %v3621_v16, 1  ;;  %v263_v38 = vrot.slane %v3624_v17, 1  ;;  %v319_v45 = vsel %vm292_vm0, %v284_v33, %v268_v62  ;;  %v303_v46 = vsel %vm292_vm0, %v268_v62, %v284_v33 }
  0x2f   : > { %v412_v43 = vmul.f32 %v3546_v31, %v374_v24  ;;  %v373_v44 = vmax.f32 %v3631_v23, %v3636_v32  ;;  %v3655_v48 = vmax.f32 %v3599_v61, %v319_v45  ;;  %v3658_v50 = vmax.f32 %v3581_v49, %v303_v46  ;;  %v3701_v45 = vld [vmem:[%s3474_s10 + $0xc0] sm:$0xff]  ;;  %v3704_v46 = vld [vmem:[%s3474_s10 + $0xc8] sm:$0xff] }
  0x30   : > { %v313_v51 = vsel %vm292_vm0, %v278_v35, %v262_v34  ;;  %v297_v52 = vsel %vm292_vm0, %v262_v34, %v278_v35  ;;  %v320_v59 = vsel %vm292_vm0, %v285_v37, %v269_v36  ;;  %v279_v60 = vrot.slane %v3652_v47, 1  ;;  %6324 = vst [vmem:[#allocation18_spill] sm:$0xff] %v3701_v45  ;;  %6325 = vst [vmem:[#allocation19_spill] sm:$0xff] %v3704_v46 }
  0x31   : > { %6323 = vst [vmem:[#allocation17_spill] sm:$0xff] %v3658_v50  ;;  %v479_v53 = vsel %vm427_vm1, %v412_v43, 0.0  ;;  %v411_v54 = vmul.f32 %v3546_v31, %v373_v44  ;;  %v3667_v55 = vmax.f32 %v3606_v6, %v313_v51  ;;  %v3670_v56 = vmax.f32 %v3603_v63, %v297_v52  ;;  %444 = vadd.xlane.f32.xlu1 %v443_v18 }
  0x32   : > { %441 = vadd.xlane.f32.xlu0 %v440_v19  ;;  %v376_v57 = vmax.f32 %v3613_v11, %v3655_v48  ;;  %v375_v58 = vmax.f32 %v3636_v32, %v3658_v50  ;;  %v3685_v18 = vmax.f32 %v3621_v16, %v320_v59  ;;  %v304_v24 = vsel %vm292_vm0, %v269_v36, %v285_v37 }
  0x33   : > { %v476_v62 = vsel %vm427_vm1, %v411_v54, 0.0  ;;  %v364_v7 = vmax.f32 %v3568_v41, %v3667_v55  ;;  %v363_v12 = vmax.f32 %v3571_v42, %v3670_v56  ;;  %v314_v33 = vsel %vm292_vm0, %v279_v60, %v263_v38  ;;  %v3714_v54 = vld [vmem:[%s3474_s10 + $0x60] sm:$0xff] }
  0x34   : > { %v414_v19 = vmul.f32 %v3546_v31, %v376_v57  ;;  %v413_v21 = vmul.f32 %v3546_v31, %v375_v58  ;;  %v378_v43 = vmax.f32 %v3655_v48, %v3685_v18  ;;  %v3698_v44 = vmax.f32 %v3618_v13, %v304_v24  ;;  %6327 = vst [vmem:[#allocation21_spill] sm:$0xff] %v3714_v54  ;;  %v3717_v57 = vld [vmem:[%s3474_s10 + $0x68] sm:$0xff] }
  0x35   : > { %v402_v34 = vmul.f32 %v3546_v31, %v364_v7  ;;  %v401_v35 = vmul.f32 %v3546_v31, %v363_v12  ;;  %480 = vadd.xlane.f32.xlu1 %v479_v53  ;;  %v3709_v51 = vmax.f32 %v3652_v47, %v314_v33  ;;  %v298_v52 = vsel %vm292_vm0, %v263_v38, %v279_v60  ;;  %v3725_v7 = vld [vmem:[%s3474_s10 + $0xd0] sm:$0xff] }
  0x36   : > { %477 = vadd.xlane.f32.xlu0 %v476_v62  ;;  %v485_v36 = vsel %vm427_vm1, %v414_v19, 0.0  ;;  %v482_v37 = vsel %vm427_vm1, %v413_v21, 0.0  ;;  %6328 = vst [vmem:[#allocation22_spill] sm:$0xff] %v3717_v57  ;;  %v416_v53 = vmul.f32 %v3546_v31, %v378_v43  ;;  %v377_v62 = vmax.f32 %v3658_v50, %v3698_v44 }
  0x37   : > { %6326 = vst [vmem:[#allocation20_spill] sm:$0xff] %v3709_v51  ;;  %v449_v58 = vsel %vm427_vm1, %v402_v34, 0.0  ;;  %v446_v59 = vsel %vm427_vm1, %v401_v35, 0.0  ;;  %v366_v12 = vmax.f32 %v3667_v55, %v3709_v51  ;;  %v3730_v38 = vmax.f32 %v3624_v17, %v298_v52 }
  0x38   : > { %v270_v60 = vrot.slane %v3701_v45, 1  ;;  %v286_v19 = vrot.slane %v3704_v46, 1  ;;  %v491_v21 = vsel %vm427_vm1, %v416_v53, 0.0  ;;  %v415_v24 = vmul.f32 %v3546_v31, %v377_v62 }
  0x39   : > { %v264_v33 = vrot.slane %v3714_v54, 1  ;;  %v280_v34 = vrot.slane %v3717_v57, 1  ;;  %486 = vadd.xlane.f32.xlu1 %v485_v36  ;;  %v404_v35 = vmul.f32 %v3546_v31, %v366_v12  ;;  %v365_v43 = vmax.f32 %v3670_v56, %v3730_v38 }
  0x3a   : > { %483 = vadd.xlane.f32.xlu0 %v482_v37  ;;  %v321_v52 = vsel %vm292_vm0, %v286_v19, %v270_v60  ;;  %v271_v53 = vrot.slane %v3725_v7, 1  ;;  %v488_v62 = vsel %vm427_vm1, %v415_v24, 0.0  ;;  %v305_v36 = vsel %vm292_vm0, %v270_v60, %v286_v19 }
  0x3b   : > { %v3750_v47 = vmax.f32 %v3704_v46, %v321_v52  ;;  %v315_v37 = vsel %vm292_vm0, %v280_v34, %v264_v33  ;;  %v455_v12 = vsel %vm427_vm1, %v404_v35, 0.0  ;;  %v403_v17 = vmul.f32 %v3546_v31, %v365_v43 }
  0x3c   : > { %v3759_v16 = vmax.f32 %v3701_v45, %v305_v36  ;;  %v3762_v50 = vmax.f32 %v3717_v57, %v315_v37  ;;  %v299_v52 = vsel %vm292_vm0, %v264_v33, %v280_v34  ;;  %v287_v60 = vrot.slane %v3745_v0, 1 }
  0x3d   : > { %v380_v24 = vmax.f32 %v3685_v18, %v3750_v47  ;;  %v893_v19 = vrot.slane %v3493_v9, 2  ;;  %450 = vadd.xlane.f32.xlu1 %v449_v58  ;;  %v452_v35 = vsel %vm427_vm1, %v403_v17, 0.0  ;;  %v3776_v37 = vmax.f32 %v3714_v54, %v299_v52 }
  0x3e   : > { %447 = vadd.xlane.f32.xlu0 %v446_v59  ;;  %v379_v43 = vmax.f32 %v3698_v44, %v3759_v16  ;;  %v368_v36 = vmax.f32 %v3709_v51, %v3762_v50  ;;  %v322_v33 = vsel %vm292_vm0, %v287_v60, %v271_v53  ;;  %v306_v58 = vsel %vm292_vm0, %v271_v53, %v287_v60 }
  0x3f   : > { %v418_v57 = vmul.f32 %v3546_v31, %v380_v24  ;;  %v894_v59 = vrot.slane %v3477_v2, 2  ;;  %v367_v9 = vmax.f32 %v3730_v38, %v3776_v37  ;;  %v3789_v52 = vmax.f32 %v3745_v0, %v322_v33  ;;  %v3835_v2 = vld [vmem:[%s3474_s10 + $0x78] sm:$0xff] }
  0x40   : > { %v417_v17 = vmul.f32 %v3546_v31, %v379_v43  ;;  %v406_v34 = vmul.f32 %v3546_v31, %v368_v36  ;;  %v3793_v51 = vmax.f32 %v3725_v7, %v306_v58  ;;  %v895_v54 = vrot.slane %v3483_v4, 2 }
  0x41   : > { %v497_v24 = vsel %vm427_vm1, %v418_v57, 0.0  ;;  %v909_v53 = vrot.slane %v3496_v10, 2  ;;  %492 = vadd.xlane.f32.xlu1 %v491_v21  ;;  %v405_v36 = vmul.f32 %v3546_v31, %v367_v9  ;;  %v382_v33 = vmax.f32 %v3750_v47, %v3789_v52 }
  0x42   : > { %489 = vadd.xlane.f32.xlu0 %v488_v62  ;;  %v494_v60 = vsel %vm427_vm1, %v417_v17, 0.0  ;;  %v461_v43 = vsel %vm427_vm1, %v406_v34, 0.0  ;;  %v381_v57 = vmax.f32 %v3759_v16, %v3793_v51  ;;  %v910_v58 = vrot.slane %v3480_v3, 2 }
  0x43   : > { %v911_v4 = vrot.slane %v3487_v5, 2  ;;  %v942_v21 = vsel %vm925_vm2, %v909_v53, %v893_v19  ;;  %v458_v62 = vsel %vm427_vm1, %v405_v36, 0.0  ;;  %v420_v17 = vmul.f32 %v3546_v31, %v382_v33 }
  0x44   : > { %v3811_v9 = vmax.f32 %v3562_v39, %v942_v21  ;;  %v926_v34 = vsel %vm925_vm2, %v893_v19, %v909_v53  ;;  %v419_v10 = vmul.f32 %v3546_v31, %v381_v57  ;;  %v943_v5 = vsel %vm925_vm2, %v910_v58, %v894_v59  ;;  %v3832_v57 = vld [vmem:[%s3474_s10 + $0x70] sm:$0xff] }
  0x45   : > { %v944_v3 = vsel %vm925_vm2, %v911_v4, %v895_v54  ;;  %v927_v36 = vsel %vm925_vm2, %v894_v59, %v910_v58  ;;  %456 = vadd.xlane.f32.xlu1 %v455_v12  ;;  %v503_v33 = vsel %vm427_vm1, %v420_v17, 0.0  ;;  %v3824_v21 = vmax.f32 %v3532_v27, %v943_v5  ;;  %v3867_v17 = vld [vmem:[%s3474_s10 + $0xe8] sm:$0xff] }
  0x46   : > { %6329 = vst [vmem:[#allocation23_spill] sm:$0xff] %v3811_v9  ;;  %453 = vadd.xlane.f32.xlu0 %v452_v35  ;;  %v3827_v19 = vmax.f32 %v3535_v28, %v944_v3  ;;  %v928_v53 = vsel %vm925_vm2, %v895_v54, %v911_v4  ;;  %v500_v59 = vsel %vm427_vm1, %v419_v10, 0.0  ;;  %v3839_v12 = vmax.f32 %v3529_v26, %v926_v34  ;;  %v3848_v3 = vld [vmem:[%s3474_s10 + $0xe0] sm:$0xff] }
  0x47   : > { %6330 = vst [vmem:[#allocation24_spill] sm:$0xff] %v3824_v21  ;;  %v3842_v35 = vmax.f32 %v3519_v22, %v927_v36  ;;  %v3845_v5 = vmax.f32 %v3526_v25, %v928_v53  ;;  %v3852_v4 = vmax.f32 %v3811_v9, %v3824_v21  ;;  %v896_v10 = vrot.slane %v3502_v14, 2 }
  0x48   : > { %6331 = vst [vmem:[#allocation25_spill] sm:$0xff] %v3827_v19  ;;  %6332 = vst [vmem:[#allocation26_spill] sm:$0xff] %v3839_v12  ;;  %v993_v27 = vmax.f32 %v3824_v21, %v3827_v19  ;;  %v912_v28 = vrot.slane %v3505_v15, 2  ;;  %v265_v54 = vrot.slane %v3832_v57, 1  ;;  %v281_v58 = vrot.slane %v3835_v2, 1 }
  0x49   : > { %6333 = vst [vmem:[#allocation27_spill] sm:$0xff] %v3842_v35  ;;  %6334 = vst [vmem:[#allocation28_spill] sm:$0xff] %v3845_v5  ;;  %v3860_v22 = vmax.f32 %v3839_v12, %v3842_v35  ;;  %v992_v25 = vmax.f32 %v3842_v35, %v3845_v5  ;;  %498 = vadd.xlane.f32.xlu1 %v497_v24  ;;  %v272_v12 = vrot.slane %v3848_v3, 1 }
  0x4a   : > { %6335 = vst [vmem:[#allocation29_spill] sm:$0xff] %v3852_v4  ;;  %495 = vadd.xlane.f32.xlu0 %v494_v60  ;;  %v1023_v34 = vmax.f32 %v3852_v4, %v993_v27  ;;  %v945_v36 = vsel %vm925_vm2, %v912_v28, %v896_v10  ;;  %v929_v53 = vsel %vm925_vm2, %v896_v10, %v912_v28  ;;  %v288_v28 = vrot.slane %v3867_v17, 1 }
  0x4b   : > { %6336 = vst [vmem:[#allocation30_spill] sm:$0xff] %v3860_v22  ;;  %v1022_v35 = vmax.f32 %v3860_v22, %v992_v25  ;;  %v3877_v21 = vmax.f32 %v3568_v41, %v945_v36  ;;  %v3880_v9 = vmax.f32 %v3571_v42, %v929_v53  ;;  %v316_v24 = vsel %vm292_vm0, %v281_v58, %v265_v54 }
  0x4c   : > { %v1055_v60 = vmul.f32 %v3546_v31, %v1023_v34  ;;  %v3886_v4 = vmax.f32 %v3835_v2, %v316_v24  ;;  %v300_v10 = vsel %vm292_vm0, %v265_v54, %v281_v58  ;;  %v307_v58 = vsel %vm292_vm0, %v272_v12, %v288_v28 }
  0x4d   : > { %v1054_v22 = vmul.f32 %v3546_v31, %v1022_v35  ;;  %v995_v41 = vmax.f32 %v3827_v19, %v3877_v21  ;;  %v3896_v42 = vmax.f32 %v3845_v5, %v3880_v9  ;;  %v3899_v36 = vmax.f32 %v3832_v57, %v300_v10  ;;  %462 = vadd.xlane.f32.xlu1 %v461_v43 }
  0x4e   : > { %459 = vadd.xlane.f32.xlu0 %v458_v62  ;;  %v1089_v34 = vsel %vm427_vm1, %v1055_v60, 0.0  ;;  %v370_v54 = vmax.f32 %v3762_v50, %v3886_v4  ;;  %v323_v35 = vsel %vm292_vm0, %v288_v28, %v272_v12  ;;  %v3917_v10 = vmax.f32 %v3848_v3, %v307_v58 }
  0x4f   : > { %v1086_v53 = vsel %vm427_vm1, %v1054_v22, 0.0  ;;  %v1025_v24 = vmax.f32 %v993_v27, %v995_v41  ;;  %v1024_v5 = vmax.f32 %v992_v25, %v3896_v42  ;;  %v369_v43 = vmax.f32 %v3776_v37, %v3899_v36 }
  0x50   : > { %v408_v62 = vmul.f32 %v3546_v31, %v370_v54  ;;  %v3914_v60 = vmax.f32 %v3867_v17, %v323_v35  ;;  %v897_v19 = vrot.slane %v3603_v63, 2  ;;  %v913_v25 = vrot.slane %v3606_v6, 2 }
  0x51   : > { %v1057_v12 = vmul.f32 %v3546_v31, %v1025_v24  ;;  %v1056_v22 = vmul.f32 %v3546_v31, %v1024_v5  ;;  %v407_v27 = vmul.f32 %v3546_v31, %v369_v43  ;;  %504 = vadd.xlane.f32.xlu1 %v503_v33  ;;  %v383_v35 = vmax.f32 %v3793_v51, %v3917_v10 }
  0x52   : > { %501 = vadd.xlane.f32.xlu0 %v500_v59  ;;  %v467_v28 = vsel %vm427_vm1, %v408_v62, 0.0  ;;  %v384_v54 = vmax.f32 %v3789_v52, %v3914_v60  ;;  %v901_v58 = vrot.slane %v3514_v20, 2  ;;  %v946_v33 = vsel %vm925_vm2, %v913_v25, %v897_v19 }
  0x53   : > { %v1095_v24 = vsel %vm427_vm1, %v1057_v12, 0.0  ;;  %v1092_v5 = vsel %vm427_vm1, %v1056_v22, 0.0  ;;  %v464_v43 = vsel %vm427_vm1, %v407_v27, 0.0  ;;  %v421_v62 = vmul.f32 %v3546_v31, %v383_v35 }
  0x54   : > { %v422_v59 = vmul.f32 %v3546_v31, %v384_v54  ;;  %v3938_v6 = vmax.f32 %v3667_v55, %v946_v33  ;;  %v930_v15 = vsel %vm925_vm2, %v897_v19, %v913_v25  ;;  %v902_v12 = vrot.slane %v3541_v30, 2 }
  0x55   : > { %v3943_v20 = vmax.f32 %v3670_v56, %v930_v15  ;;  %v903_v22 = vrot.slane %v3581_v49, 2  ;;  %v917_v27 = vrot.slane %v3538_v29, 2  ;;  %1090 = vadd.xlane.f32.xlu1 %v1089_v34  ;;  %v506_v35 = vsel %vm427_vm1, %v421_v62, 0.0 }
  0x56   : > { %1087 = vadd.xlane.f32.xlu0 %v1086_v53  ;;  %v509_v54 = vsel %vm427_vm1, %v422_v59, 0.0  ;;  %v3952_v55 = vmax.f32 %v3877_v21, %v3938_v6  ;;  %v918_v19 = vrot.slane %v3565_v40, 2  ;;  %v919_v30 = vrot.slane %v3599_v61, 2 }
  0x57   : > { %v3957_v15 = vmax.f32 %v3880_v9, %v3943_v20  ;;  %v950_v29 = vsel %vm925_vm2, %v917_v27, %v901_v58  ;;  %v934_v49 = vsel %vm925_vm2, %v901_v58, %v917_v27 }
  0x58   : > { %v1027_v56 = vmax.f32 %v995_v41, %v3952_v55  ;;  %v951_v34 = vsel %vm925_vm2, %v918_v19, %v902_v12  ;;  %v3968_v53 = vmax.f32 %v3610_v8, %v950_v29  ;;  %v935_v40 = vsel %vm925_vm2, %v902_v12, %v918_v19 }
  0x59   : > { %v1026_v61 = vmax.f32 %v3896_v42, %v3957_v15  ;;  %v952_v25 = vsel %vm925_vm2, %v919_v30, %v903_v22  ;;  %v3977_v58 = vmax.f32 %v3613_v11, %v951_v34  ;;  %v936_v41 = vsel %vm925_vm2, %v903_v22, %v919_v30  ;;  %1096 = vadd.xlane.f32.xlu1 %v1095_v24 }
  0x5a   : > { %1093 = vadd.xlane.f32.xlu0 %v1092_v5  ;;  %v1059_v33 = vmul.f32 %v3546_v31, %v1027_v56  ;;  %v3983_v59 = vmax.f32 %v3655_v48, %v952_v25  ;;  %v3986_v62 = vmax.f32 %v3631_v23, %v934_v49  ;;  %v904_v42 = vrot.slane %v3618_v13, 2  ;;  %v6341_v5 = vld [vmem:[#allocation17_spill] sm:$0xff]  ;;  %v4001_v48 = vld [vmem:[%s3474_s10 + $0xf0] sm:$0xff]  ;;  %v6343_v13 = vld [vmem:[#allocation14_spill] sm:$0xff] }
  0x5b   : > { %6337 = vst [vmem:[#allocation31_spill] sm:$0xff] %v3977_v58  ;;  %v1058_v12 = vmul.f32 %v3546_v31, %v1026_v61  ;;  %v3992_v11 = vmax.f32 %v3968_v53, %v3977_v58  ;;  %v3995_v24 = vmax.f32 %v3636_v32, %v935_v40  ;;  %v3998_v22 = vmax.f32 %v6341_v5, %v936_v41  ;;  %v4019_v40 = vld [vmem:[%s3474_s10 + $0xf8] sm:$0xff] }
  0x5c   : > { %6338 = vst [vmem:[#allocation32_spill] sm:$0xff] %v3983_v59  ;;  %v1101_v27 = vsel %vm427_vm1, %v1059_v33, 0.0  ;;  %v1009_v19 = vmax.f32 %v3977_v58, %v3983_v59  ;;  %v920_v30 = vrot.slane %v6343_v13, 2  ;;  %v372_v29 = vmax.f32 %v3886_v4, %v3610_v8 }
  0x5d   : > { %6339 = vst [vmem:[#allocation33_spill] sm:$0xff] %v3992_v11  ;;  %6340 = vst [vmem:[#allocation34_spill] sm:$0xff] %v3995_v24  ;;  %v1098_v49 = vsel %vm427_vm1, %v1058_v12, 0.0  ;;  %v4012_v32 = vmax.f32 %v3986_v62, %v3995_v24  ;;  %v1008_v56 = vmax.f32 %v3995_v24, %v3998_v22  ;;  %v371_v34 = vmax.f32 %v3899_v36, %v3631_v23 }
  0x5e   : > { %6342 = vst [vmem:[#allocation17_spill] sm:$0xff] %v3998_v22  ;;  %468 = vadd.xlane.f32.xlu1 %v467_v28  ;;  %465 = vadd.xlane.f32.xlu0 %v464_v43  ;;  %v1039_v61 = vmax.f32 %v3992_v11, %v1009_v19  ;;  %v953_v8 = vsel %vm925_vm2, %v920_v30, %v904_v42  ;;  %v273_v41 = vrot.slane %v4001_v48, 1  ;;  %v289_v13 = vrot.slane %v4019_v40, 1  ;;  %v6347_v11 = vld [vmem:[#allocation15_spill] sm:$0xff] }
  0x5f   : > { %6344 = vst [vmem:[#allocation14_spill] sm:$0xff] %v4012_v32  ;;  %v937_v25 = vsel %vm925_vm2, %v904_v42, %v920_v30  ;;  %v1038_v33 = vmax.f32 %v4012_v32, %v1008_v56  ;;  %v4029_v12 = vmax.f32 %v3685_v18, %v953_v8  ;;  %v410_v28 = vmul.f32 %v3546_v31, %v372_v29 }
  0x60   : > { %v4032_v23 = vmax.f32 %v3698_v44, %v937_v25  ;;  %v1071_v43 = vmul.f32 %v3546_v31, %v1039_v61  ;;  %v409_v5 = vmul.f32 %v3546_v31, %v371_v34  ;;  %v898_v42 = vrot.slane %v6347_v11, 2 }
  0x61   : > { %6345 = vst [vmem:[#allocation35_spill] sm:$0xff] %v4029_v12  ;;  %v1070_v30 = vmul.f32 %v3546_v31, %v1038_v33  ;;  %v4042_v32 = vmax.f32 %v3983_v59, %v4029_v12  ;;  %v4049_v44 = vsel %vm427_vm1, %v410_v28, 0.0  ;;  %v324_v61 = vsel %vm292_vm0, %v289_v13, %v273_v41 }
  0x62   : > { %6346 = vst [vmem:[#allocation36_spill] sm:$0xff] %v4032_v23  ;;  %v4046_v18 = vmax.f32 %v3998_v22, %v4032_v23  ;;  %510 = vadd.xlane.f32.xlu1 %v509_v54  ;;  %507 = vadd.xlane.f32.xlu0 %v506_v35  ;;  %v1137_v29 = vsel %vm427_vm1, %v1071_v43, 0.0  ;;  %v4053_v34 = vsel %vm427_vm1, %v409_v5, 0.0  ;;  %v308_v8 = vsel %vm292_vm0, %v273_v41, %v289_v13  ;;  %v6350_v43 = vld [vmem:[#allocation16_spill] sm:$0xff] }
  0x63   : > { %v1134_v25 = vsel %vm427_vm1, %v1070_v30, 0.0  ;;  %v1041_v33 = vmax.f32 %v1009_v19, %v4042_v32  ;;  %v4063_v54 = vmax.f32 %v4019_v40, %v324_v61  ;;  %v4066_v35 = vmax.f32 %v4001_v48, %v308_v8 }
  0x64   : > { %v1040_v28 = vmax.f32 %v1008_v56, %v4046_v18  ;;  %v914_v5 = vrot.slane %v6350_v43, 2  ;;  %v905_v22 = vrot.slane %v3701_v45, 2  ;;  %v921_v24 = vrot.slane %v3704_v46, 2 }
  0x65   : > { %6348 = vst [vmem:[#allocation15_spill] sm:$0xff] %v4063_v54  ;;  %6349 = vst [vmem:[#allocation37_spill] sm:$0xff] %v4066_v35  ;;  %v1073_v41 = vmul.f32 %v3546_v31, %v1041_v33  ;;  %v386_v19 = vmax.f32 %v3914_v60, %v4063_v54  ;;  %v388_v56 = vmax.f32 %v4063_v54, %v3562_v39  ;;  %v6351_v33 = vld [vmem:[#allocation21_spill] sm:$0xff]  ;;  %v6352_v39 = vld [vmem:[#allocation20_spill] sm:$0xff] }
  0x66   : > { %v1072_v13 = vmul.f32 %v3546_v31, %v1040_v28  ;;  %1102 = vadd.xlane.f32.xlu1 %v1101_v27  ;;  %1099 = vadd.xlane.f32.xlu0 %v1098_v49  ;;  %v385_v30 = vmax.f32 %v3917_v10, %v4066_v35  ;;  %v947_v61 = vsel %vm925_vm2, %v914_v5, %v898_v42  ;;  %v899_v59 = vrot.slane %v6351_v33, 2 }
  0x67   : > { %v931_v8 = vsel %vm925_vm2, %v898_v42, %v914_v5  ;;  %v1143_v28 = vsel %vm427_vm1, %v1073_v41, 0.0  ;;  %v424_v46 = vmul.f32 %v3546_v31, %v386_v19  ;;  %v4088_v27 = vmax.f32 %v6352_v39, %v947_v61 }
  0x68   : > { %v1140_v58 = vsel %vm427_vm1, %v1072_v13, 0.0  ;;  %v423_v49 = vmul.f32 %v3546_v31, %v385_v30  ;;  %v4092_v45 = vmax.f32 %v3730_v38, %v931_v8  ;;  %v954_v54 = vsel %vm925_vm2, %v921_v24, %v905_v22 }
  0x69   : > { %v938_v42 = vsel %vm925_vm2, %v905_v22, %v921_v24  ;;  %v515_v5 = vsel %vm427_vm1, %v424_v46, 0.0  ;;  %v999_v41 = vmax.f32 %v3938_v6, %v4088_v27  ;;  %v4102_v13 = vmax.f32 %v3750_v47, %v954_v54 }
  0x6a   : > { %v4105_v19 = vmax.f32 %v3759_v16, %v938_v42  ;;  %1138 = vadd.xlane.f32.xlu1 %v1137_v29  ;;  %1135 = vadd.xlane.f32.xlu0 %v1134_v25  ;;  %v512_v38 = vsel %vm427_vm1, %v423_v49, 0.0  ;;  %v998_v30 = vmax.f32 %v3943_v20, %v4092_v45  ;;  %v426_v24 = vmul.f32 %v3546_v31, %v388_v56  ;;  %v6355_v29 = vld [vmem:[#allocation22_spill] sm:$0xff] }
  0x6b   : > { %6353 = vst [vmem:[#allocation16_spill] sm:$0xff] %v4102_v13  ;;  %v387_v46 = vmax.f32 %v4066_v35, %v3529_v26  ;;  %v1029_v22 = vmax.f32 %v3952_v55, %v999_v41  ;;  %v4116_v47 = vmax.f32 %v4029_v12, %v4102_v13  ;;  %v915_v25 = vrot.slane %v6355_v29, 2 }
  0x6c   : > { %6354 = vst [vmem:[#allocation21_spill] sm:$0xff] %v4105_v19  ;;  %v4120_v16 = vmax.f32 %v4032_v23, %v4105_v19  ;;  %v1028_v54 = vmax.f32 %v3957_v15, %v998_v30  ;;  %v4125_v61 = vsel %vm427_vm1, %v426_v24, 0.0  ;;  %v906_v26 = vrot.slane %v3725_v7, 2 }
  0x6d   : > { %v425_v56 = vmul.f32 %v3546_v31, %v387_v46  ;;  %v1061_v55 = vmul.f32 %v3546_v31, %v1029_v22  ;;  %v1043_v8 = vmax.f32 %v4042_v32, %v4116_v47  ;;  %v948_v49 = vsel %vm925_vm2, %v915_v25, %v899_v59 }
  0x6e   : > { %v1042_v39 = vmax.f32 %v4046_v18, %v4120_v16  ;;  %1144 = vadd.xlane.f32.xlu1 %v1143_v28  ;;  %1141 = vadd.xlane.f32.xlu0 %v1140_v58  ;;  %v1060_v15 = vmul.f32 %v3546_v31, %v1028_v54  ;;  %v4141_v7 = vmax.f32 %v3762_v50, %v948_v49  ;;  %v922_v50 = vrot.slane %v3745_v0, 2 }
  0x6f   : > { %v4138_v42 = vsel %vm427_vm1, %v425_v56, 0.0  ;;  %v932_v24 = vsel %vm925_vm2, %v899_v59, %v915_v25  ;;  %v1107_v32 = vsel %vm427_vm1, %v1061_v55, 0.0  ;;  %v1075_v18 = vmul.f32 %v3546_v31, %v1043_v8 }
  0x70   : > { %6356 = vst [vmem:[#allocation20_spill] sm:$0xff] %v4141_v7  ;;  %v1074_v46 = vmul.f32 %v3546_v31, %v1042_v39  ;;  %v4149_v28 = vmax.f32 %v3776_v37, %v932_v24  ;;  %v1104_v58 = vsel %vm427_vm1, %v1060_v15, 0.0  ;;  %v1001_v22 = vmax.f32 %v4088_v27, %v4141_v7 }
  0x71   : > { %v900_v54 = vrot.slane %v3832_v57, 2  ;;  %v1149_v59 = vsel %vm427_vm1, %v1075_v18, 0.0  ;;  %v916_v55 = vrot.slane %v3835_v2, 2  ;;  %v955_v8 = vsel %vm925_vm2, %v922_v50, %v906_v26 }
  0x72   : > { %6357 = vst [vmem:[#allocation38_spill] sm:$0xff] %v4149_v28  ;;  %v1146_v25 = vsel %vm427_vm1, %v1074_v46, 0.0  ;;  %v1000_v56 = vmax.f32 %v4092_v45, %v4149_v28  ;;  %474 = vadd.xlane.f32.xlu1 %v4049_v44  ;;  %471 = vadd.xlane.f32.xlu0 %v4053_v34  ;;  %v1031_v37 = vmax.f32 %v999_v41, %v1001_v22  ;;  %v907_v57 = vrot.slane %v3848_v3, 2 }
  0x73   : > { %v939_v0 = vsel %vm925_vm2, %v906_v26, %v922_v50  ;;  %v4169_v49 = vmax.f32 %v3789_v52, %v955_v8  ;;  %v949_v2 = vsel %vm925_vm2, %v916_v55, %v900_v54  ;;  %v933_v41 = vsel %vm925_vm2, %v900_v54, %v916_v55 }
  0x74   : > { %v1030_v39 = vmax.f32 %v998_v30, %v1000_v56  ;;  %v4172_v15 = vmax.f32 %v3793_v51, %v939_v0  ;;  %v1063_v44 = vmul.f32 %v3546_v31, %v1031_v37  ;;  %v4178_v34 = vmax.f32 %v3886_v4, %v949_v2  ;;  %v6363_v37 = vld [vmem:[#allocation10_spill] sm:$0xff]  ;;  %v6367_v2 = vld [vmem:[#allocation8_spill] sm:$0xff] }
  0x75   : > { %6358 = vst [vmem:[#allocation39_spill] sm:$0xff] %v4169_v49  ;;  %v923_v3 = vrot.slane %v3867_v17, 2  ;;  %v1015_v51 = vmax.f32 %v4102_v13, %v4169_v49  ;;  %v4190_v26 = vmax.f32 %v3899_v36, %v933_v41  ;;  %v1541_v8 = vrot.slane %v6363_v37, 3 }
  0x76   : > { %6359 = vst [vmem:[#allocation40_spill] sm:$0xff] %v4172_v15  ;;  %v1062_v52 = vmul.f32 %v3546_v31, %v1030_v39  ;;  %v1014_v30 = vmax.f32 %v4105_v19, %v4172_v15  ;;  %516 = vadd.xlane.f32.xlu1 %v515_v5  ;;  %513 = vadd.xlane.f32.xlu0 %v512_v38  ;;  %v4193_v4 = vsel %vm427_vm1, %v1063_v44, 0.0  ;;  %v1543_v44 = vrot.slane %v6367_v2, 3 }
  0x77   : > { %v4197_v17 = vmax.f32 %v4141_v7, %v4178_v34  ;;  %v956_v24 = vsel %vm925_vm2, %v923_v3, %v907_v57  ;;  %v940_v18 = vsel %vm925_vm2, %v907_v57, %v923_v3  ;;  %v1045_v36 = vmax.f32 %v4116_v47, %v1015_v51  ;;  %v6364_v57 = vld [vmem:[#allocation6_spill] sm:$0xff]  ;;  %v6374_v7 = vld [vmem:[#allocation24_spill] sm:$0xff] }
  0x78   : > { %v4204_v46 = vsel %vm427_vm1, %v1062_v52, 0.0  ;;  %v1044_v5 = vmax.f32 %v4120_v16, %v1014_v30  ;;  %v4210_v38 = vmax.f32 %v4149_v28, %v4190_v26  ;;  %v4214_v54 = vmax.f32 %v3914_v60, %v956_v24 }
  0x79   : > { %v1033_v50 = vmax.f32 %v1001_v22, %v4197_v17  ;;  %v4217_v55 = vmax.f32 %v3917_v10, %v940_v18  ;;  %v1077_v0 = vmul.f32 %v3546_v31, %v1045_v36  ;;  %v1542_v39 = vrot.slane %v6364_v57, 3 }
  0x7a   : > { %6360 = vst [vmem:[#allocation41_spill] sm:$0xff] %v4210_v38  ;;  %6361 = vst [vmem:[#allocation42_spill] sm:$0xff] %v4214_v54  ;;  %v1076_v47 = vmul.f32 %v3546_v31, %v1044_v5  ;;  %v1032_v16 = vmax.f32 %v1000_v56, %v4210_v38  ;;  %1108 = vadd.xlane.f32.xlu1 %v1107_v32  ;;  %1105 = vadd.xlane.f32.xlu0 %v1104_v58  ;;  %v1544_v41 = vrot.slane %v3502_v14, 3  ;;  %v6368_v5 = vld [vmem:[#allocation11_spill] sm:$0xff] }
  0x7b   : > { %6362 = vst [vmem:[#allocation43_spill] sm:$0xff] %v4217_v55  ;;  %v1065_v22 = vmul.f32 %v3546_v31, %v1033_v50  ;;  %v4227_v60 = vmax.f32 %v4169_v49, %v4214_v54  ;;  %v4231_v10 = vmax.f32 %v4172_v15, %v4217_v55  ;;  %v4236_v56 = vsel %vm427_vm1, %v1077_v0, 0.0  ;;  %v6369_v0 = vld [vmem:[#allocation7_spill] sm:$0xff]  ;;  %v6370_v15 = vld [vmem:[#allocation9_spill] sm:$0xff] }
  0x7c   : > { %v4239_v32 = vsel %vm427_vm1, %v1076_v47, 0.0  ;;  %v1064_v58 = vmul.f32 %v3546_v31, %v1032_v16  ;;  %v1545_v18 = vrot.slane %v3603_v63, 3  ;;  %v1557_v50 = vrot.slane %v6368_v5, 3  ;;  %v6375_v54 = vld [vmem:[#allocation25_spill] sm:$0xff] }
  0x7d   : > { %6365 = vst [vmem:[#allocation10_spill] sm:$0xff] %v4227_v60  ;;  %6366 = vst [vmem:[#allocation6_spill] sm:$0xff] %v4231_v10  ;;  %v4244_v3 = vsel %vm427_vm1, %v1065_v22, 0.0  ;;  %v1047_v52 = vmax.f32 %v1015_v51, %v4227_v60  ;;  %v1046_v24 = vmax.f32 %v1014_v30, %v4231_v10  ;;  %v1558_v47 = vrot.slane %v6369_v0, 3  ;;  %v6371_v51 = vld [vmem:[#allocation12_spill] sm:$0xff]  ;;  %v6372_v30 = vld [vmem:[#allocation13_spill] sm:$0xff] }
  0x7e   : > { %v4250_v36 = vsel %vm427_vm1, %v1064_v58, 0.0  ;;  %v1559_v16 = vrot.slane %v6370_v15, 3  ;;  %1150 = vadd.xlane.f32.xlu1 %v1149_v59  ;;  %1147 = vadd.xlane.f32.xlu0 %v1146_v25  ;;  %v1560_v19 = vrot.slane %v6371_v51, 3  ;;  %v1561_v23 = vrot.slane %v6372_v30, 3  ;;  %v6373_v10 = vld [vmem:[#allocation23_spill] sm:$0xff] }
  0x7f   : > { %v1079_v22 = vmul.f32 %v3546_v31, %v1047_v52  ;;  %v1078_v49 = vmul.f32 %v3546_v31, %v1046_v24  ;;  %v1590_v58 = vsel %vm1573_vm3, %v1557_v50, %v1541_v8  ;;  %v1591_v13 = vsel %vm1573_vm3, %v1558_v47, %v1542_v39 }
  0x80   : > { %v1592_v12 = vsel %vm1573_vm3, %v1559_v16, %v1543_v44  ;;  %v1638_v59 = vrot.slane %v6363_v37, 4  ;;  %v1593_v24 = vsel %vm1573_vm3, %v1560_v19, %v1544_v41  ;;  %v1594_v28 = vsel %vm1573_vm3, %v1561_v23, %v1545_v18 }
  0x81   : > { %v4267_v25 = vsel %vm427_vm1, %v1079_v22, 0.0  ;;  %v4270_v52 = vsel %vm427_vm1, %v1078_v49, 0.0  ;;  %v1607_v60 = vmax.f32 %v6373_v10, %v1590_v58  ;;  %v1609_v55 = vmax.f32 %v6374_v7, %v1591_v13 }
  0x82   : > { %v1611_v35 = vmax.f32 %v6375_v54, %v1592_v12  ;;  %v1613_v37 = vmax.f32 %v3877_v21, %v1593_v24  ;;  %522 = vadd.xlane.f32.xlu1 %v4125_v61  ;;  %519 = vadd.xlane.f32.xlu0 %v4138_v42  ;;  %v1615_v49 = vmax.f32 %v3938_v6, %v1594_v28  ;;  %v1639_v22 = vrot.slane %v6364_v57, 4 }
  0x83   : > { %v1640_v38 = vrot.slane %v6367_v2, 4  ;;  %v1641_v29 = vrot.slane %v3502_v14, 4  ;;  %v1642_v58 = vrot.slane %v3603_v63, 4  ;;  %v1654_v13 = vrot.slane %v6368_v5, 4 }
  0x84   : > { %v1655_v12 = vrot.slane %v6369_v0, 4  ;;  %v1656_v21 = vrot.slane %v6370_v15, 4  ;;  %v1657_v61 = vrot.slane %v6371_v51, 4  ;;  %v1658_v42 = vrot.slane %v6372_v30, 4  ;;  %v6381_v0 = vld [vmem:[#allocation26_spill] sm:$0xff] }
  0x85   : > { %v1574_v6 = vsel %vm1573_vm3, %v1541_v8, %v1557_v50  ;;  %v1575_v7 = vsel %vm1573_vm3, %v1542_v39, %v1558_v47  ;;  %v1687_v14 = vsel %vm1670_vm4, %v1654_v13, %v1638_v59  ;;  %v1576_v15 = vsel %vm1573_vm3, %v1543_v44, %v1559_v16 }
  0x86   : > { %v1688_v63 = vsel %vm1670_vm4, %v1655_v12, %v1639_v22  ;;  %v1689_v28 = vsel %vm1670_vm4, %v1656_v21, %v1640_v38  ;;  %1114 = vadd.xlane.f32.xlu1 %v4193_v4  ;;  %1111 = vadd.xlane.f32.xlu0 %v4204_v46  ;;  %v1690_v54 = vsel %vm1670_vm4, %v1657_v61, %v1641_v29  ;;  %v1546_v39 = vrot.slane %v6347_v11, 3 }
  0x87   : > { %v1691_v8 = vsel %vm1670_vm4, %v1658_v42, %v1642_v58  ;;  %v4310_v57 = vmax.f32 %v1607_v60, %v1687_v14  ;;  %v4313_v2 = vmax.f32 %v1609_v55, %v1688_v63  ;;  %v4315_v5 = vmax.f32 %v1611_v35, %v1689_v28  ;;  %v6382_v60 = vld [vmem:[#allocation27_spill] sm:$0xff] }
  0x88   : > { %v4317_v50 = vmax.f32 %v1613_v37, %v1690_v54  ;;  %v4319_v44 = vmax.f32 %v1615_v49, %v1691_v8  ;;  %v1577_v4 = vsel %vm1573_vm3, %v1544_v41, %v1560_v19  ;;  %v1578_v46 = vsel %vm1573_vm3, %v1545_v18, %v1561_v23  ;;  %v6385_v23 = vld [vmem:[#allocation28_spill] sm:$0xff] }
  0x89   : > { %6376 = vst [vmem:[#allocation8_spill] sm:$0xff] %v4310_v57  ;;  %6377 = vst [vmem:[#allocation11_spill] sm:$0xff] %v4313_v2  ;;  %v1606_v47 = vmax.f32 %v6381_v0, %v1574_v6  ;;  %v1608_v16 = vmax.f32 %v6382_v60, %v1575_v7  ;;  %v4329_v55 = vmax.f32 %v4310_v57, %v4313_v2  ;;  %v1562_v24 = vrot.slane %v6350_v43, 3 }
  0x8a   : > { %6378 = vst [vmem:[#allocation7_spill] sm:$0xff] %v4315_v5  ;;  %6379 = vst [vmem:[#allocation9_spill] sm:$0xff] %v4317_v50  ;;  %v4333_v35 = vmax.f32 %v4313_v2, %v4315_v5  ;;  %v1740_v51 = vmax.f32 %v4315_v5, %v4317_v50  ;;  %v4339_v19 = vmax.f32 %v4317_v50, %v4319_v44  ;;  %1156 = vadd.xlane.f32.xlu1 %v4236_v56  ;;  %v6423_v50 = vld [vmem:[#allocation35_spill] sm:$0xff]  ;;  %v6424_v2 = vld [vmem:[#allocation16_spill] sm:$0xff] }
  0x8b   : > { %6380 = vst [vmem:[#allocation12_spill] sm:$0xff] %v4319_v44  ;;  %6383 = vst [vmem:[#allocation13_spill] sm:$0xff] %v4329_v55  ;;  %1153 = vadd.xlane.f32.xlu0 %v4239_v32  ;;  %v1610_v41 = vmax.f32 %v6385_v23, %v1576_v15  ;;  %v1612_v18 = vmax.f32 %v3880_v9, %v1577_v4  ;;  %v1614_v30 = vmax.f32 %v3943_v20, %v1578_v46  ;;  %v6397_v23 = vld [vmem:[#allocation22_spill] sm:$0xff] }
  0x8c   : > { %6384 = vst [vmem:[#allocation23_spill] sm:$0xff] %v4333_v35  ;;  %v4348_v37 = vmax.f32 %v4329_v55, %v1740_v51  ;;  %v4352_v49 = vmax.f32 %v4333_v35, %v4339_v19  ;;  %v1671_v56 = vsel %vm1670_vm4, %v1638_v59, %v1654_v13  ;;  %v1672_v32 = vsel %vm1670_vm4, %v1639_v22, %v1655_v12 }
  0x8d   : > { %v1673_v9 = vsel %vm1670_vm4, %v1640_v38, %v1656_v21  ;;  %v1674_v20 = vsel %vm1670_vm4, %v1641_v29, %v1657_v61  ;;  %v1675_v6 = vsel %vm1670_vm4, %v1642_v58, %v1658_v42  ;;  %v4364_v7 = vmax.f32 %v1606_v47, %v1671_v56 }
  0x8e   : > { %6386 = vst [vmem:[#allocation24_spill] sm:$0xff] %v4348_v37  ;;  %v1800_v14 = vmax.f32 %v4348_v37, %v4352_v49  ;;  %v4368_v63 = vmax.f32 %v1608_v16, %v1672_v32  ;;  %v4370_v59 = vmax.f32 %v1610_v41, %v1673_v9  ;;  %v4372_v13 = vmax.f32 %v1612_v18, %v1674_v20  ;;  %v6416_v37 = vld [vmem:[#allocation19_spill] sm:$0xff] }
  0x8f   : > { %6387 = vst [vmem:[#allocation25_spill] sm:$0xff] %v4364_v7  ;;  %1120 = vadd.xlane.f32.xlu1 %v4244_v3  ;;  %1117 = vadd.xlane.f32.xlu0 %v4250_v36  ;;  %v4376_v38 = vmax.f32 %v1614_v30, %v1675_v6  ;;  %v1595_v29 = vsel %vm1573_vm3, %v1562_v24, %v1546_v39  ;;  %v1643_v22 = vrot.slane %v6347_v11, 4  ;;  %v1659_v58 = vrot.slane %v6350_v43, 4  ;;  %v6398_v30 = vld [vmem:[#allocation41_spill] sm:$0xff] }
  0x90   : > { %6388 = vst [vmem:[#allocation26_spill] sm:$0xff] %v4368_v63  ;;  %6389 = vst [vmem:[#allocation27_spill] sm:$0xff] %v4370_v59  ;;  %v1832_v12 = vmul.f32 %v3546_v31, %v1800_v14  ;;  %v4385_v21 = vmax.f32 %v4364_v7, %v4368_v63  ;;  %v4389_v3 = vmax.f32 %v4368_v63, %v4370_v59  ;;  %v908_v4 = vrot.slane %v4001_v48, 2  ;;  %v6399_v14 = vld [vmem:[#allocation15_spill] sm:$0xff] }
  0x91   : > { %6390 = vst [vmem:[#allocation28_spill] sm:$0xff] %v4372_v13  ;;  %6391 = vst [vmem:[#allocation44_spill] sm:$0xff] %v4376_v38  ;;  %v1739_v36 = vmax.f32 %v4370_v59, %v4372_v13  ;;  %v4395_v61 = vmax.f32 %v4372_v13, %v4376_v38  ;;  %v1617_v11 = vmax.f32 %v4088_v27, %v1595_v29  ;;  %v1563_v41 = vrot.slane %v6397_v23, 3  ;;  %v6421_v63 = vld [vmem:[#allocation31_spill] sm:$0xff] }
  0x92   : > { %6392 = vst [vmem:[#allocation45_spill] sm:$0xff] %v4385_v21  ;;  %6393 = vst [vmem:[#allocation46_spill] sm:$0xff] %v4389_v3  ;;  %v1692_v31 = vsel %vm1670_vm4, %v1659_v58, %v1643_v22  ;;  %v1579_v43 = vsel %vm1573_vm3, %v1546_v39, %v1562_v24  ;;  %v1866_v42 = vsel %vm427_vm1, %v1832_v12, 0.0  ;;  %v1676_v54 = vsel %vm1670_vm4, %v1643_v22, %v1659_v58  ;;  %v6400_v12 = vld [vmem:[#allocation37_spill] sm:$0xff] }
  0x93   : > { %v4404_v28 = vmax.f32 %v4385_v21, %v1739_v36  ;;  %v1616_v15 = vmax.f32 %v4092_v45, %v1579_v43  ;;  %1162 = vadd.xlane.f32.xlu1 %v4267_v25  ;;  %1159 = vadd.xlane.f32.xlu0 %v4270_v52  ;;  %v1769_v27 = vmax.f32 %v4389_v3, %v4395_v61  ;;  %v924_v25 = vrot.slane %v4019_v40, 2 }
  0x94   : > { %v4413_v8 = vmax.f32 %v1617_v11, %v1692_v31  ;;  %v4417_v39 = vmax.f32 %v4178_v34, %v3968_v53  ;;  %v4424_v45 = vmax.f32 %v4190_v26, %v3986_v62  ;;  %v1547_v52 = vrot.slane %v6351_v33, 3 }
  0x95   : > { %6394 = vst [vmem:[#allocation47_spill] sm:$0xff] %v4404_v28  ;;  %v4420_v46 = vmax.f32 %v1616_v15, %v1676_v54  ;;  %v1799_v47 = vmax.f32 %v4404_v28, %v1769_v27  ;;  %v957_v56 = vsel %vm925_vm2, %v924_v25, %v908_v4  ;;  %v941_v32 = vsel %vm925_vm2, %v908_v4, %v924_v25  ;;  %v6401_v15 = vld [vmem:[#allocation42_spill] sm:$0xff]  ;;  %v6402_v25 = vld [vmem:[#allocation43_spill] sm:$0xff] }
  0x96   : > { %6395 = vst [vmem:[#allocation48_spill] sm:$0xff] %v4413_v8  ;;  %v4431_v60 = vmax.f32 %v4319_v44, %v4413_v8  ;;  %v1035_v16 = vmax.f32 %v4197_v17, %v4417_v39  ;;  %v1034_v24 = vmax.f32 %v6398_v30, %v4424_v45  ;;  %v4449_v17 = vld [vmem:[%s6164_s1] ss:$0 sm:$0xff]  ;;  %v4457_v29 = vmax.f32 %v6399_v14, %v957_v56 }
  0x97   : > { %6396 = vst [vmem:[#allocation49_spill] sm:$0xff] %v4420_v46  ;;  %v4438_v18 = vmax.f32 %v4376_v38, %v4420_v46  ;;  %1867 = vadd.xlane.f32.xlu1 %v1866_v42  ;;  %v1831_v9 = vmul.f32 %v4449_v17, %v1799_v47  ;;  %v4464_v11 = vmax.f32 %v6400_v12, %v941_v32  ;;  %v1644_v32 = vrot.slane %v6351_v33, 4  ;;  %v4494_v12 = vld [vmem:[%s3474_s10 + $0x80] sm:$0xff] }
  0x98   : > { %v4453_v20 = vmax.f32 %v1740_v51, %v4431_v60  ;;  %v1067_v6 = vmul.f32 %v4449_v17, %v1035_v16  ;;  %v1066_v58 = vmul.f32 %v4449_v17, %v1034_v24  ;;  %v1596_v31 = vsel %vm1573_vm3, %v1563_v41, %v1547_v52  ;;  %v6403_v16 = vld [vmem:[#allocation20_spill] sm:$0xff]  ;;  %6406 = vst [vmem:[#allocation22_spill] sm:$0xff] %v4494_v12 }
  0x99   : > { %v4460_v22 = vmax.f32 %v1739_v36, %v4438_v18  ;;  %v1863_v43 = vsel %vm427_vm1, %v1831_v9, 0.0  ;;  %v4474_v36 = vmax.f32 %v6401_v15, %v4457_v29  ;;  %v4480_v47 = vmax.f32 %v6402_v25, %v4464_v11 }
  0x9a   : > { %v1802_v51 = vmax.f32 %v4352_v49, %v4453_v20  ;;  %v1125_v42 = vsel %vm427_vm1, %v1067_v6, 0.0  ;;  %1864 = vadd.xlane.f32.xlu0 %v1863_v43  ;;  %v1122_v4 = vsel %vm427_vm1, %v1066_v58, 0.0  ;;  %v1619_v30 = vmax.f32 %v6403_v16, %v1596_v31  ;;  %v6404_v49 = vld [vmem:[#allocation10_spill] sm:$0xff]  ;;  %v4550_v31 = vld [vmem:[%s3474_s10 + $0xb8] sm:$0xff] }
  0x9b   : > { %v1801_v54 = vmax.f32 %v1769_v27, %v4460_v22  ;;  %v1049_v56 = vmax.f32 %v6404_v49, %v4474_v36  ;;  %v1660_v9 = vrot.slane %v6397_v23, 4  ;;  %v6405_v27 = vld [vmem:[#allocation6_spill] sm:$0xff]  ;;  %v1580_v58 = vsel %vm1573_vm3, %v1547_v52, %v1563_v41  ;;  %6415 = vst [vmem:[#allocation10_spill] sm:$0xff] %v4550_v31 }
  0x9c   : > { %v1834_v24 = vmul.f32 %v4449_v17, %v1802_v51  ;;  %v1048_v14 = vmax.f32 %v6405_v27, %v4480_v47  ;;  %v6407_v51 = vld [vmem:[#allocation38_spill] sm:$0xff]  ;;  %v4512_v27 = vld [vmem:[%s3474_s10 + $0x90] sm:$0xff]  ;;  %v1568_v28 = vrot.slane %v4550_v31, 3  ;;  %v1569_v3 = vrot.slane %v6416_v37, 3 }
  0x9d   : > { %v1833_v6 = vmul.f32 %v4449_v17, %v1801_v54  ;;  %v1081_v33 = vmul.f32 %v4449_v17, %v1049_v56  ;;  %v1693_v23 = vsel %vm1670_vm4, %v1660_v9, %v1644_v32  ;;  %v1618_v54 = vmax.f32 %v6407_v51, %v1580_v58  ;;  %6408 = vst [vmem:[#allocation41_spill] sm:$0xff] %v4512_v27 }
  0x9e   : > { %v1872_v43 = vsel %vm427_vm1, %v1834_v24, 0.0  ;;  %v1080_v52 = vmul.f32 %v4449_v17, %v1048_v14  ;;  %v4504_v41 = vmax.f32 %v1619_v30, %v1693_v23  ;;  %v1677_v49 = vsel %vm1670_vm4, %v1644_v32, %v1660_v9  ;;  %v4525_v9 = vld [vmem:[%s3474_s10 + $0xb0] sm:$0xff]  ;;  %v4542_v30 = vld [vmem:[%s3474_s10 + $0xa8] sm:$0xff] }
  0x9f   : > { %1873 = vadd.xlane.f32.xlu1 %v1872_v43  ;;  %v1869_v16 = vsel %vm427_vm1, %v1833_v6, 0.0  ;;  %v1167_v24 = vsel %vm427_vm1, %v1081_v33, 0.0  ;;  %v4509_v56 = vmax.f32 %v1618_v54, %v1677_v49  ;;  %v4516_v6 = vld [vmem:[%s3474_s10 + $0xa0] sm:$0xff]  ;;  %6410 = vst [vmem:[#allocation37_spill] sm:$0xff] %v4525_v9  ;;  %v1552_v43 = vrot.slane %v4525_v9, 3  ;;  %v4534_v54 = vld [vmem:[%s3474_s10 + $0x88] sm:$0xff] }
  0xa0   : > { %1870 = vadd.xlane.f32.xlu0 %v1869_v16  ;;  %6409 = vst [vmem:[#allocation15_spill] sm:$0xff] %v4516_v6  ;;  %v1164_v14 = vsel %vm427_vm1, %v1080_v52, 0.0  ;;  %v4522_v32 = vmax.f32 %v4413_v8, %v4504_v41  ;;  %v6411_v33 = vld [vmem:[#allocation18_spill] sm:$0xff]  ;;  %6412 = vst [vmem:[#allocation42_spill] sm:$0xff] %v4534_v54  ;;  %v1565_v16 = vrot.slane %v4534_v54, 3  ;;  %v4538_v49 = vld [vmem:[%s3474_s10 + $0x98] sm:$0xff] }
  0xa1   : > { %v4531_v51 = vmax.f32 %v4420_v46, %v4509_v56  ;;  %6413 = vst [vmem:[#allocation43_spill] sm:$0xff] %v4538_v49  ;;  %v1566_v52 = vrot.slane %v4538_v49, 3  ;;  %6414 = vst [vmem:[#allocation20_spill] sm:$0xff] %v4542_v30  ;;  %v1567_v58 = vrot.slane %v4542_v30, 3  ;;  %v1646_v35 = vrot.slane %v4494_v12, 4 }
  0xa2   : > { %v4547_v23 = vmax.f32 %v4339_v19, %v4522_v32  ;;  %v6417_v55 = vrot.slane %v4494_v12, 3  ;;  %v6418_v19 = vrot.slane %v4512_v27, 3  ;;  %v6419_v38 = vrot.slane %v4516_v6, 3 }
  0xa3   : > { %1126 = vadd.xlane.f32.xlu1 %v1125_v42  ;;  %v4557_v21 = vmax.f32 %v4395_v61, %v4531_v51  ;;  %v1601_v61 = vsel %vm1573_vm3, %v1568_v28, %v1552_v43  ;;  %v6420_v13 = vrot.slane %v6411_v33, 3  ;;  %v1647_v57 = vrot.slane %v4512_v27, 4 }
  0xa4   : > { %1123 = vadd.xlane.f32.xlu0 %v1122_v4  ;;  %v1598_v42 = vsel %vm1573_vm3, %v1565_v16, %v6417_v55  ;;  %v1599_v46 = vsel %vm1573_vm3, %v1566_v52, %v6418_v19  ;;  %v1600_v37 = vsel %vm1573_vm3, %v1567_v58, %v6419_v38  ;;  %v1804_v4 = vmax.f32 %v4453_v20, %v4547_v23  ;;  %v6422_v38 = vld [vmem:[#allocation32_spill] sm:$0xff] }
  0xa5   : > { %v1602_v55 = vsel %vm1573_vm3, %v1569_v3, %v6420_v13  ;;  %v1623_v59 = vmax.f32 %v3968_v53, %v1598_v42  ;;  %v1803_v19 = vmax.f32 %v4460_v22, %v4557_v21  ;;  %v1625_v8 = vmax.f32 %v6421_v63, %v1599_v46  ;;  %v4592_v63 = vld [vmem:[%s3474_s10 + $0xc0] sm:$0xff] }
  0xa6   : > { %v1627_v44 = vmax.f32 %v6422_v38, %v1600_v37  ;;  %v1629_v20 = vmax.f32 %v6423_v50, %v1601_v61  ;;  %v1836_v5 = vmul.f32 %v4449_v17, %v1804_v4  ;;  %v1631_v7 = vmax.f32 %v6424_v2, %v1602_v55  ;;  %6425 = vst [vmem:[#allocation6_spill] sm:$0xff] %v4592_v63  ;;  %v4602_v4 = vld [vmem:[%s3474_s10 + $0xc8] sm:$0xff] }
  0xa7   : > { %1168 = vadd.xlane.f32.xlu1 %v1167_v24  ;;  %v1648_v13 = vrot.slane %v4516_v6, 4  ;;  %v1835_v53 = vmul.f32 %v4449_v17, %v1803_v19  ;;  %v1649_v22 = vrot.slane %v4525_v9, 4  ;;  %v1650_v46 = vrot.slane %v4592_v63, 4  ;;  %6426 = vst [vmem:[#allocation38_spill] sm:$0xff] %v4602_v4 }
  0xa8   : > { %1165 = vadd.xlane.f32.xlu0 %v1164_v14  ;;  %v1662_v50 = vrot.slane %v4534_v54, 4  ;;  %v1878_v24 = vsel %vm427_vm1, %v1836_v5, 0.0  ;;  %v1663_v42 = vrot.slane %v4538_v49, 4  ;;  %v1664_v2 = vrot.slane %v4542_v30, 4 }
  0xa9   : > { %v1665_v37 = vrot.slane %v4550_v31, 4  ;;  %v1875_v14 = vsel %vm427_vm1, %v1835_v53, 0.0  ;;  %v1666_v61 = vrot.slane %v4602_v4, 4  ;;  %v6427_v19 = vrot.slane %v4494_v12, 3 }
  0xaa   : > { %v1695_v55 = vsel %vm1670_vm4, %v1662_v50, %v1646_v35  ;;  %v1696_v38 = vsel %vm1670_vm4, %v1663_v42, %v1647_v57  ;;  %v1697_v31 = vsel %vm1670_vm4, %v1664_v2, %v1648_v13 }
  0xab   : > { %v1582_v5 = vsel %vm1573_vm3, %v6427_v19, %v1565_v16  ;;  %1879 = vadd.xlane.f32.xlu1 %v1878_v24  ;;  %v1698_v53 = vsel %vm1670_vm4, %v1665_v37, %v1649_v22  ;;  %v4617_v30 = vmax.f32 %v1623_v59, %v1695_v55  ;;  %v1699_v4 = vsel %vm1670_vm4, %v1666_v61, %v1650_v46  ;;  %v6437_v55 = vld [vmem:[#allocation17_spill] sm:$0xff] }
  0xac   : > { %1876 = vadd.xlane.f32.xlu0 %v1875_v14  ;;  %v4621_v49 = vmax.f32 %v1625_v8, %v1696_v38  ;;  %v4623_v54 = vmax.f32 %v1627_v44, %v1697_v31  ;;  %v4625_v16 = vmax.f32 %v1629_v20, %v1698_v53  ;;  %v4627_v24 = vmax.f32 %v1631_v7, %v1699_v4 }
  0xad   : > { %6428 = vst [vmem:[#allocation18_spill] sm:$0xff] %v4617_v30  ;;  %v6433_v19 = vrot.slane %v4512_v27, 3  ;;  %v6434_v59 = vrot.slane %v4516_v6, 3  ;;  %v1585_v8 = vsel %vm1573_vm3, %v1552_v43, %v1568_v28  ;;  %v1622_v28 = vmax.f32 %v3986_v62, %v1582_v5  ;;  %v6436_v43 = vld [vmem:[#allocation34_spill] sm:$0xff] }
  0xae   : > { %6429 = vst [vmem:[#allocation19_spill] sm:$0xff] %v4621_v49  ;;  %6430 = vst [vmem:[#allocation31_spill] sm:$0xff] %v4623_v54  ;;  %v4641_v44 = vmax.f32 %v4617_v30, %v4621_v49  ;;  %v4645_v7 = vmax.f32 %v4621_v49, %v4623_v54  ;;  %v1756_v31 = vmax.f32 %v4623_v54, %v4625_v16 }
  0xaf   : > { %6431 = vst [vmem:[#allocation32_spill] sm:$0xff] %v4625_v16  ;;  %6432 = vst [vmem:[#allocation35_spill] sm:$0xff] %v4627_v24  ;;  %v1583_v63 = vsel %vm1573_vm3, %v6433_v19, %v1566_v52  ;;  %v1584_v14 = vsel %vm1573_vm3, %v6434_v59, %v1567_v58  ;;  %v6435_v52 = vrot.slane %v6411_v33, 3  ;;  %v4655_v58 = vmax.f32 %v4625_v16, %v4627_v24  ;;  %v6439_v19 = vld [vmem:[#allocation36_spill] sm:$0xff]  ;;  %v6440_v33 = vld [vmem:[#allocation21_spill] sm:$0xff] }
  0xb0   : > { %v1624_v4 = vmax.f32 %v6436_v43, %v1583_v63  ;;  %v1626_v38 = vmax.f32 %v6437_v55, %v1584_v14  ;;  %v4661_v53 = vmax.f32 %v4641_v44, %v1756_v31  ;;  %v1628_v59 = vmax.f32 %v6439_v19, %v1585_v8 }
  0xb1   : > { %v1586_v20 = vsel %vm1573_vm3, %v6435_v52, %v1569_v3  ;;  %v1679_v3 = vsel %vm1670_vm4, %v1646_v35, %v1662_v50  ;;  %v4669_v52 = vmax.f32 %v4645_v7, %v4655_v58  ;;  %v1680_v62 = vsel %vm1670_vm4, %v1647_v57, %v1663_v42 }
  0xb2   : > { %6438 = vst [vmem:[#allocation16_spill] sm:$0xff] %v4661_v53  ;;  %v1630_v54 = vmax.f32 %v6440_v33, %v1586_v20  ;;  %v1681_v63 = vsel %vm1670_vm4, %v1648_v13, %v1664_v2  ;;  %v1682_v5 = vsel %vm1670_vm4, %v1649_v22, %v1665_v37  ;;  %v1683_v14 = vsel %vm1670_vm4, %v1650_v46, %v1666_v61  ;;  %v4692_v13 = vld [vmem:[%s3474_s10 + $0xd0] sm:$0xff]  ;;  %v4704_v2 = vld [vmem:[%s3474_s10 + $0xd8] sm:$0xff] }
  0xb3   : > { %v4679_v8 = vmax.f32 %v1622_v28, %v1679_v3  ;;  %v4681_v35 = vmax.f32 %v1624_v4, %v1680_v62  ;;  %v4683_v50 = vmax.f32 %v1626_v38, %v1681_v63  ;;  %v1816_v20 = vmax.f32 %v4661_v53, %v4669_v52  ;;  %6446 = vst [vmem:[#allocation51_spill] sm:$0xff] %v4692_v13  ;;  %v6449_v62 = vld [vmem:[#allocation39_spill] sm:$0xff] }
  0xb4   : > { %v4687_v43 = vmax.f32 %v1628_v59, %v1682_v5  ;;  %v4689_v57 = vmax.f32 %v1630_v54, %v1683_v14  ;;  %v1554_v22 = vrot.slane %v4692_v13, 3  ;;  %6447 = vst [vmem:[#allocation52_spill] sm:$0xff] %v4704_v2  ;;  %v1570_v37 = vrot.slane %v4704_v2, 3  ;;  %v6450_v14 = vld [vmem:[#allocation40_spill] sm:$0xff] }
  0xb5   : > { %6441 = vst [vmem:[#allocation34_spill] sm:$0xff] %v4679_v8  ;;  %6442 = vst [vmem:[#allocation17_spill] sm:$0xff] %v4681_v35  ;;  %v4697_v46 = vmax.f32 %v4679_v8, %v4681_v35  ;;  %v4701_v42 = vmax.f32 %v4681_v35, %v4683_v50  ;;  %v1651_v61 = vrot.slane %v4692_v13, 4  ;;  %v1848_v54 = vmul.f32 %v4449_v17, %v1816_v20 }
  0xb6   : > { %6443 = vst [vmem:[#allocation36_spill] sm:$0xff] %v4683_v50  ;;  %6444 = vst [vmem:[#allocation21_spill] sm:$0xff] %v4687_v43  ;;  %v1755_v28 = vmax.f32 %v4683_v50, %v4687_v43  ;;  %v4713_v4 = vmax.f32 %v4687_v43, %v4689_v57  ;;  %v1667_v55 = vrot.slane %v4704_v2, 4  ;;  %v1603_v38 = vsel %vm1573_vm3, %v1570_v37, %v1554_v22  ;;  %v4735_v53 = vpop.xlane.xlu1 %435 }
  0xb7   : > { %6445 = vst [vmem:[#allocation50_spill] sm:$0xff] %v4689_v57  ;;  %v1587_v19 = vsel %vm1573_vm3, %v1554_v22, %v1570_v37  ;;  %v1914_v59 = vsel %vm427_vm1, %v1848_v54, 0.0  ;;  %v1633_v63 = vmax.f32 %v6449_v62, %v1603_v38  ;;  %v4737_v43 = vpop.xlane.xlu0 %429  ;;  %v6454_v62 = vld [vmem:[#allocation14_spill] sm:$0xff] }
  0xb8   : > { %v4722_v33 = vmax.f32 %v4697_v46, %v1755_v28  ;;  %v1785_v3 = vmax.f32 %v4701_v42, %v4713_v4  ;;  %1915 = vadd.xlane.f32.xlu1 %v1914_v59  ;;  %v1700_v5 = vsel %vm1670_vm4, %v1667_v55, %v1651_v61  ;;  %v1632_v20 = vmax.f32 %v6450_v14, %v1587_v19  ;;  %v6453_v19 = vld [vmem:[#allocation33_spill] sm:$0xff] }
  0xb9   : > { %v1684_v22 = vsel %vm1670_vm4, %v1651_v61, %v1667_v55  ;;  %v4733_v54 = vmax.f32 %v1633_v63, %v1700_v5  ;;  %v1037_v61 = vmax.f32 %v4417_v39, %v6453_v19  ;;  %v1036_v63 = vmax.f32 %v4424_v45, %v6454_v62  ;;  %v4755_v5 = vld [vmem:[%s3474_s10 + $0x70] sm:$0xff]  ;;  %v4767_v39 = vld [vmem:[%s3474_s10 + $0x78] sm:$0xff] }
  0xba   : > { %6448 = vst [vmem:[#allocation53_spill] sm:$0xff] %v4722_v33  ;;  %v1815_v37 = vmax.f32 %v4722_v33, %v1785_v3  ;;  %v4739_v50 = vmax.f32 %v1632_v20, %v1684_v22  ;;  %6455 = vst [vmem:[#allocation33_spill] sm:$0xff] %v4755_v5  ;;  %v1548_v14 = vrot.slane %v4755_v5, 3  ;;  %v1564_v19 = vrot.slane %v4767_v39, 3  ;;  %v4770_v33 = vpop.xlane.xlu1 %438 }
  0xbb   : > { %6451 = vst [vmem:[#allocation39_spill] sm:$0xff] %v4733_v54  ;;  %v4744_v59 = vmax.f32 %v4627_v24, %v4733_v54  ;;  %6456 = vst [vmem:[#allocation14_spill] sm:$0xff] %v4767_v39  ;;  %v4772_v45 = vpop.xlane.xlu0 %432  ;;  %v1069_v35 = vmul.f32 %v4449_v17, %v1037_v61 }
  0xbc   : > { %6452 = vst [vmem:[#allocation40_spill] sm:$0xff] %v4739_v50  ;;  %v1847_v38 = vmul.f32 %v4449_v17, %v1815_v37  ;;  %v4750_v55 = vmax.f32 %v4689_v57, %v4739_v50  ;;  %v4764_v37 = vmax.f32 %v4457_v29, %v6373_v10  ;;  %v1661_v10 = vrot.slane %v4767_v39, 4  ;;  %v6487_v39 = vld [vmem:[#allocation48_spill] sm:$0xff] }
  0xbd   : > { %v4760_v22 = vmax.f32 %v1756_v31, %v4744_v59  ;;  %v4779_v31 = vmax.f32 %v4464_v11, %v6381_v0  ;;  %v1597_v24 = vsel %vm1573_vm3, %v1564_v19, %v1548_v14  ;;  %v1068_v0 = vmul.f32 %v4449_v17, %v1036_v63 }
  0xbe   : > { %v1911_v20 = vsel %vm427_vm1, %v1847_v38, 0.0  ;;  %v4775_v62 = vmax.f32 %v1755_v28, %v4750_v55  ;;  %v1645_v38 = vrot.slane %v4755_v5, 4  ;;  %v1581_v28 = vsel %vm1573_vm3, %v1548_v14, %v1564_v19 }
  0xbf   : > { %1912 = vadd.xlane.f32.xlu0 %v1911_v20  ;;  %v1818_v57 = vmax.f32 %v4669_v52, %v4760_v22  ;;  %v1621_v16 = vmax.f32 %v4178_v34, %v1597_v24  ;;  %v1051_v61 = vmax.f32 %v4474_v36, %v4764_v37  ;;  %v1620_v2 = vmax.f32 %v4190_v26, %v1581_v28  ;;  %v4803_v63 = vpop.xlane.xlu0 %441 }
  0xc0   : > { %v1817_v20 = vmax.f32 %v1785_v3, %v4775_v62  ;;  %v1694_v49 = vsel %vm1670_vm4, %v1661_v10, %v1645_v38  ;;  %v1678_v14 = vsel %vm1670_vm4, %v1645_v38, %v1661_v10  ;;  %v4801_v3 = vpop.xlane.xlu1 %444  ;;  %v6457_v19 = vlaneseq  ;;  %v4816_v38 = vld [vmem:[%s3474_s10 + $0xe0] sm:$0xff] }
  0xc1   : > { %v1850_v52 = vmul.f32 %v4449_v17, %v1818_v57  ;;  %v1050_v57 = vmax.f32 %v4480_v47, %v4779_v31  ;;  %v4809_v13 = vmax.f32 %v1621_v16, %v1694_v49  ;;  %v1131_v26 = vsel %vm427_vm1, %v1069_v35, 0.0  ;;  %6460 = vst [vmem:[#allocation56_spill] sm:$0xff] %v4816_v38  ;;  %v4826_v49 = vld [vmem:[%s3474_s10 + $0xe8] sm:$0xff] }
  0xc2   : > { %v559_v34 = vand.u32 127, %v6457_v19  ;;  %v1849_v24 = vmul.f32 %v4449_v17, %v1817_v20  ;;  %v4813_v28 = vmax.f32 %v1620_v2, %v1678_v14  ;;  %v1555_v10 = vrot.slane %v4816_v38, 3  ;;  %6461 = vst [vmem:[#allocation57_spill] sm:$0xff] %v4826_v49 }
  0xc3   : > { %6458 = vst [vmem:[#allocation54_spill] sm:$0xff] %v4809_v13  ;;  %v1920_v36 = vsel %vm427_vm1, %v1850_v52, 0.0  ;;  %v1128_v20 = vsel %vm427_vm1, %v1068_v0, 0.0  ;;  %v4823_v47 = vmax.f32 %v4504_v41, %v4809_v13  ;;  %v1571_v16 = vrot.slane %v4826_v49, 3 }
  0xc4   : > { %6459 = vst [vmem:[#allocation55_spill] sm:$0xff] %v4813_v28  ;;  %1921 = vadd.xlane.f32.xlu1 %v1920_v36  ;;  %v1917_v19 = vsel %vm427_vm1, %v1849_v24, 0.0  ;;  %v1083_v35 = vmul.f32 %v4449_v17, %v1051_v61  ;;  %v4832_v2 = vmax.f32 %v4509_v56, %v4813_v28  ;;  %v1652_v52 = vrot.slane %v4816_v38, 4  ;;  %v4836_v0 = vpop.xlane.xlu1 %480  ;;  %v4838_v24 = vpop.xlane.xlu0 %477 }
  0xc5   : > { %1918 = vadd.xlane.f32.xlu0 %v1917_v19  ;;  %v1668_v14 = vrot.slane %v4826_v49, 4  ;;  %v1082_v36 = vmul.f32 %v4449_v17, %v1050_v57  ;;  %v4843_v9 = vmax.f32 %v4431_v60, %v4823_v47  ;;  %v1604_v61 = vsel %vm1573_vm3, %v1571_v16, %v1555_v10 }
  0xc6   : > { %v1588_v19 = vsel %vm1573_vm3, %v1555_v10, %v1571_v16  ;;  %v4851_v38 = vmax.f32 %v4438_v18, %v4832_v2  ;;  %v1635_v49 = vmax.f32 %v6401_v15, %v1604_v61  ;;  %v1173_v10 = vsel %vm427_vm1, %v1083_v35, 0.0 }
  0xc7   : > { %v1701_v6 = vsel %vm1670_vm4, %v1668_v14, %v1652_v52  ;;  %v1634_v57 = vmax.f32 %v6402_v25, %v1588_v19  ;;  %v1806_v60 = vmax.f32 %v4547_v23, %v4843_v9  ;;  %v1685_v27 = vsel %vm1670_vm4, %v1652_v52, %v1668_v14 }
  0xc8   : > { %1132 = vadd.xlane.f32.xlu1 %v1131_v26  ;;  %v1805_v18 = vmax.f32 %v4557_v21, %v4851_v38  ;;  %v4864_v16 = vmax.f32 %v1635_v49, %v1701_v6  ;;  %v4868_v61 = vpop.xlane.xlu1 %486  ;;  %v4870_v25 = vpop.xlane.xlu0 %483  ;;  %v4873_v26 = vsub.s32 %v559_v34, %v3469_v1  ;;  %v1170_v23 = vsel %vm427_vm1, %v1082_v36, 0.0  ;;  %v6464_v6 = vld [vmem:[#allocation29_spill] sm:$0xff] }
  0xc9   : > { %1129 = vadd.xlane.f32.xlu0 %v1128_v20  ;;  %v4866_v15 = vmax.f32 %v1634_v57, %v1685_v27  ;;  %v1838_v20 = vmul.f32 %v4449_v17, %v1806_v60  ;;  %v564_v52 = vadd.s32 4294967288, %v559_v34  ;;  %v1053_v49 = vmax.f32 %v4764_v37, %v6464_v6 }
  0xca   : > { %6462 = vst [vmem:[#allocation58_spill] sm:$0xff] %v4864_v16  ;;  %v1837_v35 = vmul.f32 %v4449_v17, %v1805_v18  ;;  %v4880_v21 = vmax.f32 %v4733_v54, %v4864_v16  ;;  %v4906_v18 = vmax.f32 %v4809_v13, %v4617_v30 }
  0xcb   : > { %6463 = vst [vmem:[#allocation59_spill] sm:$0xff] %v4866_v15  ;;  %v4884_v27 = vmax.f32 %v4739_v50, %v4866_v15  ;;  %v1884_v14 = vsel %vm427_vm1, %v1838_v20, 0.0 }
  0xcc   : > { %1174 = vadd.xlane.f32.xlu1 %v1173_v10  ;;  %v4891_v34 = vmax.f32 %v4655_v58, %v4880_v21  ;;  %v4897_v19 = vpop.xlane.xlu1 %450  ;;  %v4899_v57 = vpop.xlane.xlu0 %447  ;;  %v1881_v60 = vsel %vm427_vm1, %v1837_v35, 0.0  ;;  %v6465_v10 = vld [vmem:[#allocation30_spill] sm:$0xff]  ;;  %v4910_v58 = vmax.f32 %v4813_v28, %v4679_v8  ;;  %v1085_v35 = vmul.f32 %v4449_v17, %v1053_v49  ;;  %v6486_v28 = vld [vmem:[#allocation12_spill] sm:$0xff] }
  0xcd   : > { %1171 = vadd.xlane.f32.xlu0 %v1170_v23  ;;  %v4895_v36 = vmax.f32 %v4713_v4, %v4884_v27  ;;  %v1052_v37 = vmax.f32 %v4779_v31, %v6465_v10  ;;  %v4913_v4 = vsub.s32 %v564_v52, %v3469_v1  ;;  %v574_v23 = vrot.slane %v4735_v53, %v4873_v26 }
  0xce   : > { %v1820_v20 = vmax.f32 %v4760_v22, %v4891_v34  ;;  %v1778_v6 = vmax.f32 %v4522_v32, %v4906_v18  ;;  %v1777_v10 = vmax.f32 %v4531_v51, %v4910_v58  ;;  %v1556_v52 = vrot.slane %v4001_v48, 3 }
  0xcf   : > { %v1819_v31 = vmax.f32 %v4775_v62, %v4895_v36  ;;  %v1572_v22 = vrot.slane %v4019_v40, 3  ;;  %v1653_v62 = vrot.slane %v4001_v48, 4  ;;  %v1084_v32 = vmul.f32 %v4449_v17, %v1052_v37 }
  0xd0   : > { %1885 = vadd.xlane.f32.xlu1 %v1884_v14  ;;  %v1852_v53 = vmul.f32 %v4449_v17, %v1820_v20  ;;  %v4931_v14 = vpop.xlane.xlu1 %492  ;;  %v4933_v49 = vpop.xlane.xlu0 %489  ;;  %v1808_v8 = vmax.f32 %v4843_v9, %v1778_v6  ;;  %v1807_v51 = vmax.f32 %v4851_v38, %v1777_v10  ;;  %v578_v54 = vrot.slane %v4770_v33, %v4913_v4 }
  0xd1   : > { %1882 = vadd.xlane.f32.xlu0 %v1881_v60  ;;  %v1851_v50 = vmul.f32 %v4449_v17, %v1819_v31  ;;  %v1669_v60 = vrot.slane %v4019_v40, 4  ;;  %v1605_v48 = vsel %vm1573_vm3, %v1572_v22, %v1556_v52  ;;  %v568_v37 = vrot.slane %v4772_v45, %v4913_v4 }
  0xd2   : > { %v1926_v20 = vsel %vm427_vm1, %v1852_v53, 0.0  ;;  %v1637_v9 = vmax.f32 %v4457_v29, %v1605_v48  ;;  %v1179_v38 = vsel %vm427_vm1, %v1085_v35, 0.0  ;;  %v1589_v53 = vsel %vm1573_vm3, %v1556_v52, %v1572_v22 }
  0xd3   : > { %v1923_v31 = vsel %vm427_vm1, %v1851_v50, 0.0  ;;  %v1702_v40 = vsel %vm1670_vm4, %v1669_v60, %v1653_v62  ;;  %v1840_v50 = vmul.f32 %v4449_v17, %v1808_v8  ;;  %v1686_v33 = vsel %vm1670_vm4, %v1653_v62, %v1669_v60 }
  0xd4   : > { %1927 = vadd.xlane.f32.xlu1 %v1926_v20  ;;  %v4956_v30 = vpop.xlane.xlu1 %456  ;;  %v4958_v45 = vpop.xlane.xlu0 %453  ;;  %v1176_v29 = vsel %vm427_vm1, %v1084_v32, 0.0  ;;  %v1839_v20 = vmul.f32 %v4449_v17, %v1807_v51  ;;  %v4962_v48 = vmax.f32 %v1637_v9, %v1702_v40  ;;  %v1636_v35 = vmax.f32 %v4464_v11, %v1589_v53  ;;  %v6470_v51 = vld [vmem:[#allocation8_spill] sm:$0xff] }
  0xd5   : > { %1924 = vadd.xlane.f32.xlu0 %v1923_v31  ;;  %6466 = vst [vmem:[#allocation29_spill] sm:$0xff] %v4956_v30  ;;  %6467 = vst [vmem:[#allocation30_spill] sm:$0xff] %v4958_v45  ;;  %v563_v8 = vrot.slane %v4737_v43, %v4873_v26  ;;  %v4969_v52 = vmax.f32 %v4823_v47, %v4641_v44  ;;  %v4973_v22 = vmax.f32 %v4832_v2, %v4697_v46  ;;  %v6485_v45 = vld [vmem:[#allocation9_spill] sm:$0xff] }
  0xd6   : > { %6468 = vst [vmem:[#allocation60_spill] sm:$0xff] %v4962_v48  ;;  %v579_v62 = vsel %vm569_vm5, %v578_v54, %v574_v23  ;;  %v4978_v32 = vmax.f32 %v4864_v16, %v4962_v48  ;;  %v4980_v11 = vmax.f32 %v1636_v35, %v1686_v33  ;;  %v4984_v43 = vmax.f32 %v4962_v48, %v6470_v51  ;;  %v3306_v48 = vld [vmem:[%s3474_s10 + $0x50] sm:$0xff] }
  0xd7   : > { %v570_v44 = vsel %vm569_vm5, %v568_v37, %v563_v8  ;;  %v1890_v47 = vsel %vm427_vm1, %v1840_v50, 0.0  ;;  %v1810_v46 = vmax.f32 %v1778_v6, %v4969_v52  ;;  %v1809_v54 = vmax.f32 %v1777_v10, %v4973_v22  ;;  %v6474_v50 = vld [vmem:[#allocation25_spill] sm:$0xff] }
  0xd8   : > { %1180 = vadd.xlane.f32.xlu1 %v1179_v38  ;;  %6469 = vst [vmem:[#allocation61_spill] sm:$0xff] %v4980_v11  ;;  %6471 = vst [vmem:[#allocation8_spill] sm:$0xff] %v4984_v43  ;;  %v4990_v2 = vpop.xlane.xlu1 %498  ;;  %v4992_v23 = vpop.xlane.xlu0 %495  ;;  %v1887_v60 = vsel %vm427_vm1, %v1839_v20, 0.0  ;;  %v1792_v31 = vmax.f32 %v4744_v59, %v4978_v32  ;;  %v4999_v9 = vmax.f32 %v4866_v15, %v4980_v11  ;;  %v3311_v15 = vld [vmem:[%s3474_s10 + $0x48] sm:$0xff] }
  0xd9   : > { %1177 = vadd.xlane.f32.xlu0 %v1176_v29  ;;  %6472 = vst [vmem:[#allocation62_spill] sm:$0xff] %v4990_v2  ;;  %6473 = vst [vmem:[#allocation63_spill] sm:$0xff] %v4992_v23  ;;  %v1842_v37 = vmul.f32 %v4449_v17, %v1810_v46  ;;  %v1841_v40 = vmul.f32 %v4449_v17, %v1809_v54  ;;  %v5005_v6 = vmax.f32 %v4880_v21, %v4984_v43  ;;  %v3301_v46 = vld [vmem:[%s3474_s10] sm:$0xff]  ;;  %v3309_v43 = vld [vmem:[%s3474_s10 + $0x28] sm:$0xff] }
  0xda   : > { %v5008_v10 = vsel %vm706_vm6, %v579_v62, %v570_v44  ;;  %v1822_v38 = vmax.f32 %v4891_v34, %v1792_v31  ;;  %v1791_v59 = vmax.f32 %v4750_v55, %v4999_v9  ;;  %v5015_v53 = vmax.f32 %v4980_v11, %v6474_v50  ;;  %v6484_v2 = vld [vmem:[#allocation7_spill] sm:$0xff] }
  0xdb   : > { %v1896_v29 = vsel %vm427_vm1, %v1842_v37, 0.0  ;;  %v1824_v34 = vmax.f32 %v1792_v31, %v5005_v6  ;;  %v1893_v62 = vsel %vm427_vm1, %v1841_v40, 0.0  ;;  %v2318_v54 = vrot.slane %v3301_v46, 5  ;;  %v3303_v37 = vld [vmem:[%s3474_s10 + $0x20] sm:$0xff] }
  0xdc   : > { %1891 = vadd.xlane.f32.xlu1 %v1890_v47  ;;  %6475 = vst [vmem:[#allocation25_spill] sm:$0xff] %v5015_v53  ;;  %v5023_v20 = vpop.xlane.xlu1 %462  ;;  %v5025_v55 = vpop.xlane.xlu0 %459  ;;  %v1854_v35 = vmul.f32 %v4449_v17, %v1822_v38  ;;  %v1821_v8 = vmax.f32 %v4895_v36, %v1791_v59  ;;  %v5032_v44 = vmax.f32 %v4884_v27, %v5015_v53  ;;  %v2320_v38 = vrot.slane %v3303_v37, 5  ;;  %v3304_v27 = vld [vmem:[%s3474_s10 + $0x30] sm:$0xff]  ;;  %v3307_v53 = vld [vmem:[%s3474_s10 + $0x8] sm:$0xff]  ;;  %v3308_v37 = vld [vmem:[%s3474_s10 + $0x18] sm:$0xff] }
  0xdd   : > { %1888 = vadd.xlane.f32.xlu0 %v1887_v60  ;;  %6476 = vst [vmem:[#allocation64_spill] sm:$0xff] %v5023_v20  ;;  %6477 = vst [vmem:[#allocation65_spill] sm:$0xff] %v5025_v55  ;;  %v1856_v47 = vmul.f32 %v4449_v17, %v1824_v34  ;;  %v3302_v60 = vld [vmem:[%s3474_s10 + $0x10] sm:$0xff]  ;;  %v2321_v21 = vrot.slane %v3304_v27, 5  ;;  %v3305_v34 = vld [vmem:[%s3474_s10 + $0x40] sm:$0xff]  ;;  %v2323_v46 = vrot.slane %v3306_v48, 5 }
  0xde   : > { %v2319_v31 = vrot.slane %v3302_v60, 5  ;;  %v1932_v36 = vsel %vm427_vm1, %v1854_v35, 0.0  ;;  %v1853_v33 = vmul.f32 %v4449_v17, %v1821_v8  ;;  %v1823_v40 = vmax.f32 %v1791_v59, %v5032_v44  ;;  %v3310_v20 = vld [vmem:[%s3474_s10 + $0x38] sm:$0xff] }
  0xdf   : > { %v2322_v11 = vrot.slane %v3305_v34, 5  ;;  %v2334_v60 = vrot.slane %v3307_v53, 5  ;;  %v2335_v55 = vrot.slane %v3308_v37, 5  ;;  %v2337_v34 = vrot.slane %v3310_v20, 5  ;;  %v3312_v53 = vld [vmem:[%s3474_s10 + $0x58] sm:$0xff] }
  0xe0   : > { %1933 = vadd.xlane.f32.xlu1 %v1932_v36  ;;  %v5046_v35 = vpop.xlane.xlu1 %504  ;;  %v5048_v8 = vpop.xlane.xlu0 %501  ;;  %v1929_v59 = vsel %vm427_vm1, %v1853_v33, 0.0  ;;  %v1855_v27 = vmul.f32 %v4449_v17, %v1823_v40  ;;  %v2336_v36 = vrot.slane %v3309_v43, 5  ;;  %v1938_v48 = vsel %vm427_vm1, %v1856_v47, 0.0 }
  0xe1   : > { %6478 = vst [vmem:[#allocation66_spill] sm:$0xff] %v5046_v35  ;;  %6479 = vst [vmem:[#allocation67_spill] sm:$0xff] %v5048_v8  ;;  %1930 = vadd.xlane.f32.xlu0 %v1929_v59  ;;  %v2338_v16 = vrot.slane %v3311_v15, 5  ;;  %v2339_v23 = vrot.slane %v3312_v53, 5  ;;  %v2367_v33 = vsel %vm2350_vm7, %v2334_v60, %v2318_v54  ;;  %v2368_v40 = vsel %vm2350_vm7, %v2335_v55, %v2319_v31  ;;  %v6483_v8 = vld [vmem:[#allocation11_spill] sm:$0xff] }
  0xe2   : > { %v1935_v37 = vsel %vm427_vm1, %v1855_v27, 0.0  ;;  %v2369_v43 = vsel %vm2350_vm7, %v2336_v36, %v2320_v38  ;;  %v2370_v20 = vsel %vm2350_vm7, %v2337_v34, %v2321_v21  ;;  %v5072_v59 = vmax.f32 %v6470_v51, %v2367_v33 }
  0xe3   : > { %v2371_v15 = vsel %vm2350_vm7, %v2338_v16, %v2322_v11  ;;  %v2372_v47 = vsel %vm2350_vm7, %v2339_v23, %v2323_v46  ;;  %v2386_v35 = vmax.f32 %v6483_v8, %v2368_v40  ;;  %v2390_v12 = vmax.f32 %v6485_v45, %v2370_v20 }
  0xe4   : > { %1897 = vadd.xlane.f32.xlu1 %v1896_v29  ;;  %6480 = vst [vmem:[#allocation68_spill] sm:$0xff] %v5072_v59  ;;  %v5074_v27 = vpop.xlane.xlu1 %1090  ;;  %v5076_v53 = vpop.xlane.xlu0 %1087  ;;  %v2388_v29 = vmax.f32 %v6484_v2, %v2369_v43  ;;  %v2392_v13 = vmax.f32 %v6486_v28, %v2371_v15  ;;  %v2394_v5 = vmax.f32 %v6487_v39, %v2372_v47 }
  0xe5   : > { %6481 = vst [vmem:[#allocation69_spill] sm:$0xff] %v5074_v27  ;;  %6482 = vst [vmem:[#allocation70_spill] sm:$0xff] %v5076_v53  ;;  %1894 = vadd.xlane.f32.xlu0 %v1893_v62  ;;  %v2351_v30 = vsel %vm2350_vm7, %v2318_v54, %v2334_v60  ;;  %v2352_v51 = vsel %vm2350_vm7, %v2319_v31, %v2335_v55  ;;  %v2353_v33 = vsel %vm2350_vm7, %v2320_v38, %v2336_v36  ;;  %v6490_v54 = vld [vmem:[#allocation26_spill] sm:$0xff]  ;;  %v6495_v36 = vld [vmem:[#allocation28_spill] sm:$0xff] }
  0xe6   : > { %v5090_v8 = vmax.f32 %v5072_v59, %v2386_v35  ;;  %v2420_v2 = vmax.f32 %v2388_v29, %v2390_v12  ;;  %v2354_v28 = vsel %vm2350_vm7, %v2321_v21, %v2337_v34  ;;  %v2355_v39 = vsel %vm2350_vm7, %v2322_v11, %v2338_v16  ;;  %v6494_v16 = vld [vmem:[#allocation27_spill] sm:$0xff] }
  0xe7   : > { %v5096_v45 = vmax.f32 %v2392_v13, %v2394_v5  ;;  %v2356_v55 = vsel %vm2350_vm7, %v2323_v46, %v2339_v23  ;;  %v5101_v62 = vmax.f32 %v6474_v50, %v2351_v30  ;;  %v2385_v31 = vmax.f32 %v6490_v54, %v2352_v51  ;;  %v6497_v46 = vld [vmem:[#allocation49_spill] sm:$0xff]  ;;  %v6535_v59 = vld [vmem:[#allocation35_spill] sm:$0xff] }
  0xe8   : > { %6488 = vst [vmem:[#allocation11_spill] sm:$0xff] %v5090_v8  ;;  %1939 = vadd.xlane.f32.xlu1 %v1938_v48  ;;  %v5104_v38 = vpop.xlane.xlu1 %1096  ;;  %v5106_v60 = vpop.xlane.xlu0 %1093  ;;  %v5109_v21 = vmax.f32 %v5090_v8, %v2420_v2  ;;  %v2387_v11 = vmax.f32 %v6494_v16, %v2353_v33  ;;  %v2389_v34 = vmax.f32 %v6495_v36, %v2354_v28  ;;  %v6496_v48 = vld [vmem:[#allocation44_spill] sm:$0xff]  ;;  %v3313_v33 = vld [vmem:[%s3474_s10 + $0x60] sm:$0xff]  ;;  %v6533_v8 = vld [vmem:[#allocation31_spill] sm:$0xff] }
  0xe9   : > { %6489 = vst [vmem:[#allocation7_spill] sm:$0xff] %v5101_v62  ;;  %6491 = vst [vmem:[#allocation9_spill] sm:$0xff] %v5104_v38  ;;  %v2391_v23 = vmax.f32 %v6496_v48, %v2355_v39  ;;  %v641_v30 = vrot.slane %v4836_v0, %v4913_v4  ;;  %1936 = vadd.xlane.f32.xlu0 %v1935_v37  ;;  %v5117_v50 = vmax.f32 %v2420_v2, %v5096_v45  ;;  %v3314_v37 = vld [vmem:[%s3474_s10 + $0x68] sm:$0xff] }
  0xea   : > { %6492 = vst [vmem:[#allocation12_spill] sm:$0xff] %v5106_v60  ;;  %6493 = vst [vmem:[#allocation48_spill] sm:$0xff] %v5109_v21  ;;  %v2393_v40 = vmax.f32 %v6497_v46, %v2356_v55  ;;  %v5121_v43 = vmax.f32 %v5101_v62, %v2385_v31  ;;  %v6499_v20 = vrot.slane %v4803_v63, %v4873_v26  ;;  %v2324_v0 = vrot.slane %v3313_v33, 5 }
  0xeb   : > { %v6500_v15 = vrot.slane %v4801_v3, %v4913_v4  ;;  %v2419_v51 = vmax.f32 %v2387_v11, %v2389_v34  ;;  %v2340_v28 = vrot.slane %v3314_v37, 5  ;;  %v2480_v2 = vmax.f32 %v5109_v21, %v5117_v50  ;;  %v6531_v21 = vld [vmem:[#allocation18_spill] sm:$0xff] }
  0xec   : > { %6498 = vst [vmem:[#allocation26_spill] sm:$0xff] %v5121_v43  ;;  %v5134_v39 = vmax.f32 %v2391_v23, %v2393_v40  ;;  %v5136_v55 = vmax.f32 %v2386_v35, %v2388_v29  ;;  %v2422_v54 = vmax.f32 %v2390_v12, %v2392_v13  ;;  %v5138_v16 = vpop.xlane.xlu1 %468  ;;  %v5140_v63 = vpop.xlane.xlu0 %465  ;;  %v637_v3 = vrot.slane %v4838_v24, %v4873_v26 }
  0xed   : > { %v588_v47 = vsel %vm569_vm5, %v6500_v15, %v6499_v20  ;;  %v5145_v36 = vmax.f32 %v5121_v43, %v2419_v51  ;;  %v2373_v48 = vsel %vm2350_vm7, %v2340_v28, %v2324_v0  ;;  %v2357_v46 = vsel %vm2350_vm7, %v2324_v0, %v2340_v28 }
  0xee   : > { %6501 = vst [vmem:[#allocation27_spill] sm:$0xff] %v5136_v55  ;;  %v650_v35 = vrot.slane %v4868_v61, %v4913_v4  ;;  %v2512_v12 = vmul.f32 %v4449_v17, %v2480_v2  ;;  %v5155_v13 = vmax.f32 %v2419_v51, %v5134_v39  ;;  %v5158_v29 = vmax.f32 %v4504_v41, %v2373_v48 }
  0xef   : > { %6502 = vst [vmem:[#allocation28_spill] sm:$0xff] %v5145_v36  ;;  %v646_v24 = vrot.slane %v4870_v25, %v4873_v26  ;;  %v5163_v20 = vmax.f32 %v4509_v56, %v2357_v46  ;;  %v5165_v15 = vmax.f32 %v2385_v31, %v2387_v11  ;;  %v2421_v33 = vmax.f32 %v2389_v34, %v2391_v23 }
  0xf0   : > { %v2546_v0 = vsel %vm427_vm1, %v2512_v12, 0.0  ;;  %v2479_v61 = vmax.f32 %v5145_v36, %v5155_v13  ;;  %v5171_v51 = vmax.f32 %v2394_v5, %v5158_v29  ;;  %v5174_v41 = vmax.f32 %v5136_v55, %v2422_v54  ;;  %v5176_v37 = vpop.xlane.xlu1 %510  ;;  %v5178_v25 = vpop.xlane.xlu0 %507  ;;  %v6532_v55 = vld [vmem:[#allocation19_spill] sm:$0xff] }
  0xf1   : > { %6503 = vst [vmem:[#allocation44_spill] sm:$0xff] %v5165_v15  ;;  %6505 = vst [vmem:[#allocation71_spill] sm:$0xff] %v5176_v37  ;;  %2547 = vadd.xlane.f32.xlu1 %v2546_v0  ;;  %v5181_v56 = vmax.f32 %v2393_v40, %v5163_v20  ;;  %v5184_v31 = vmax.f32 %v5165_v15, %v2421_v33  ;;  %v5188_v11 = vmax.f32 %v4906_v18, %v4645_v7  ;;  %v6534_v37 = vld [vmem:[#allocation32_spill] sm:$0xff] }
  0xf2   : > { %6504 = vst [vmem:[#allocation49_spill] sm:$0xff] %v5174_v41  ;;  %6506 = vst [vmem:[#allocation72_spill] sm:$0xff] %v5178_v25  ;;  %v5192_v5 = vmax.f32 %v4910_v58, %v4701_v42  ;;  %v709_v34 = vsel %vm708_vm8, %v588_v47, %v5008_v10  ;;  %v596_v23 = vrot.slane %v4897_v19, %v4913_v4  ;;  %v6508_v47 = vld [vmem:[#allocation13_spill] sm:$0xff] }
  0xf3   : > { %6507 = vst [vmem:[#allocation73_spill] sm:$0xff] %v5184_v31  ;;  %v2511_v40 = vmul.f32 %v4449_v17, %v2479_v61  ;;  %v5200_v28 = vmax.f32 %v2422_v54, %v5171_v51  ;;  %v592_v2 = vrot.slane %v4899_v57, %v4873_v26  ;;  %v5205_v7 = vmax.f32 %v2421_v33, %v5181_v56 }
  0xf4   : > { %v1812_v42 = vmax.f32 %v4969_v52, %v5188_v11  ;;  %v1811_v18 = vmax.f32 %v4973_v22, %v5192_v5  ;;  %v642_v58 = vsel %vm569_vm5, %v641_v30, %v637_v3  ;;  %v5217_v54 = vmax.f32 %v4978_v32, %v6508_v47  ;;  %v5219_v57 = vpop.xlane.xlu1 %1102  ;;  %v5221_v48 = vpop.xlane.xlu0 %1099  ;;  %v6509_v3 = vld [vmem:[#allocation45_spill] sm:$0xff] }
  0xf5   : > { %v2543_v19 = vsel %vm427_vm1, %v2511_v40, 0.0  ;;  %v2482_v10 = vmax.f32 %v5174_v41, %v5200_v28  ;;  %v651_v52 = vsel %vm569_vm5, %v650_v35, %v646_v24  ;;  %v659_v22 = vrot.slane %v4931_v14, %v4913_v4  ;;  %v6530_v41 = vld [vmem:[#allocation52_spill] sm:$0xff] }
  0xf6   : > { %2544 = vadd.xlane.f32.xlu0 %v2543_v19  ;;  %v2481_v30 = vmax.f32 %v5184_v31, %v5205_v7  ;;  %v5230_v46 = vmax.f32 %v4999_v9, %v6509_v3  ;;  %v655_v32 = vrot.slane %v4933_v49, %v4873_v26  ;;  %v1844_v33 = vmul.f32 %v4449_v17, %v1812_v42  ;;  %v6511_v19 = vld [vmem:[#allocation33_spill] sm:$0xff] }
  0xf7   : > { %v2514_v12 = vmul.f32 %v4449_v17, %v2482_v10  ;;  %v1826_v35 = vmax.f32 %v5005_v6, %v5217_v54  ;;  %v597_v14 = vsel %vm569_vm5, %v596_v23, %v592_v2  ;;  %v1843_v0 = vmul.f32 %v4449_v17, %v1811_v18  ;;  %v6510_v23 = vld [vmem:[#allocation29_spill] sm:$0xff]  ;;  %v6512_v10 = vld [vmem:[#allocation14_spill] sm:$0xff]  ;;  %v6517_v2 = vld [vmem:[#allocation15_spill] sm:$0xff] }
  0xf8   : > { %v2513_v24 = vmul.f32 %v4449_v17, %v2481_v30  ;;  %v5242_v9 = vsel %vm706_vm6, %v651_v52, %v642_v58  ;;  %v1825_v40 = vmax.f32 %v5032_v44, %v5230_v46  ;;  %v5248_v42 = vpop.xlane.xlu1 %1138  ;;  %v5250_v6 = vpop.xlane.xlu0 %1135  ;;  %v2325_v58 = vrot.slane %v6511_v19, 5  ;;  %v6516_v19 = vld [vmem:[#allocation41_spill] sm:$0xff] }
  0xf9   : > { %v2552_v61 = vsel %vm427_vm1, %v2514_v12, 0.0  ;;  %v1858_v49 = vmul.f32 %v4449_v17, %v1826_v35  ;;  %v2341_v47 = vrot.slane %v6512_v10, 5  ;;  %v5258_v52 = vsel %vm710_vm9, %v597_v14, %v709_v34  ;;  %v6513_v34 = vld [vmem:[#allocation54_spill] sm:$0xff] }
  0xfa   : > { %2553 = vadd.xlane.f32.xlu1 %v2552_v61  ;;  %v2549_v18 = vsel %vm427_vm1, %v2513_v24, 0.0  ;;  %v5261_v30 = vsel %vm569_vm5, %v659_v22, %v655_v32  ;;  %v1902_v44 = vsel %vm427_vm1, %v1844_v33, 0.0  ;;  %v1857_v3 = vmul.f32 %v4449_v17, %v1825_v40  ;;  %v6514_v22 = vld [vmem:[#allocation55_spill] sm:$0xff] }
  0xfb   : > { %2550 = vadd.xlane.f32.xlu0 %v2549_v18  ;;  %v1899_v12 = vsel %vm427_vm1, %v1843_v0, 0.0  ;;  %v1944_v35 = vsel %vm427_vm1, %v1858_v49, 0.0  ;;  %v2374_v24 = vsel %vm2350_vm7, %v2341_v47, %v2325_v58  ;;  %v2358_v61 = vsel %vm2350_vm7, %v2325_v58, %v2341_v47  ;;  %v6515_v18 = vld [vmem:[#allocation22_spill] sm:$0xff]  ;;  %v6518_v58 = vld [vmem:[#allocation37_spill] sm:$0xff] }
  0xfc   : > { %v5272_v14 = vmax.f32 %v6513_v34, %v2374_v24  ;;  %v5275_v32 = vmax.f32 %v6514_v22, %v2358_v61  ;;  %v2326_v33 = vrot.slane %v6515_v18, 5  ;;  %v2327_v40 = vrot.slane %v6516_v19, 5  ;;  %v5279_v10 = vpop.xlane.xlu1 %1144  ;;  %v5281_v0 = vpop.xlane.xlu0 %1141  ;;  %v6519_v24 = vld [vmem:[#allocation6_spill] sm:$0xff]  ;;  %v6522_v18 = vld [vmem:[#allocation51_spill] sm:$0xff] }
  0xfd   : > { %v1941_v49 = vsel %vm427_vm1, %v1857_v3, 0.0  ;;  %v2328_v53 = vrot.slane %v6517_v2, 5  ;;  %v2329_v47 = vrot.slane %v6518_v58, 5  ;;  %v2330_v34 = vrot.slane %v6519_v24, 5  ;;  %v6524_v3 = vld [vmem:[#allocation43_spill] sm:$0xff]  ;;  %v6525_v2 = vld [vmem:[#allocation20_spill] sm:$0xff] }
  0xfe   : > { %1903 = vadd.xlane.f32.xlu1 %v1902_v44  ;;  %v5289_v61 = vmax.f32 %v5158_v29, %v5272_v14  ;;  %v5293_v22 = vmax.f32 %v5163_v20, %v5275_v32  ;;  %v2331_v19 = vrot.slane %v6522_v18, 5  ;;  %v6523_v44 = vld [vmem:[#allocation42_spill] sm:$0xff]  ;;  %v2343_v60 = vrot.slane %v6524_v3, 5 }
  0xff   : > { %1900 = vadd.xlane.f32.xlu0 %v1899_v12  ;;  %v2342_v27 = vrot.slane %v6523_v44, 5  ;;  %v2344_v38 = vrot.slane %v6525_v2, 5  ;;  %v6526_v58 = vld [vmem:[#allocation10_spill] sm:$0xff]  ;;  %v2347_v18 = vrot.slane %v6530_v41, 5 }
 0x100   : > { %6520 = vst [vmem:[#allocation13_spill] sm:$0xff] %v5289_v61  ;;  %6521 = vst [vmem:[#allocation45_spill] sm:$0xff] %v5293_v22  ;;  %v2345_v31 = vrot.slane %v6526_v58, 5  ;;  %v6527_v24 = vld [vmem:[#allocation38_spill] sm:$0xff]  ;;  %v5303_v29 = vmax.f32 %v5096_v45, %v5289_v61  ;;  %v5307_v20 = vmax.f32 %v5134_v39, %v5293_v22  ;;  %v5312_v3 = vpop.xlane.xlu1 %474  ;;  %v5314_v2 = vpop.xlane.xlu0 %471  ;;  %v2376_v58 = vsel %vm2350_vm7, %v2343_v60, %v2327_v40 }
 0x101   : > { %v2346_v12 = vrot.slane %v6527_v24, 5  ;;  %v2375_v44 = vsel %vm2350_vm7, %v2342_v27, %v2326_v33  ;;  %v2377_v45 = vsel %vm2350_vm7, %v2344_v38, %v2328_v53  ;;  %v2402_v43 = vmax.f32 %v6532_v55, %v2376_v58 }
 0x102   : > { %6528 = vst [vmem:[#allocation29_spill] sm:$0xff] %v5303_v29  ;;  %6529 = vst [vmem:[#allocation33_spill] sm:$0xff] %v5307_v20  ;;  %1945 = vadd.xlane.f32.xlu1 %v1944_v35  ;;  %v2378_v39 = vsel %vm2350_vm7, %v2345_v31, %v2329_v47  ;;  %v2484_v24 = vmax.f32 %v5117_v50, %v5303_v29  ;;  %v2483_v36 = vmax.f32 %v5155_v13, %v5307_v20  ;;  %v6536_v29 = vld [vmem:[#allocation39_spill] sm:$0xff] }
 0x103   : > { %v2379_v41 = vsel %vm2350_vm7, %v2346_v12, %v2330_v34  ;;  %1942 = vadd.xlane.f32.xlu0 %v1941_v49  ;;  %v2380_v35 = vsel %vm2350_vm7, %v2347_v18, %v2331_v19  ;;  %v5331_v15 = vmax.f32 %v6531_v21, %v2375_v44  ;;  %v2404_v25 = vmax.f32 %v6533_v8, %v2377_v45  ;;  %v6539_v44 = vld [vmem:[#allocation34_spill] sm:$0xff]  ;;  %v6541_v45 = vld [vmem:[#allocation36_spill] sm:$0xff] }
 0x104   : > { %v2406_v62 = vmax.f32 %v6534_v37, %v2378_v39  ;;  %v2408_v49 = vmax.f32 %v6535_v59, %v2379_v41  ;;  %v2516_v22 = vmul.f32 %v4449_v17, %v2484_v24  ;;  %v2515_v50 = vmul.f32 %v4449_v17, %v2483_v36  ;;  %v5342_v61 = vpop.xlane.xlu1 %516  ;;  %v5344_v21 = vpop.xlane.xlu0 %513 }
 0x105   : > { %v2410_v13 = vmax.f32 %v6536_v29, %v2380_v35  ;;  %v2359_v20 = vsel %vm2350_vm7, %v2326_v33, %v2342_v27  ;;  %v5347_v55 = vmax.f32 %v5331_v15, %v2402_v43  ;;  %v2360_v59 = vsel %vm2350_vm7, %v2327_v40, %v2343_v60  ;;  %v6546_v35 = vld [vmem:[#allocation50_spill] sm:$0xff] }
 0x106   : > { %v2436_v8 = vmax.f32 %v2404_v25, %v2406_v62  ;;  %v2361_v37 = vsel %vm2350_vm7, %v2328_v53, %v2344_v38  ;;  %v2558_v17 = vsel %vm427_vm1, %v2516_v22, 0.0  ;;  %v2555_v36 = vsel %vm427_vm1, %v2515_v50, 0.0  ;;  %v6538_v38 = vld [vmem:[#allocation56_spill] sm:$0xff] }
 0x107   : > { %v5355_v29 = vmax.f32 %v2408_v49, %v2410_v13  ;;  %v2362_v27 = vsel %vm2350_vm7, %v2329_v47, %v2345_v31  ;;  %2559 = vadd.xlane.f32.xlu1 %v2558_v17  ;;  %2556 = vadd.xlane.f32.xlu0 %v2555_v36  ;;  %v2363_v60 = vsel %vm2350_vm7, %v2330_v34, %v2346_v12  ;;  %v2332_v40 = vrot.slane %v6538_v38, 5  ;;  %v6540_v31 = vld [vmem:[#allocation17_spill] sm:$0xff]  ;;  %v6544_v34 = vld [vmem:[#allocation30_spill] sm:$0xff] }
 0x108   : > { %v5360_v33 = vmax.f32 %v5347_v55, %v2436_v8  ;;  %v2364_v53 = vsel %vm2350_vm7, %v2331_v19, %v2347_v18  ;;  %v5371_v58 = vmax.f32 %v6539_v44, %v2359_v20  ;;  %v2401_v47 = vmax.f32 %v6540_v31, %v2360_v59  ;;  %v5375_v41 = vpop.xlane.xlu1 %1108  ;;  %v5377_v24 = vpop.xlane.xlu0 %1105  ;;  %v6545_v19 = vld [vmem:[#allocation21_spill] sm:$0xff]  ;;  %v6548_v20 = vld [vmem:[#allocation62_spill] sm:$0xff] }
 0x109   : > { %v5368_v22 = vmax.f32 %v2436_v8, %v5355_v29  ;;  %v2403_v39 = vmax.f32 %v6541_v45, %v2361_v37  ;;  %6542 = vst [vmem:[#allocation54_spill] sm:$0xff] %v5375_v41  ;;  %6543 = vst [vmem:[#allocation55_spill] sm:$0xff] %v5377_v24  ;;  %v601_v12 = vrot.slane %v6544_v34, %v4873_v26  ;;  %v6547_v8 = vld [vmem:[#allocation40_spill] sm:$0xff]  ;;  %v6549_v38 = vld [vmem:[#allocation57_spill] sm:$0xff] }
 0x10a   : > { %6537 = vst [vmem:[#allocation14_spill] sm:$0xff] %v5360_v33  ;;  %v2405_v18 = vmax.f32 %v6545_v19, %v2362_v27  ;;  %v2407_v50 = vmax.f32 %v6546_v35, %v2363_v60  ;;  %v2409_v17 = vmax.f32 %v6547_v8, %v2364_v53  ;;  %v668_v36 = vrot.slane %v6548_v20, %v4913_v4  ;;  %v5399_v60 = vld [vmem:[%s6164_s1] ss:$0 sm:$0xff]  ;;  %v6561_v41 = vld [vmem:[#allocation23_spill] sm:$0xff] }
 0x10b   : > { %v2496_v59 = vmax.f32 %v5360_v33, %v5368_v22  ;;  %v5389_v37 = vmax.f32 %v5371_v58, %v2401_v47  ;;  %v2348_v44 = vrot.slane %v6549_v38, 5  ;;  %v5394_v34 = vmax.f32 %v2402_v43, %v2404_v25  ;;  %v6554_v38 = vld [vmem:[#allocation58_spill] sm:$0xff] }
 0x10c   : > { %v2435_v31 = vmax.f32 %v2403_v39, %v2405_v18  ;;  %v5392_v45 = vmax.f32 %v2407_v50, %v2409_v17  ;;  %v2438_v27 = vmax.f32 %v2406_v62, %v2408_v49  ;;  %v5406_v8 = vmax.f32 %v2401_v47, %v2403_v39  ;;  %v5408_v20 = vpop.xlane.xlu1 %1150  ;;  %v5410_v43 = vpop.xlane.xlu0 %1147  ;;  %v6552_v62 = vld [vmem:[#allocation63_spill] sm:$0xff] }
 0x10d   : > { %v2528_v53 = vmul.f32 %v5399_v60, %v2496_v59  ;;  %v2381_v19 = vsel %vm2350_vm7, %v2348_v44, %v2332_v40  ;;  %v2365_v35 = vsel %vm2350_vm7, %v2332_v40, %v2348_v44  ;;  %6550 = vst [vmem:[#allocation22_spill] sm:$0xff] %v5408_v20  ;;  %6551 = vst [vmem:[#allocation41_spill] sm:$0xff] %v5410_v43  ;;  %v6555_v39 = vld [vmem:[#allocation59_spill] sm:$0xff] }
 0x10e   : > { %v664_v25 = vrot.slane %v6552_v62, %v4873_v26  ;;  %v5415_v49 = vmax.f32 %v5389_v37, %v2435_v31  ;;  %v5418_v59 = vmax.f32 %v2435_v31, %v5392_v45  ;;  %v5421_v24 = vmax.f32 %v6554_v38, %v2381_v19 }
 0x10f   : > { %v5426_v40 = vsel %vm708_vm8, %v5261_v30, %v5242_v9  ;;  %v2594_v47 = vsel %vm427_vm1, %v2528_v53, 0.0  ;;  %v5430_v44 = vmax.f32 %v6555_v39, %v2365_v35  ;;  %v2437_v62 = vmax.f32 %v2405_v18, %v2407_v50 }
 0x110   : > { %6553 = vst [vmem:[#allocation15_spill] sm:$0xff] %v5415_v49  ;;  %v6556_v43 = vrot.slane %v6510_v23, %v4913_v4  ;;  %2595 = vadd.xlane.f32.xlu1 %v2594_v47  ;;  %v2495_v19 = vmax.f32 %v5415_v49, %v5418_v59  ;;  %v5441_v38 = vmax.f32 %v2410_v13, %v5421_v24  ;;  %v6558_v23 = vld [vmem:[#allocation16_spill] sm:$0xff]  ;;  %v5456_v53 = vpop.xlane.xlu1 %522  ;;  %v5458_v35 = vpop.xlane.xlu0 %519  ;;  %v6559_v47 = vld [vmem:[#allocation53_spill] sm:$0xff] }
 0x111   : > { %v5444_v9 = vmax.f32 %v5394_v34, %v2438_v27  ;;  %v5447_v30 = vmax.f32 %v2409_v17, %v5430_v44  ;;  %v5450_v18 = vmax.f32 %v5406_v8, %v2437_v62  ;;  %v1242_v50 = vrot.slane %v5219_v57, %v4913_v4 }
 0x112   : > { %v5436_v31 = vsel %vm569_vm5, %v6556_v43, %v601_v12  ;;  %v1814_v12 = vmax.f32 %v5188_v11, %v6558_v23  ;;  %v5461_v13 = vsel %vm569_vm5, %v668_v36, %v664_v25  ;;  %v2527_v43 = vmul.f32 %v5399_v60, %v2495_v19  ;;  %v6560_v11 = vld [vmem:[#allocation64_spill] sm:$0xff]  ;;  %v6563_v19 = vld [vmem:[#allocation65_spill] sm:$0xff] }
 0x113   : > { %6557 = vst [vmem:[#allocation37_spill] sm:$0xff] %v5444_v9  ;;  %v5465_v17 = vmax.f32 %v2438_v27, %v5441_v38  ;;  %v1813_v39 = vmax.f32 %v5192_v5, %v6559_v47  ;;  %v614_v23 = vrot.slane %v6560_v11, %v4913_v4  ;;  %v5472_v57 = vmax.f32 %v2437_v62, %v5447_v30  ;;  %v6562_v36 = vld [vmem:[#allocation8_spill] sm:$0xff]  ;;  %v6564_v47 = vld [vmem:[#allocation46_spill] sm:$0xff]  ;;  %v6565_v11 = vld [vmem:[#allocation25_spill] sm:$0xff] }
 0x114   : > { %v1238_v20 = vrot.slane %v5221_v48, %v4873_v26  ;;  %v5478_v25 = vmax.f32 %v6562_v36, %v6561_v41  ;;  %v610_v27 = vrot.slane %v6563_v19, %v4873_v26  ;;  %v2591_v49 = vsel %vm427_vm1, %v2527_v43, 0.0  ;;  %v5497_v43 = vpop.xlane.xlu1 %1114  ;;  %v5499_v19 = vpop.xlane.xlu0 %1111 }
 0x115   : > { %v2498_v5 = vmax.f32 %v5444_v9, %v5465_v17  ;;  %v5487_v33 = vmax.f32 %v6565_v11, %v6564_v47  ;;  %2592 = vadd.xlane.f32.xlu0 %v2591_v49  ;;  %v2497_v41 = vmax.f32 %v5450_v18, %v5472_v57  ;;  %v1846_v62 = vmul.f32 %v5399_v60, %v1814_v12 }
 0x116   : > { %v5495_v36 = vsel %vm569_vm5, %v1242_v50, %v1238_v20  ;;  %v1845_v47 = vmul.f32 %v5399_v60, %v1813_v39  ;;  %v1828_v49 = vmax.f32 %v5217_v54, %v5478_v25  ;;  %v1296_v11 = vrot.slane %v5248_v42, %v4913_v4 }
 0x117   : > { %v2530_v9 = vmul.f32 %v5399_v60, %v2498_v5  ;;  %v2529_v48 = vmul.f32 %v5399_v60, %v2497_v41  ;;  %v1827_v20 = vmax.f32 %v5230_v46, %v5487_v33  ;;  %v1292_v12 = vrot.slane %v5250_v6, %v4873_v26 }
 0x118   : > { %v5514_v50 = vmax.f32 %v5272_v14, %v5331_v15  ;;  %v619_v39 = vrot.slane %v5140_v63, %v4873_v26  ;;  %v5521_v42 = vmax.f32 %v5275_v32, %v5371_v58  ;;  %v1305_v46 = vrot.slane %v5279_v10, %v4913_v4  ;;  %v5534_v5 = vpop.xlane.xlu0 %1153 }
 0x119   : > { %v2600_v54 = vsel %vm427_vm1, %v2530_v9, 0.0  ;;  %v2597_v6 = vsel %vm427_vm1, %v2529_v48, 0.0  ;;  %v1908_v15 = vsel %vm427_vm1, %v1846_v62, 0.0  ;;  %v1297_v14 = vsel %vm569_vm5, %v1296_v11, %v1292_v12  ;;  %v5532_v9 = vpop.xlane.xlu1 %1156  ;;  %v3316_v48 = vld [vmem:[%s3474_s10 + $0xf0] sm:$0xff]  ;;  %v3317_v12 = vld [vmem:[%s3474_s10 + $0xf8] sm:$0xff]  ;;  %s3324_s10 = scalar_lea.vmem %s3323_s9, 2048 }
 0x11a   : > { %2601 = vadd.xlane.f32.xlu1 %v2600_v54  ;;  %v5530_v63 = vmax.f32 %v5171_v51, %v5514_v50  ;;  %2598 = vadd.xlane.f32.xlu0 %v2597_v6  ;;  %v1860_v32 = vmul.f32 %v5399_v60, %v1828_v49  ;;  %v5539_v10 = vmax.f32 %v5181_v56, %v5521_v42  ;;  %v2333_v41 = vrot.slane %v3316_v48, 5  ;;  %p3326_p1 = scmp.lt.s32.totalorder %s3324_s10, %s3318_s7 }
 0x11b   : > { %v1301_v58 = vrot.slane %v5281_v0, %v4873_v26  ;;  %v1905_v62 = vsel %vm427_vm1, %v1845_v47, 0.0  ;;  %v1859_v51 = vmul.f32 %v5399_v60, %v1827_v20  ;;  %v2349_v54 = vrot.slane %v3317_v12, 5 }
 0x11c   : > { %v2486_v11 = vmax.f32 %v5200_v28, %v5530_v63  ;;  %v2485_v49 = vmax.f32 %v5205_v7, %v5539_v10  ;;  %v632_v6 = vrot.slane %v5312_v3, %v4913_v4  ;;  %v628_v0 = vrot.slane %v5314_v2, %v4873_v26  ;;  %p3327_p2 = por %p3326_p1, %p3325_p0 }
 0x11d   : > { %v1306_v56 = vsel %vm569_vm5, %v1305_v46, %v1301_v58  ;;  %v2382_v28 = vsel %vm2350_vm7, %v2349_v54, %v2333_v41  ;;  %v2366_v7 = vsel %vm2350_vm7, %v2333_v41, %v2349_v54  ;;  %v5564_v48 = vpop.xlane.xlu1 %1120  ;;  %v5566_v46 = vpop.xlane.xlu0 %1117  ;;  %v1950_v3 = vsel %vm427_vm1, %v1860_v32, 0.0  ;;  %v6570_v32 = vld [vmem:[#allocation24_spill] sm:$0xff] }
 0x11e   : > { %1909 = vadd.xlane.f32.xlu1 %v1908_v15  ;;  %v2518_v47 = vmul.f32 %v5399_v60, %v2486_v11  ;;  %v5558_v20 = vsel %vm706_vm6, %v1306_v56, %v1297_v14  ;;  %1906 = vadd.xlane.f32.xlu0 %v1905_v62  ;;  %v2517_v2 = vmul.f32 %v5399_v60, %v2485_v49  ;;  %v6567_v15 = vld [vmem:[#allocation60_spill] sm:$0xff]  ;;  %v6568_v11 = vld [vmem:[#allocation61_spill] sm:$0xff]  ;;  %v6569_v56 = vld [vmem:[#allocation66_spill] sm:$0xff]  ;;  %v1947_v1 = vsel %vm427_vm1, %v1859_v51, 0.0  ;;  %p3328_p3 = pnand %p3327_p2, %p3321_p13 }
 0x11f   : > { %6566 = vst [vmem:[#allocation6_spill] sm:$0xff] %v5558_v20  ;;  %v2414_v58 = vmax.f32 %v6567_v15, %v2382_v28  ;;  %v2413_v14 = vmax.f32 %v6568_v11, %v2366_v7  ;;  %v615_v12 = vsel %vm569_vm5, %v614_v23, %v610_v27  ;;  %v677_v20 = vrot.slane %v6569_v56, %v4913_v4  ;;  %v6571_v49 = vld [vmem:[#allocation47_spill] sm:$0xff]  ;;  %v6574_v15 = vld [vmem:[#allocation45_spill] sm:$0xff] }
 0x120   : > { %v1830_v54 = vmax.f32 %v5478_v25, %v6570_v32  ;;  %v1829_v28 = vmax.f32 %v5487_v33, %v6571_v49  ;;  %v2564_v23 = vsel %vm427_vm1, %v2518_v47, 0.0  ;;  %v2561_v27 = vsel %vm427_vm1, %v2517_v2, 0.0  ;;  %v6576_v32 = vld [vmem:[#allocation67_spill] sm:$0xff]  ;;  %v6577_v49 = vld [vmem:[#allocation33_spill] sm:$0xff] }
 0x121   : > { %v5577_v41 = vmax.f32 %v5421_v24, %v2414_v58  ;;  %v5580_v62 = vmax.f32 %v5430_v44, %v2413_v14  ;;  %v6572_v51 = vrot.slane %v5138_v16, %v4913_v4  ;;  %v633_v7 = vsel %vm569_vm5, %v632_v6, %v628_v0  ;;  %v5593_v44 = vpop.xlane.xlu1 %1162  ;;  %v5606_v16 = vpop.xlane.xlu0 %1159  ;;  %v6573_v0 = vld [vmem:[#allocation13_spill] sm:$0xff] }
 0x122   : > { %1951 = vadd.xlane.f32.xlu1 %v1950_v3  ;;  %1948 = vadd.xlane.f32.xlu0 %v1947_v1  ;;  %v713_v47 = vsel %vm712_vm10, %v5436_v31, %v5258_v52  ;;  %v5616_v3 = vmax.f32 %v6573_v0, %v5347_v55  ;;  %v1862_v52 = vmul.f32 %v5399_v60, %v1830_v54  ;;  %v6575_v55 = vld [vmem:[#allocation29_spill] sm:$0xff] }
 0x123   : > { %v624_v24 = vsel %vm569_vm5, %v6572_v51, %v619_v39  ;;  %v5597_v25 = vmax.f32 %v5355_v29, %v5577_v41  ;;  %v5601_v33 = vmax.f32 %v5392_v45, %v5580_v62  ;;  %v715_v39 = vsel %vm714_vm11, %v615_v12, %v713_v47  ;;  %v6581_v47 = vld [vmem:[#allocation72_spill] sm:$0xff] }
 0x124   : > { %v717_v45 = vsel %vm716_vm12, %v624_v24, %v715_v39  ;;  %v1861_v31 = vmul.f32 %v5399_v60, %v1829_v28  ;;  %v5623_v11 = vmax.f32 %v6574_v15, %v5389_v37  ;;  %v2488_v12 = vmax.f32 %v6575_v55, %v5616_v3  ;;  %v6578_v37 = vld [vmem:[#allocation68_spill] sm:$0xff]  ;;  %v6580_v24 = vld [vmem:[#allocation71_spill] sm:$0xff] }
 0x125   : > { %v2500_v29 = vmax.f32 %v5368_v22, %v5597_v25  ;;  %v2499_v6 = vmax.f32 %v5418_v59, %v5601_v33  ;;  %v719_v2 = vsel %vm718_vm13, %v633_v7, %v717_v45  ;;  %v5630_v1 = vpop.xlane.xlu1 %1867  ;;  %v673_v54 = vrot.slane %v6576_v32, %v4873_v26 }
 0x126   : > { %2565 = vadd.xlane.f32.xlu1 %v2564_v23  ;;  %2562 = vadd.xlane.f32.xlu0 %v2561_v27  ;;  %v2487_v28 = vmax.f32 %v6577_v49, %v5623_v11  ;;  %v5637_v23 = vmax.f32 %v2414_v58, %v6578_v37  ;;  %v6579_v27 = vld [vmem:[#allocation7_spill] sm:$0xff]  ;;  %v686_v7 = vrot.slane %v6580_v24, %v4913_v4  ;;  %v1956_v15 = vsel %vm427_vm1, %v1862_v52, 0.0  ;;  %v6583_v37 = vld [vmem:[#allocation26_spill] sm:$0xff] }
 0x127   : > { %v2532_v22 = vmul.f32 %v5399_v60, %v2500_v29  ;;  %v2531_v59 = vmul.f32 %v5399_v60, %v2499_v6  ;;  %3159 = vmatprep.mubr.msk.f32.mxu0 %vm727_vm14, %v719_v2  ;;  %v5640_v51 = vmax.f32 %v2413_v14, %v6579_v27  ;;  %v682_v39 = vrot.slane %v6581_v47, %v4873_v26  ;;  %v5648_v45 = vpop.xlane.xlu0 %1864  ;;  %v6582_v49 = vld [vmem:[#allocation11_spill] sm:$0xff] }
 0x128   : > { %v695_v58 = vrot.slane %v5342_v61, %v4913_v4  ;;  %v691_v14 = vrot.slane %v5344_v21, %v4873_v26  ;;  %v5656_v0 = vmax.f32 %v5441_v38, %v5637_v23  ;;  %v5667_v61 = vmax.f32 %v5514_v50, %v5394_v34  ;;  %v524_v21 = vld [vmem:[%s6166_s3] sm:$0xff]  ;;  %v525_v38 = vld [vmem:[%s6166_s3 + $0x8] sm:$0xff] }
 0x129   : > { %v2606_v29 = vsel %vm427_vm1, %v2532_v22, 0.0  ;;  %v2603_v6 = vsel %vm427_vm1, %v2531_v59, 0.0  ;;  %v5660_v2 = vmax.f32 %v5447_v30, %v5640_v51  ;;  %v1953_v22 = vsel %vm427_vm1, %v1861_v31, 0.0 }
 0x12a   : > { %2607 = vadd.xlane.f32.xlu1 %v2606_v29  ;;  %2604 = vadd.xlane.f32.xlu0 %v2603_v6  ;;  %v2520_v59 = vmul.f32 %v5399_v60, %v2488_v12  ;;  %v2519_v30 = vmul.f32 %v5399_v60, %v2487_v28  ;;  %v2502_v52 = vmax.f32 %v5465_v17, %v5656_v0 }
 0x12b   : > { %v2501_v31 = vmax.f32 %v5472_v57, %v5660_v2  ;;  %v5682_v34 = vmax.f32 %v5521_v42, %v5406_v8  ;;  %v722_v50 = vsel %vm710_vm9, %v5461_v13, %v5426_v40  ;;  %v704_v55 = vrot.slane %v5456_v53, %v4913_v4 }
 0x12c   : > { %v700_v12 = vrot.slane %v5458_v35, %v4873_v26  ;;  %v5691_v32 = vpop.xlane.xlu1 %1873  ;;  %v678_v17 = vsel %vm569_vm5, %v677_v20, %v673_v54  ;;  %v687_v8 = vsel %vm569_vm5, %v686_v7, %v682_v39  ;;  %v696_v57 = vsel %vm569_vm5, %v695_v58, %v691_v14 }
 0x12d   : > { %v3211_v42 = vpack.c.bf16 %v525_v38, %v524_v21  ;;  %v5699_v40 = vpop.xlane.xlu0 %1870  ;;  %v2570_v53 = vsel %vm427_vm1, %v2520_v59, 0.0  ;;  %v2534_v35 = vmul.f32 %v5399_v60, %v2502_v52  ;;  %v2490_v13 = vmax.f32 %v5530_v63, %v5667_v61  ;;  %v6584_v59 = vld [vmem:[#allocation14_spill] sm:$0xff]  ;;  %v6585_v38 = vld [vmem:[#allocation27_spill] sm:$0xff] }
 0x12e   : > { %1957 = vadd.xlane.f32.xlu1 %v1956_v15  ;;  %1954 = vadd.xlane.f32.xlu0 %v1953_v22  ;;  %v5707_v56 = vmax.f32 %v5577_v41, %v6582_v49  ;;  %v2567_v20 = vsel %vm427_vm1, %v2519_v30, 0.0  ;;  %v2533_v54 = vmul.f32 %v5399_v60, %v2501_v31  ;;  %v2489_v28 = vmax.f32 %v5539_v10, %v5682_v34  ;;  %v6586_v31 = vld [vmem:[#allocation15_spill] sm:$0xff] }
 0x12f   : > { %3212 = vmatprep.subr.bf16.mxu0 %v3211_v42  ;;  %v5715_v27 = vmax.f32 %v5580_v62, %v6583_v37  ;;  %v723_v24 = vsel %vm712_vm10, %v678_v17, %v722_v50  ;;  %v705_v63 = vsel %vm569_vm5, %v704_v55, %v700_v12  ;;  %v2612_v47 = vsel %vm427_vm1, %v2534_v35, 0.0  ;;  %v6587_v55 = vld [vmem:[#allocation44_spill] sm:$0xff] }
 0x130   : > { %3214 = vmatpush3.bf16.msra.mxu0 %v3211_v42  ;;  %v724_v41 = vsel %vm714_vm11, %v687_v8, %v723_v24  ;;  %v5720_v7 = vpop.xlane.xlu1 %1126  ;;  %v2522_v10 = vmul.f32 %v5399_v60, %v2490_v13  ;;  %v2504_v39 = vmax.f32 %v5597_v25, %v5707_v56  ;;  %v2609_v6 = vsel %vm427_vm1, %v2533_v54, 0.0  ;;  %v6588_v13 = vld [vmem:[#allocation37_spill] sm:$0xff] }
 0x131   : > { %v725_v62 = vsel %vm716_vm12, %v696_v57, %v724_v41  ;;  %v5727_v29 = vpop.xlane.xlu0 %1123  ;;  %v2521_v58 = vmul.f32 %v5399_v60, %v2489_v28  ;;  %v2503_v14 = vmax.f32 %v5601_v33, %v5715_v27  ;;  %v2492_v21 = vmax.f32 %v5616_v3, %v6584_v59  ;;  %v3096_v41 = vld [vmem:[%s6166_s3 + $0x20] sm:$0xff]  ;;  %v6590_v59 = vld [vmem:[#allocation28_spill] sm:$0xff] }
 0x132   : > { %2571 = vadd.xlane.f32.xlu1 %v2570_v53  ;;  %2568 = vadd.xlane.f32.xlu0 %v2567_v20  ;;  %v726_v15 = vsel %vm718_vm13, %v705_v63, %v725_v62  ;;  %v2576_v22 = vsel %vm427_vm1, %v2522_v10, 0.0  ;;  %v2536_v25 = vmul.f32 %v5399_v60, %v2504_v39  ;;  %v5741_v30 = vmax.f32 %v5637_v23, %v6585_v38  ;;  %v3087_v63 = vld [vmem:[%s6166_s3 + $0x18] sm:$0xff] }
 0x133   : > { %3160 = vmatmul.mubr.msk.f32.vlgmr.msra.gmra.mrb[0].mxu0 %vm727_vm14, %v726_v15  ;;  %v2573_v52 = vsel %vm427_vm1, %v2521_v58, 0.0  ;;  %v2535_v33 = vmul.f32 %v5399_v60, %v2503_v14  ;;  %v2491_v50 = vmax.f32 %v5623_v11, %v6586_v31  ;;  %v5749_v12 = vmax.f32 %v5640_v51, %v6587_v55  ;;  %v6591_v31 = vld [vmem:[#allocation49_spill] sm:$0xff] }
 0x134   : > { %v5751_v17 = vpop.xlane.xlu1 %1168  ;;  %v2618_v3 = vsel %vm427_vm1, %v2536_v25, 0.0  ;;  %v2524_v23 = vmul.f32 %v5399_v60, %v2492_v21  ;;  %v2506_v57 = vmax.f32 %v5656_v0, %v5741_v30  ;;  %v2001_v53 = vrot.slane %v5630_v1, %v4913_v4 }
 0x135   : > { %v5753_v8 = vpop.xlane.xlu0 %1165  ;;  %v2615_v42 = vsel %vm427_vm1, %v2535_v33, 0.0  ;;  %v2523_v11 = vmul.f32 %v5399_v60, %v2491_v50  ;;  %v2505_v51 = vmax.f32 %v5660_v2, %v5749_v12  ;;  %v1997_v35 = vrot.slane %v5648_v45, %v4873_v26  ;;  %v3086_v45 = vld [vmem:[%s6166_s3 + $0x10] sm:$0xff] }
 0x136   : > { %2613 = vadd.xlane.f32.xlu1 %v2612_v47  ;;  %2610 = vadd.xlane.f32.xlu0 %v2609_v6  ;;  %v2494_v49 = vmax.f32 %v5667_v61, %v6588_v13  ;;  %v2010_v0 = vrot.slane %v5691_v32, %v4913_v4  ;;  %v2006_v20 = vrot.slane %v5699_v40, %v4873_v26  ;;  %v2582_v2 = vsel %vm427_vm1, %v2524_v23, 0.0  ;;  %v3097_v47 = vld [vmem:[%s6166_s3 + $0x28] sm:$0xff]  ;;  %v6589_v6 = vld [vmem:[#allocation48_spill] sm:$0xff] }
 0x137   : > { %v2538_v28 = vmul.f32 %v5399_v60, %v2506_v57  ;;  %v2002_v1 = vsel %vm569_vm5, %v2001_v53, %v1997_v35  ;;  %v2579_v61 = vsel %vm427_vm1, %v2523_v11, 0.0  ;;  %v2537_v32 = vmul.f32 %v5399_v60, %v2505_v51 }
 0x138   : > { %v1880_v54 = vpop.xlane.xlu1 %1879  ;;  %v2493_v40 = vmax.f32 %v5682_v34, %v5450_v18  ;;  %v2011_v24 = vsel %vm569_vm5, %v2010_v0, %v2006_v20  ;;  %v2526_v18 = vmul.f32 %v5399_v60, %v2494_v49  ;;  %v2508_v58 = vmax.f32 %v5707_v56, %v6589_v6  ;;  %v6593_v49 = vld [vmem:[#allocation9_spill] sm:$0xff] }
 0x139   : > { %v1877_v37 = vpop.xlane.xlu0 %1876  ;;  %v2138_v10 = vsel %vm706_vm6, %v2011_v24, %v2002_v1  ;;  %v2019_v39 = vrot.slane %v1880_v54, %v4913_v4  ;;  %v2624_v62 = vsel %vm427_vm1, %v2538_v28, 0.0  ;;  %v3219_v14 = vpack.c.bf16 %v3087_v63, %v3086_v45  ;;  %v6595_v54 = vld [vmem:[#allocation69_spill] sm:$0xff]  ;;  %v6597_v45 = vld [vmem:[#allocation54_spill] sm:$0xff] }
 0x13a   : > { %2577 = vadd.xlane.f32.xlu1 %v2576_v22  ;;  %2574 = vadd.xlane.f32.xlu0 %v2573_v52  ;;  %v2015_v34 = vrot.slane %v1877_v37, %v4873_v26  ;;  %v5800_v15 = vpack.c.bf16 %v3097_v47, %v3096_v41  ;;  %v2621_v22 = vsel %vm427_vm1, %v2537_v32, 0.0  ;;  %v2525_v25 = vmul.f32 %v5399_v60, %v2493_v40  ;;  %v6598_v32 = vld [vmem:[#allocation55_spill] sm:$0xff] }
 0x13b   : > { %v2507_v21 = vmax.f32 %v5715_v27, %v6590_v59  ;;  %3220 = vmatprep.subr.bf16.mxu0 %v3219_v14  ;;  %v2588_v56 = vsel %vm427_vm1, %v2526_v18, 0.0  ;;  %v2540_v33 = vmul.f32 %v5399_v60, %v2508_v58  ;;  %v2510_v50 = vmax.f32 %v5741_v30, %v6591_v31 }
 0x13c   : > { %v2020_v38 = vsel %vm569_vm5, %v2019_v39, %v2015_v34  ;;  %3222 = vmatpush3.bf16.msra.mxu0 %v3219_v14  ;;  %v2585_v27 = vsel %vm427_vm1, %v2525_v25, 0.0  ;;  %v1233_v0 = vrot.slane %v6593_v49, %v4913_v4  ;;  %v1247_v40 = vrot.slane %v6598_v32, %v4873_v26  ;;  %v6601_v32 = vld [vmem:[#allocation6_spill] sm:$0xff] }
 0x13d   : > { %v5808_v52 = vsel %vm708_vm8, %v2020_v38, %v2138_v10  ;;  %3228 = vmatprep.subr.bf16.mxu0 %v5800_v15  ;;  %v2539_v55 = vmul.f32 %v5399_v60, %v2507_v21  ;;  %v2542_v11 = vmul.f32 %v5399_v60, %v2510_v50  ;;  %v1260_v63 = vrot.slane %v5497_v43, %v4913_v4 }
 0x13e   : > { %2619 = vadd.xlane.f32.xlu1 %v2618_v3  ;;  %2616 = vadd.xlane.f32.xlu0 %v2615_v42  ;;  %v6592_v3 = vld [vmem:[#allocation73_spill] sm:$0xff]  ;;  %v2630_v42 = vsel %vm427_vm1, %v2540_v33, 0.0  ;;  %v1256_v41 = vrot.slane %v5499_v19, %v4873_v26  ;;  %v1269_v10 = vrot.slane %v5564_v48, %v4913_v4  ;;  %v1265_v39 = vrot.slane %v5566_v46, %v4873_v26 }
 0x13f   : > { %v2509_v23 = vmax.f32 %v5749_v12, %v6592_v3  ;;  %v2627_v30 = vsel %vm427_vm1, %v2539_v55, 0.0  ;;  %v6594_v12 = vld [vmem:[#allocation12_spill] sm:$0xff]  ;;  %v2636_v28 = vsel %vm427_vm1, %v2542_v11, 0.0  ;;  %v1278_v34 = vrot.slane %v5720_v7, %v4913_v4 }
 0x140   : > { %v1229_v20 = vrot.slane %v6594_v12, %v4873_v26  ;;  %v1274_v43 = vrot.slane %v5727_v29, %v4873_v26  ;;  %v1261_v14 = vsel %vm569_vm5, %v1260_v63, %v1256_v41  ;;  %v1270_v7 = vsel %vm569_vm5, %v1269_v10, %v1265_v39 }
 0x141   : > { %v2541_v53 = vmul.f32 %v5399_v60, %v2509_v23  ;;  %v6596_v60 = vld [vmem:[#allocation70_spill] sm:$0xff]  ;;  %v1323_v49 = vrot.slane %v5532_v9, %v4913_v4 }
 0x142   : > { %2583 = vadd.xlane.f32.xlu1 %v2582_v2  ;;  %2580 = vadd.xlane.f32.xlu0 %v2579_v61  ;;  %v1224_v2 = vrot.slane %v6595_v54, %v4913_v4  ;;  %v1220_v37 = vrot.slane %v6596_v60, %v4873_v26  ;;  %v1251_v61 = vrot.slane %v6597_v45, %v4913_v4 }
 0x143   : > { %v2633_v24 = vsel %vm427_vm1, %v2541_v53, 0.0  ;;  %v1234_v47 = vsel %vm569_vm5, %v1233_v0, %v1229_v20  ;;  %v1279_v21 = vsel %vm569_vm5, %v1278_v34, %v1274_v43  ;;  %v1319_v0 = vrot.slane %v5534_v5, %v4873_v26  ;;  %v3106_v34 = vld [vmem:[%s6166_s3 + $0x30] sm:$0xff]  ;;  %v3107_v43 = vld [vmem:[%s6166_s3 + $0x38] sm:$0xff] }
 0x144   : > { %v1225_v6 = vsel %vm569_vm5, %v1224_v2, %v1220_v37  ;;  %v1252_v58 = vsel %vm569_vm5, %v1251_v61, %v1247_v40  ;;  %v1332_v20 = vrot.slane %v5593_v44, %v4913_v4  ;;  %v1328_v54 = vrot.slane %v5606_v16, %v4873_v26 }
 0x145   : > { %v1916_v57 = vpop.xlane.xlu1 %1915  ;;  %v1361_v46 = vsel %vm706_vm6, %v1234_v47, %v1225_v6  ;;  %v1324_v61 = vsel %vm569_vm5, %v1323_v49, %v1319_v0 }
 0x146   : > { %2625 = vadd.xlane.f32.xlu1 %v2624_v62  ;;  %2622 = vadd.xlane.f32.xlu0 %v2621_v22  ;;  %v2073_v51 = vrot.slane %v1916_v57, %v4913_v4  ;;  %v1362_v22 = vsel %vm708_vm8, %v5495_v36, %v1361_v46 }
 0x147   : > { %v1363_v59 = vsel %vm710_vm9, %v1252_v58, %v1362_v22 }
 0x148   : > { %v1364_v31 = vsel %vm712_vm10, %v1261_v14, %v1363_v59  ;;  %v5925_v14 = vpack.c.bf16 %v3107_v43, %v3106_v34 }
 0x149   : > { %v1365_v36 = vsel %vm714_vm11, %v1270_v7, %v1364_v31 }
 0x14a   : > { %2589 = vadd.xlane.f32.xlu1 %v2588_v56  ;;  %2586 = vadd.xlane.f32.xlu0 %v2585_v27  ;;  %v1366_v3 = vsel %vm716_vm12, %v1279_v21, %v1365_v36 }
 0x14c   : > { %v1913_v35 = vpop.xlane.xlu0 %1912 }
 0x14d   : > { %v2069_v13 = vrot.slane %v1913_v35, %v4873_v26 }
 0x14e   : > { %2631 = vadd.xlane.f32.xlu1 %v2630_v42  ;;  %2628 = vadd.xlane.f32.xlu0 %v2627_v30  ;;  %v6599_v42 = vld [vmem:[#allocation22_spill] sm:$0xff] }
 0x14f   : > { %v2074_v1 = vsel %vm569_vm5, %v2073_v51, %v2069_v13  ;;  %v1314_v11 = vrot.slane %v6599_v42, %v4913_v4  ;;  %v6600_v51 = vld [vmem:[#allocation41_spill] sm:$0xff] }
 0x150   : > { %v1310_v30 = vrot.slane %v6600_v51, %v4873_v26 }
 0x151   : > { %v1922_v18 = vpop.xlane.xlu1 %1921 }
 0x152   : > { %2637 = vadd.xlane.f32.xlu1 %v2636_v28  ;;  %2634 = vadd.xlane.f32.xlu0 %v2633_v24  ;;  %v2082_v62 = vrot.slane %v1922_v18, %v4913_v4  ;;  %v1919_v19 = vpop.xlane.xlu0 %1918  ;;  %v1315_v2 = vsel %vm569_vm5, %v1314_v11, %v1310_v30  ;;  %v1341_v28 = vrot.slane %v5751_v17, %v4913_v4 }
 0x153   : > { %v2078_v48 = vrot.slane %v1919_v19, %v4873_v26  ;;  %v1369_v40 = vsel %vm708_vm8, %v1315_v2, %v6601_v32 }
 0x155   : > { %v2083_v29 = vsel %vm569_vm5, %v2082_v62, %v2078_v48  ;;  %v1133_v25 = vpop.xlane.xlu1 %1132 }
 0x156   : > { %v2145_v38 = vsel %vm706_vm6, %v2083_v29, %v2074_v1  ;;  %v1287_v56 = vrot.slane %v1133_v25, %v4913_v4  ;;  %v1130_v33 = vpop.xlane.xlu0 %1129  ;;  %v1337_v1 = vrot.slane %v5753_v8, %v4873_v26  ;;  %v1333_v8 = vsel %vm569_vm5, %v1332_v20, %v1328_v54 }
 0x157   : > { %v1283_v50 = vrot.slane %v1130_v33, %v4873_v26 }
 0x158   : > { %v1342_v24 = vsel %vm569_vm5, %v1341_v28, %v1337_v1 }
 0x159   : > { %v1288_v27 = vsel %vm569_vm5, %v1287_v56, %v1283_v50  ;;  %v1175_v55 = vpop.xlane.xlu1 %1174 }
 0x15a   : > { %v1172_v23 = vpop.xlane.xlu0 %1171  ;;  %v1367_v57 = vsel %vm718_vm13, %v1288_v27, %v1366_v3  ;;  %v1350_v5 = vrot.slane %v1175_v55, %v4913_v4 }
 0x15b   : > { %3173 = vmatprep.mubr.msk.f32.mxu0 %vm727_vm14, %v1367_v57  ;;  %v1346_v37 = vrot.slane %v1172_v23, %v4873_v26 }
 0x15d   : > { %v1886_v53 = vpop.xlane.xlu1 %1885  ;;  %v1351_v47 = vsel %vm569_vm5, %v1350_v5, %v1346_v37 }
 0x15e   : > { %v2028_v35 = vrot.slane %v1886_v53, %v4913_v4  ;;  %v1883_v13 = vpop.xlane.xlu0 %1882 }
 0x15f   : > { %v2024_v12 = vrot.slane %v1883_v13, %v4873_v26 }
 0x161   : > { %v2029_v9 = vsel %vm569_vm5, %v2028_v35, %v2024_v12  ;;  %v1928_v60 = vpop.xlane.xlu1 %1927 }
 0x162   : > { %v5898_v44 = vsel %vm710_vm9, %v2029_v9, %v5808_v52  ;;  %v2091_v16 = vrot.slane %v1928_v60, %v4913_v4  ;;  %v1925_v45 = vpop.xlane.xlu0 %1924  ;;  %v1370_v52 = vsel %vm710_vm9, %v1324_v61, %v1369_v40 }
 0x163   : > { %v2087_v17 = vrot.slane %v1925_v45, %v4873_v26  ;;  %v1371_v62 = vsel %vm712_vm10, %v1333_v8, %v1370_v52 }
 0x164   : > { %v1372_v6 = vsel %vm714_vm11, %v1342_v24, %v1371_v62 }
 0x165   : > { %v2092_v63 = vsel %vm569_vm5, %v2091_v16, %v2087_v17  ;;  %v1181_v41 = vpop.xlane.xlu1 %1180  ;;  %v1373_v58 = vsel %vm716_vm12, %v1351_v47, %v1372_v6 }
 0x166   : > { %v5911_v10 = vsel %vm708_vm8, %v2092_v63, %v2145_v38  ;;  %v1359_v39 = vrot.slane %v1181_v41, %v4913_v4  ;;  %v1178_v18 = vpop.xlane.xlu0 %1177 }
 0x167   : > { %v1355_v19 = vrot.slane %v1178_v18, %v4873_v26 }
 0x169   : > { %v1360_v48 = vsel %vm569_vm5, %v1359_v39, %v1355_v19  ;;  %v1892_v46 = vpop.xlane.xlu1 %1891 }
 0x16a   : > { %v1374_v22 = vsel %vm718_vm13, %v1360_v48, %v1373_v58  ;;  %v1889_v7 = vpop.xlane.xlu0 %1888  ;;  %v2037_v35 = vrot.slane %v1892_v46, %v4913_v4 }
 0x16b   : > { %3174 = vmatmul.mubr.msk.f32.vlgmr.msra.gmra.mrb[2].mxu0 %vm727_vm14, %v1374_v22  ;;  %v2033_v13 = vrot.slane %v1889_v7, %v4873_v26 }
 0x16c   : > { %3230 = vmatpush3.bf16.msra.mxu0 %v5800_v15 }
 0x16d   : > { %3236 = vmatprep.subr.bf16.mxu0 %v5925_v14  ;;  %v1934_v29 = vpop.xlane.xlu1 %1933  ;;  %v2038_v28 = vsel %vm569_vm5, %v2037_v35, %v2033_v13 }
 0x16e   : > { %v1931_v25 = vpop.xlane.xlu0 %1930  ;;  %v2141_v16 = vsel %vm712_vm10, %v2038_v28, %v5898_v44  ;;  %v2100_v52 = vrot.slane %v1934_v29, %v4913_v4 }
 0x16f   : > { %v2096_v44 = vrot.slane %v1931_v25, %v4873_v26 }
 0x171   : > { %v1898_v59 = vpop.xlane.xlu1 %1897  ;;  %v2101_v58 = vsel %vm569_vm5, %v2100_v52, %v2096_v44 }
 0x172   : > { %v1895_v21 = vpop.xlane.xlu0 %1894  ;;  %v2046_v49 = vrot.slane %v1898_v59, %v4913_v4  ;;  %v2147_v7 = vsel %vm710_vm9, %v2101_v58, %v5911_v10  ;;  %v807_v10 = vld [vmem:[%s6165_s2] sm:$0xff] }
 0x173   : > { %v2042_v0 = vrot.slane %v1895_v21, %v4873_v26  ;;  %3166 = vmatprep.mubr.msk.f32.mxu1 %vm727_vm14, %v807_v10 }
 0x175   : > { %v1940_v38 = vpop.xlane.xlu1 %1939  ;;  %v2047_v1 = vsel %vm569_vm5, %v2046_v49, %v2042_v0 }
 0x176   : > { %v1937_v56 = vpop.xlane.xlu0 %1936  ;;  %v2142_v61 = vsel %vm714_vm11, %v2047_v1, %v2141_v16  ;;  %v2109_v47 = vrot.slane %v1940_v38, %v4913_v4 }
 0x177   : > { %v2105_v39 = vrot.slane %v1937_v56, %v4873_v26 }
 0x179   : > { %v2110_v48 = vsel %vm569_vm5, %v2109_v47, %v2105_v39 }
 0x17a   : > { %v2148_v21 = vsel %vm712_vm10, %v2110_v48, %v2147_v7 }
 0x17e   : > { %v2548_v33 = vpop.xlane.xlu1 %2547 }
 0x17f   : > { %v2681_v31 = vrot.slane %v2548_v33, %v4913_v4 }
 0x183   : > { %v2545_v50 = vpop.xlane.xlu0 %2544 }
 0x184   : > { %v2677_v36 = vrot.slane %v2545_v50, %v4873_v26 }
 0x186   : > { %v5934_v27 = vsel %vm569_vm5, %v2681_v31, %v2677_v36 }
 0x187   : > { %v5936_v55 = vpop.xlane.xlu1 %2553 }
 0x188   : > { %v5938_v15 = vpop.xlane.xlu0 %2550  ;;  %v2690_v0 = vrot.slane %v5936_v55, %v4913_v4 }
 0x18b   : > { %v1904_v3 = vpop.xlane.xlu1 %1903 }
 0x18c   : > { %v1901_v23 = vpop.xlane.xlu0 %1900  ;;  %v2055_v20 = vrot.slane %v1904_v3, %v4913_v4 }
 0x18d   : > { %v2051_v54 = vrot.slane %v1901_v23, %v4873_v26 }
 0x18f   : > { %v1946_v57 = vpop.xlane.xlu1 %1945  ;;  %v2056_v60 = vsel %vm569_vm5, %v2055_v20, %v2051_v54  ;;  %v2686_v20 = vrot.slane %v5938_v15, %v4873_v26 }
 0x190   : > { %v1943_v42 = vpop.xlane.xlu0 %1942  ;;  %v2143_v32 = vsel %vm716_vm12, %v2056_v60, %v2142_v61  ;;  %v2118_v18 = vrot.slane %v1946_v57, %v4913_v4 }
 0x191   : > { %v2114_v34 = vrot.slane %v1943_v42, %v4873_v26 }
 0x193   : > { %v2119_v46 = vsel %vm569_vm5, %v2118_v18, %v2114_v34 }
 0x194   : > { %v5940_v11 = vpop.xlane.xlu1 %2559  ;;  %v5942_v51 = vpop.xlane.xlu0 %2556  ;;  %v2149_v56 = vsel %vm714_vm11, %v2119_v46, %v2148_v21 }
 0x195   : > { %v2699_v54 = vrot.slane %v5940_v11, %v4913_v4 }
 0x19d   : > { %v5944_v30 = vpop.xlane.xlu1 %2595 }
 0x19e   : > { %v2753_v52 = vrot.slane %v5944_v30, %v4913_v4 }
 0x1a2   : > { %v5946_v53 = vpop.xlane.xlu0 %2592 }
 0x1a3   : > { %v2749_v44 = vrot.slane %v5946_v53, %v4873_v26 }
 0x1a7   : > { %v5952_v12 = vpop.xlane.xlu1 %2601  ;;  %v5956_v2 = vpop.xlane.xlu0 %2598 }
 0x1ab   : > { %v1910_v9 = vpop.xlane.xlu1 %1909  ;;  %v1907_v37 = vpop.xlane.xlu0 %1906 }
 0x1ac   : > { %v2064_v5 = vrot.slane %v1910_v9, %v4913_v4  ;;  %v2060_v45 = vrot.slane %v1907_v37, %v4873_v26 }
 0x1ae   : > { %v2065_v17 = vsel %vm569_vm5, %v2064_v5, %v2060_v45  ;;  %v2691_v5 = vsel %vm569_vm5, %v2690_v0, %v2686_v20 }
 0x1af   : > { %v1952_v8 = vpop.xlane.xlu1 %1951  ;;  %v1949_v40 = vpop.xlane.xlu0 %1948  ;;  %v2144_v24 = vsel %vm718_vm13, %v2065_v17, %v2143_v32  ;;  %v2818_v32 = vsel %vm706_vm6, %v2691_v5, %v5934_v27 }
 0x1b0   : > { %3187 = vmatprep.mubr.msk.f32.mxu0 %vm727_vm14, %v2144_v24  ;;  %v2127_v62 = vrot.slane %v1952_v8, %v4913_v4  ;;  %v2123_v19 = vrot.slane %v1949_v40, %v4873_v26  ;;  %v2762_v24 = vrot.slane %v5952_v12, %v4913_v4 }
 0x1b2   : > { %v2128_v29 = vsel %vm569_vm5, %v2127_v62, %v2123_v19 }
 0x1b3   : > { %v2566_v63 = vpop.xlane.xlu1 %2565  ;;  %v2563_v41 = vpop.xlane.xlu0 %2562  ;;  %v2150_v33 = vsel %vm716_vm12, %v2128_v29, %v2149_v56 }
 0x1b4   : > { %v2708_v1 = vrot.slane %v2566_v63, %v4913_v4  ;;  %v2704_v9 = vrot.slane %v2563_v41, %v4873_v26  ;;  %v2758_v63 = vrot.slane %v5956_v2, %v4873_v26 }
 0x1b6   : > { %v2763_v48 = vsel %vm569_vm5, %v2762_v24, %v2758_v63 }
 0x1b7   : > { %v5976_v43 = vpop.xlane.xlu1 %2607  ;;  %v5980_v6 = vpop.xlane.xlu0 %2604 }
 0x1b8   : > { %v2771_v18 = vrot.slane %v5976_v43, %v4913_v4  ;;  %v2767_v12 = vrot.slane %v5980_v6, %v4873_v26 }
 0x1ba   : > { %v2772_v21 = vsel %vm569_vm5, %v2771_v18, %v2767_v12 }
 0x1bb   : > { %v1958_v22 = vpop.xlane.xlu1 %1957  ;;  %v1955_v59 = vpop.xlane.xlu0 %1954 }
 0x1bc   : > { %v2136_v25 = vrot.slane %v1958_v22, %v4913_v4  ;;  %v2132_v38 = vrot.slane %v1955_v59, %v4873_v26 }
 0x1be   : > { %v2137_v31 = vsel %vm569_vm5, %v2136_v25, %v2132_v38 }
 0x1bf   : > { %v2572_v50 = vpop.xlane.xlu1 %2571  ;;  %v2569_v36 = vpop.xlane.xlu0 %2568  ;;  %v2151_v3 = vsel %vm718_vm13, %v2137_v31, %v2150_v33  ;;  %v2754_v31 = vsel %vm569_vm5, %v2753_v52, %v2749_v44  ;;  %v809_v52 = vstv %s224_s15 }
 0x1c0   : > { %3188 = vmatmul.mubr.msk.f32.vlgmr.msra.gmra.mrb[4].mxu0 %vm727_vm14, %v2151_v3  ;;  %v2717_v37 = vrot.slane %v2572_v50, %v4913_v4  ;;  %v2713_v55 = vrot.slane %v2569_v36, %v4873_v26  ;;  %v2825_v3 = vsel %vm706_vm6, %v2763_v48, %v2754_v31 }
 0x1c1   : > { %3238 = vmatpush3.bf16.msra.mxu0 %v5925_v14  ;;  %v2695_v14 = vrot.slane %v5942_v51, %v4873_v26  ;;  %v2709_v51 = vsel %vm569_vm5, %v2708_v1, %v2704_v9 }
 0x1c2   : > { %v2718_v41 = vsel %vm569_vm5, %v2717_v37, %v2713_v55 }
 0x1c3   : > { %v2614_v23 = vpop.xlane.xlu1 %2613  ;;  %v2611_v57 = vpop.xlane.xlu0 %2610  ;;  %v2700_v15 = vsel %vm569_vm5, %v2699_v54, %v2695_v14 }
 0x1c4   : > { %v2819_v40 = vsel %vm708_vm8, %v2700_v15, %v2818_v32  ;;  %v2780_v53 = vrot.slane %v2614_v23, %v4913_v4  ;;  %v2776_v19 = vrot.slane %v2611_v57, %v4873_v26  ;;  %v2826_v23 = vsel %vm708_vm8, %v2772_v21, %v2825_v3  ;;  %v3110_v32 = vld [vmem:[%s6165_s2 + $0x30] sm:$0xff] }
 0x1c5   : > { %v2820_v47 = vsel %vm710_vm9, %v2709_v51, %v2819_v40 }
 0x1c6   : > { %v2821_v30 = vsel %vm712_vm10, %v2718_v41, %v2820_v47  ;;  %v2781_v50 = vsel %vm569_vm5, %v2780_v53, %v2776_v19  ;;  %v3111_v41 = vld [vmem:[%s6165_s2 + $0x38] sm:$0xff] }
 0x1c7   : > { %v2578_v42 = vpop.xlane.xlu1 %2577  ;;  %v2575_v35 = vpop.xlane.xlu0 %2574 }
 0x1c8   : > { %v2726_v16 = vrot.slane %v2578_v42, %v4913_v4  ;;  %v2722_v11 = vrot.slane %v2575_v35, %v4873_v26  ;;  %v2827_v35 = vsel %vm710_vm9, %v2781_v50, %v2826_v23 }
 0x1ca   : > { %v2727_v27 = vsel %vm569_vm5, %v2726_v16, %v2722_v11  ;;  %v3091_v11 = vld [vmem:[%s6165_s2 + $0x18] sm:$0xff] }
 0x1cb   : > { %v2620_v13 = vpop.xlane.xlu1 %2619  ;;  %v2617_v49 = vpop.xlane.xlu0 %2616  ;;  %v2822_v43 = vsel %vm714_vm11, %v2727_v27, %v2821_v30 }
 0x1cc   : > { %v2789_v46 = vrot.slane %v2620_v13, %v4913_v4  ;;  %v2785_v6 = vrot.slane %v2617_v49, %v4873_v26 }
 0x1ce   : > { %v2790_v10 = vsel %vm569_vm5, %v2789_v46, %v2785_v6 }
 0x1cf   : > { %v2584_v28 = vpop.xlane.xlu1 %2583  ;;  %v2581_v60 = vpop.xlane.xlu0 %2580  ;;  %v2828_v20 = vsel %vm712_vm10, %v2790_v10, %v2827_v35 }
 0x1d0   : > { %v2735_v61 = vrot.slane %v2584_v28, %v4913_v4  ;;  %v2731_v17 = vrot.slane %v2581_v60, %v4873_v26 }
 0x1d2   : > { %v2736_v2 = vsel %vm569_vm5, %v2735_v61, %v2731_v17 }
 0x1d3   : > { %v2626_v45 = vpop.xlane.xlu1 %2625  ;;  %v2623_v8 = vpop.xlane.xlu0 %2622  ;;  %v2823_v59 = vsel %vm716_vm12, %v2736_v2, %v2822_v43 }
 0x1d4   : > { %v2798_v22 = vrot.slane %v2626_v45, %v4913_v4  ;;  %v2794_v7 = vrot.slane %v2623_v8, %v4873_v26  ;;  %v3100_v45 = vld [vmem:[%s6165_s2 + $0x20] sm:$0xff]  ;;  %v3101_v8 = vld [vmem:[%s6165_s2 + $0x28] sm:$0xff] }
 0x1d6   : > { %v2799_v57 = vsel %vm569_vm5, %v2798_v22, %v2794_v7 }
 0x1d7   : > { %v2590_v39 = vpop.xlane.xlu1 %2589  ;;  %v2587_v62 = vpop.xlane.xlu0 %2586  ;;  %v2829_v14 = vsel %vm714_vm11, %v2799_v57, %v2828_v20 }
 0x1d8   : > { %v2744_v34 = vrot.slane %v2590_v39, %v4913_v4  ;;  %v2740_v58 = vrot.slane %v2587_v62, %v4873_v26 }
 0x1da   : > { %v2745_v29 = vsel %vm569_vm5, %v2744_v34, %v2740_v58 }
 0x1db   : > { %v2632_v25 = vpop.xlane.xlu1 %2631  ;;  %v2629_v56 = vpop.xlane.xlu0 %2628  ;;  %v2824_v33 = vsel %vm718_vm13, %v2745_v29, %v2823_v59 }
 0x1dc   : > { %v2807_v38 = vrot.slane %v2632_v25, %v4913_v4  ;;  %v2803_v36 = vrot.slane %v2629_v56, %v4873_v26  ;;  %3201 = vmatprep.mubr.msk.f32.mxu0 %vm727_vm14, %v2824_v33 }
 0x1de   : > { %v2808_v13 = vsel %vm569_vm5, %v2807_v38, %v2803_v36 }
 0x1df   : > { %v2638_v42 = vpop.xlane.xlu1 %2637  ;;  %v2635_v0 = vpop.xlane.xlu0 %2634  ;;  %v2830_v28 = vsel %vm716_vm12, %v2808_v13, %v2829_v14 }
 0x1e0   : > { %v2816_v49 = vrot.slane %v2638_v42, %v4913_v4  ;;  %v2812_v54 = vrot.slane %v2635_v0, %v4873_v26  ;;  %v808_v4 = vld [vmem:[%s6165_s2 + $0x8] sm:$0xff]  ;;  %v3090_v26 = vld [vmem:[%s6165_s2 + $0x10] sm:$0xff] }
 0x1e2   : > { %v2817_v1 = vsel %vm569_vm5, %v2816_v49, %v2812_v54 }
 0x1e3   : > { %v2831_v9 = vsel %vm718_vm13, %v2817_v1, %v2830_v28 }
 0x1e4   : > { %3202 = vmatmul.mubr.msk.f32.vlgmr.msra.gmra.mrb[6].mxu0 %vm727_vm14, %v2831_v9 }
 0x206   : > { %v3161_v60 = vpop.f32.mrb[0].mxu0 }
 0x207   : > { %v798_v5 = vpop.f32.mrb[1].mxu0 }
 0x208   : > { %v3215_v37 = vpack.c.bf16 %v3161_v60, %v798_v5 }
 0x20a   : > { %3216 = vmatprep.subr.bf16.mxu1 %v3215_v37 }
 0x20b   : > { %3218 = vmatpush3.bf16.msra.mxu1 %v3215_v37 }
 0x20e   : > { %3167 = vmatmul.mubr.msk.f32.vlgmr.msra.gmra.mrb[0].mxu1 %vm727_vm14, %v808_v4 }
 0x20f   : > { %3180 = vmatprep.mubr.msk.f32.mxu1 %vm727_vm14, %v3090_v26 }
 0x23e   : > { %v3175_v55 = vpop.f32.mrb[2].mxu0 }
 0x23f   : > { %v1445_v15 = vpop.f32.mrb[3].mxu0 }
 0x240   : > { %v3223_v16 = vpack.c.bf16 %v3175_v55, %v1445_v15 }
 0x242   : > { %3224 = vmatprep.subr.bf16.mxu1 %v3223_v16 }
 0x243   : > { %3226 = vmatpush3.bf16.msra.mxu1 %v3223_v16 }
 0x246   : > { %3181 = vmatmul.mubr.msk.f32.vlgmr.msra.gmra.mrb[2].mxu1 %vm727_vm14, %v3091_v11 }
 0x247   : > { %3194 = vmatprep.mubr.msk.f32.mxu1 %vm727_vm14, %v3100_v45 }
 0x293   : > { %v3189_v51 = vpop.f32.mrb[4].mxu0 }
 0x294   : > { %v2222_v61 = vpop.f32.mrb[5].mxu0 }
 0x295   : > { %v3231_v17 = vpack.c.bf16 %v3189_v51, %v2222_v61 }
 0x297   : > { %3232 = vmatprep.subr.bf16.mxu1 %v3231_v17 }
 0x298   : > { %3234 = vmatpush3.bf16.msra.mxu1 %v3231_v17 }
 0x29b   : > { %3195 = vmatmul.mubr.msk.f32.vlgmr.msra.gmra.mrb[4].mxu1 %vm727_vm14, %v3101_v8 }
 0x29c   : > { %3208 = vmatprep.mubr.msk.f32.mxu1 %vm727_vm14, %v3110_v32 }
 0x2b7   : > { %v3203_v40 = vpop.f32.mrb[6].mxu0 }
 0x2b8   : > { %v2902_v24 = vpop.f32.mrb[7].mxu0 }
 0x2b9   : > { %v3239_v63 = vpack.c.bf16 %v3203_v40, %v2902_v24 }
 0x2bb   : > { %3240 = vmatprep.subr.bf16.mxu1 %v3239_v63 }
 0x2bc   : > { %3242 = vmatpush3.bf16.msra.mxu1 %v3239_v63 }
 0x2bf   : > { %3209 = vmatmul.mubr.msk.f32.vlgmr.msra.gmra.mrb[6].mxu1 %vm727_vm14, %v3111_v41 }
 0x2e1   : > { %v3168_v44 = vpop.f32.mrb[0].mxu1 }
 0x2e2   : > { %v888_v47 = vadd.f32 %v3168_v44, %v809_v52  ;;  %v882_v27 = vpop.f32.mrb[1].mxu1 }
 0x2e3   : > { %v883_v39 = vadd.f32 %v882_v27, %v809_v52 }
 0x2e4   : > { %892 = vst.msk [vmem:[%s218_s18 + $0x8] sm:$0xff] %vm727_vm14, %v888_v47 }
 0x2e5   : > { %891 = vst.msk [vmem:[%s218_s18] sm:$0xff] %vm727_vm14, %v883_v39 }
 0x319   : > { %v3182_v18 = vpop.f32.mrb[2].mxu1 }
 0x31a   : > { %v1535_v12 = vadd.f32 %v3182_v18, %v809_v52  ;;  %v1529_v2 = vpop.f32.mrb[3].mxu1 }
 0x31b   : > { %v1530_v34 = vadd.f32 %v1529_v2, %v809_v52 }
 0x31c   : > { %3095 = vst.msk [vmem:[%s218_s18 + $0x18] sm:$0xff] %vm727_vm14, %v1535_v12 }
 0x31d   : > { %3094 = vst.msk [vmem:[%s218_s18 + $0x10] sm:$0xff] %vm727_vm14, %v1530_v34 }
 0x36e   : > { %v3196_v62 = vpop.f32.mrb[4].mxu1 }
 0x36f   : > { %v2312_v30 = vadd.f32 %v3196_v62, %v809_v52  ;;  %v2306_v53 = vpop.f32.mrb[5].mxu1 }
 0x370   : > { %v2307_v19 = vadd.f32 %v2306_v53, %v809_v52 }
 0x371   : > { %3105 = vst.msk [vmem:[%s218_s18 + $0x28] sm:$0xff] %vm727_vm14, %v2312_v30 }
 0x372   : > { %3104 = vst.msk [vmem:[%s218_s18 + $0x20] sm:$0xff] %vm727_vm14, %v2307_v19 }
 0x392   : > { %v3210_v58 = vpop.f32.mrb[6].mxu1 }
 0x393   : > { %v2992_v48 = vadd.f32 %v3210_v58, %v809_v52  ;;  %v2986_v43 = vpop.f32.mrb[7].mxu1 }
 0x394   : > { %v2987_v46 = vadd.f32 %v2986_v43, %v809_v52 }
 0x395   : > { %3115 = vst.msk [vmem:[%s218_s18 + $0x38] sm:$0xff] %vm727_vm14, %v2992_v48 }
 0x396   : > { %3114 = vst.msk [vmem:[%s218_s18 + $0x30] sm:$0xff] %vm727_vm14, %v2987_v46 }
 0x397   : > { %3331 = shalt.err (!%p3328_p3)
}
 0x398   : > { %s3332_s11 = scalar_lea.hbm %s6114_s6, 1024  ;;  %s3336_s14 = scalar_lea.hbm %s6168_s5, 2048 }
 0x399   : > { %p3333_p4 = scmp.ne.s32.totalorder %s6114_s6, %s3332_s11  ;;  %p3337_p9 = scmp.lt.u32.totalorder %s6114_s6, %s6168_s5 }
 0x39a   : > { %p3338_p10 = scmp.lt.u32.totalorder %s3336_s14, %s3332_s11  ;;  %p3340_p12 = scmp.lt.u32.totalorder %s3332_s11, %s6114_s6 }
 0x39b   : > { %p3334_p7 = pnand %p3333_p4, %p3456_p5 }
 0x39c   : > { %p3339_p11 = por %p3338_p10, %p3337_p9 }
 0x39d   : > { %p3335_p8 = pneg %p3334_p7 }
 0x39e   : > { %p3341_p13 = por %p3340_p12, %p3339_p11 }
 0x3a0   : > { %p3342_p0 = pnand %p3341_p13, %p3335_p8 }
 0x3a2   : > { %3345 = shalt.err (!%p3342_p0)
}
 0x3a3   : > { %s3383_s17 = smov 128   ;;  %s3384_s18 = smov 8  }
 0x3a4   : > { %3243 = dma.vmem_to_hbm [thread:$0]  (%p3456_p5), %s6116_s24, 1024, %s6114_s6, %s6122_s0, %s3383_s17, %s3383_s17, %s3384_s18  }
 0x3a5 PF: > { %p3249_p1 = scmp.ge.s32.totalorder %s3380_s23, 2  ;;  %s3027_s19 = sand.u32 1, %s3368_s20  }
 0x3a6   : > { %s3028_s26 = scalar_lea.sflag [#allocation4], %s3027_s19 }
 0x3a7   : > { %p3246_p2 = pnand %p3249_p1, %p3460_p6 }
 0x3a9   : > { %3363 = dma.done.wait (!%p3246_p2), %s3028_s26, 1024  }
 0x3aa   : > { %3365 = vsyncadd (!%p3246_p2), %s3028_s26, 4294966272  ;;  %p16_p3 = scmp.ge.s32.totalorder %s3443_s25, 4   ;;  %s6602_s20 = smov %s3372_s21 }
 0x3ab   : > { %s6603_s21 = smov %s3376_s22  ;;  %s6604_s22 = smov %s3454_s28 }
 0x3ac   : > { %s6605_s23 = smov %s3443_s25  ;;  %18 = sbr.rel (!%p16_p3) target bundleno = 5 (0x5), region = 84 }
 0x3b3   :  { %3033 = vsyncpa [#allocation4], 1 }
 0x3b4   :  { %3035 = vsyncpa [#allocation4 + $0x1], 1 }

</bundles_post_ra>
